<compile_context>
chip_gen: v7x
topology: tpu7x:2x2x1
jax: 0.10.0
libtpu: 0.0.40
codegen_flags: <defaults>
</compile_context>

<pallas_src>
import functools

import jax
import jax.numpy as jnp
from jax.experimental import pallas as pl
from jax.experimental.pallas import tpu as pltpu


# ----------------------------------------------------------------------------
# Pallas kernels
# ----------------------------------------------------------------------------
def _conv_pool_kernel(xp_ref, m0_ref, m1_ref, s0_ref, s1_ref, b_ref, o_ref, *,
                      taps, h_conv):
    """Fused Conv2d(5x5, pad 2) + bias + ReLU + MaxPool(2x2) for one sample.

    xp_ref : (Hp, Wp*Cin)          zero-padded input, lane = wp*Cin + c  (bf16)
    m0_ref : (KH, Wp*Cin, PW*Cout) banded weights -> even conv columns   (bf16)
    m1_ref : (KH, Wp*Cin, PW*Cout) banded weights -> odd  conv columns   (bf16)
    s0_ref : (PH, Hc)              one-hot selector of conv row 2*ph     (f32)
    s1_ref : (PH, Hc)              one-hot selector of conv row 2*ph+1   (f32)
    b_ref  : (1, PW*Cout)          bias tiled over pw                    (f32)
    o_ref  : (PH, PW*Cout)         pooled ReLU output, lane = pw*Cout+co (bf16)
    """
    nlanes = m0_ref.shape[2]
    a0 = jnp.zeros((h_conv, nlanes), jnp.float32)   # conv columns w = 2*pw
    a1 = jnp.zeros((h_conv, nlanes), jnp.float32)   # conv columns w = 2*pw + 1
    for kh in range(taps):                          # static, unrolled (5 taps)
        x_kh = xp_ref[pl.ds(kh, h_conv), :]         # input rows h + kh
        a0 = a0 + jnp.dot(x_kh, m0_ref[kh], preferred_element_type=jnp.float32)
        a1 = a1 + jnp.dot(x_kh, m1_ref[kh], preferred_element_type=jnp.float32)
    aw = jnp.maximum(a0, a1)                        # max over pool dx
    hp = jnp.maximum(                               # max over pool dy
        jnp.dot(s0_ref[...], aw, preferred_element_type=jnp.float32),
        jnp.dot(s1_ref[...], aw, preferred_element_type=jnp.float32))
    # Bias is constant across the pool window and ReLU is monotone, so
    # bias+ReLU after the max equals MaxPool(ReLU(conv + bias)) exactly.
    o_ref[...] = jnp.maximum(hp + b_ref[...], 0.0).astype(o_ref.dtype)


def _fc_kernel(x_ref, w1_ref, b1_ref, w2_ref, b2_ref, o_ref):
    """Fused fc1 (+ReLU) and fc2: y = relu(x @ W1 + b1) @ W2 + b2."""
    h = jnp.dot(x_ref[...], w1_ref[...], preferred_element_type=jnp.float32)
    h = jnp.maximum(h + b1_ref[...], 0.0)
    y = jnp.dot(h.astype(jnp.bfloat16), w2_ref[...],
                preferred_element_type=jnp.float32)
    o_ref[...] = (y + b2_ref[...]).astype(o_ref.dtype)


# ----------------------------------------------------------------------------
# pallas_call wrappers (gridded over the batch, weights VMEM-resident)
# ----------------------------------------------------------------------------
def _conv_block(xp, m0, m1, s0, s1, brow):
    n, hp_dim, wpc = xp.shape
    taps, kin, pwc = m0.shape
    ph, h_conv = s0.shape
    assert kin == wpc
    kernel = functools.partial(_conv_pool_kernel, taps=taps, h_conv=h_conv)
    return pl.pallas_call(
        kernel,
        out_shape=jax.ShapeDtypeStruct((n, ph, pwc), jnp.bfloat16),
        grid=(n,),
        in_specs=[
            pl.BlockSpec((None, hp_dim, wpc), lambda i: (i, 0, 0)),
            pl.BlockSpec((taps, kin, pwc), lambda i: (0, 0, 0)),
            pl.BlockSpec((taps, kin, pwc), lambda i: (0, 0, 0)),
            pl.BlockSpec((ph, h_conv), lambda i: (0, 0)),
            pl.BlockSpec((ph, h_conv), lambda i: (0, 0)),
            pl.BlockSpec((1, pwc), lambda i: (0, 0)),
        ],
        out_specs=pl.BlockSpec((None, ph, pwc), lambda i: (i, 0, 0)),
        compiler_params=pltpu.CompilerParams(dimension_semantics=("parallel",)),
    )(xp, m0, m1, s0, s1, brow)


def _fc_block(flat, w1m, b1row, w2m, b2row, tm=8):
    n_pad, k = flat.shape
    hid = w1m.shape[1]
    out_dim = w2m.shape[1]          # lane-padded to 128 by the caller
    return pl.pallas_call(
        _fc_kernel,
        out_shape=jax.ShapeDtypeStruct((n_pad, out_dim), jnp.float32),
        grid=(n_pad // tm,),
        in_specs=[
            pl.BlockSpec((tm, k), lambda i: (i, 0)),
            pl.BlockSpec((k, hid), lambda i: (0, 0)),
            pl.BlockSpec((1, hid), lambda i: (0, 0)),
            pl.BlockSpec((hid, out_dim), lambda i: (0, 0)),
            pl.BlockSpec((1, out_dim), lambda i: (0, 0)),
        ],
        out_specs=pl.BlockSpec((tm, out_dim), lambda i: (i, 0)),
        compiler_params=pltpu.CompilerParams(dimension_semantics=("parallel",)),
    )(flat, w1m, b1row, w2m, b2row)


# ----------------------------------------------------------------------------
# Trace-time weight preparation (banded conv matrices, pool selectors)
# ----------------------------------------------------------------------------
def _banded_pool_weights(w, w_padded, dx, dtype=jnp.bfloat16):
    """Banded matmul weights folding KW taps, Cin, and the pooling-column parity.

    w: (Cout, Cin, KH, KW) PyTorch conv weight.  Returns M of shape
    (KH, Wp*Cin, PW*Cout) with
        M[kh, wp*Cin + c, pw*Cout + co] = w[co, c, kh, wp - (2*pw + dx)]
    (zero when the tap index is out of [0, KW)), so that
        conv(xpad)[h, 2*pw + dx, co] = sum_kh  xpad_flat[h + kh, :] @ M[kh]
    where xpad_flat[hp, wp*Cin + c] = xpad[hp, wp, c].
    """
    cout, cin, kh_sz, kw_sz = w.shape
    w_conv = w_padded - (kw_sz - 1)                  # conv output width
    pw_count = w_conv // 2                           # pooled output width
    wp_idx = jnp.arange(w_padded)[:, None]           # (Wp, 1)
    pw_idx = jnp.arange(pw_count)[None, :]           # (1, PW)
    kw = wp_idx - (2 * pw_idx + dx)                  # (Wp, PW)
    valid = (kw >= 0) & (kw < kw_sz)
    kw_c = jnp.clip(kw, 0, kw_sz - 1)
    wt = jnp.transpose(w, (2, 3, 1, 0))              # (KH, KW, Cin, Cout)
    g = wt[:, kw_c]                                  # (KH, Wp, PW, Cin, Cout)
    g = jnp.where(valid[None, :, :, None, None], g, 0.0)
    g = jnp.transpose(g, (0, 1, 3, 2, 4))            # (KH, Wp, Cin, PW, Cout)
    return g.reshape(kh_sz, w_padded * cin, pw_count * cout).astype(dtype)


def _hpool_selectors(h_conv, dtype=jnp.float32):
    ph = h_conv // 2
    rows = jnp.arange(h_conv)[None, :]
    sel = jnp.arange(ph)[:, None]
    s0 = (rows == 2 * sel).astype(dtype)
    s1 = (rows == 2 * sel + 1).astype(dtype)
    return s0, s1


# ----------------------------------------------------------------------------
# Parameters (deterministic, mirrors the module's init)
# ----------------------------------------------------------------------------
def init_params(key):
    ks = jax.random.split(key, 5)

    def kaiming(k, shape, fan_in):  # kaiming_normal_ with nonlinearity='relu'
        return jax.random.normal(k, shape, jnp.float32) * jnp.sqrt(2.0 / fan_in)

    w1 = kaiming(ks[0], (32, 1, 5, 5), 1 * 5 * 5)        # Conv2d(1, 32, 5)
    b1 = jnp.zeros((32,), jnp.float32)
    w2 = kaiming(ks[1], (32, 32, 5, 5), 32 * 5 * 5)      # Conv2d(32, 32, 5)
    b2 = jnp.zeros((32,), jnp.float32)
    wf1 = kaiming(ks[2], (128, 7 * 7 * 32), 7 * 7 * 32)  # Linear(1568, 128)
    bf1 = jnp.zeros((128,), jnp.float32)
    # fc2 is NOT touched by init_weights -> PyTorch default nn.Linear init.
    bound = 1.0 / jnp.sqrt(128.0)
    wf2 = jax.random.uniform(ks[3], (10, 128), jnp.float32, -bound, bound)
    bf2 = jax.random.uniform(ks[4], (10,), jnp.float32, -bound, bound)
    return dict(w1=w1, b1=b1, w2=w2, b2=b2, wf1=wf1, bf1=bf1, wf2=wf2, bf2=bf2)


# ----------------------------------------------------------------------------
# Forward pass
# ----------------------------------------------------------------------------
def cnn_mnist_forward(x_nchw, params):
    n = x_nchw.shape[0]
    bf16 = jnp.bfloat16

    # ------------- conv block 1: 1 -> 32 channels, 28x28 -> 14x14 -----------
    x2d = x_nchw[:, 0, :, :].astype(jnp.float32)                    # (N, 28, 28)
    xp1 = jnp.pad(x2d, ((0, 0), (2, 2), (2, 2))).astype(bf16)       # (N, 32, 32)
    m1_0 = _banded_pool_weights(params["w1"], 32, 0)                # (5, 32, 448)
    m1_1 = _banded_pool_weights(params["w1"], 32, 1)
    s1_0, s1_1 = _hpool_selectors(28)                               # (14, 28)
    b1_row = jnp.tile(params["b1"], 14)[None, :].astype(jnp.float32)  # (1, 448)
    h1 = _conv_block(xp1, m1_0, m1_1, s1_0, s1_1, b1_row)           # (N, 14, 448)

    # ------------- conv block 2: 32 -> 32 channels, 14x14 -> 7x7 ------------
    # h1 lanes are w*32 + c, so padding the lane axis by 2*32 on each side is
    # exactly 2 columns of spatial zero padding; rows are padded by 2 directly.
    xp2 = jnp.pad(h1, ((0, 0), (2, 2), (64, 64)))                   # (N, 18, 576) bf16
    m2_0 = _banded_pool_weights(params["w2"], 18, 0)                # (5, 576, 224)
    m2_1 = _banded_pool_weights(params["w2"], 18, 1)
    s2_0, s2_1 = _hpool_selectors(14)                               # (7, 14)
    b2_row = jnp.tile(params["b2"], 7)[None, :].astype(jnp.float32)   # (1, 224)
    h2 = _conv_block(xp2, m2_0, m2_1, s2_0, s2_1, b2_row)           # (N, 7, 224)

    # ------------- flatten + fc1(+ReLU) + fc2 (one fused kernel) ------------
    # h2[n, ph, pw*32 + co] is the NCHW element (n, co, ph, pw); torch.Flatten's
    # ordering is absorbed by permuting fc1's weight columns at trace time.
    flat = h2.reshape(n, 7 * 224)                                   # (N, 1568) bf16
    wf1_perm = jnp.transpose(
        params["wf1"].reshape(128, 32, 7, 7), (0, 2, 3, 1)).reshape(128, 1568)
    wf1m = wf1_perm.T.astype(bf16)                                  # (1568, 128)
    # Pad fc2 to 128 output lanes (zero columns) so the kernel's output store
    # is a full unmasked lane-dense vst; slice back to 10 logits afterwards.
    wf2m = jnp.pad(params["wf2"].T, ((0, 0), (0, 118))).astype(bf16)  # (128, 128)
    bf1_row = params["bf1"][None, :].astype(jnp.float32)            # (1, 128)
    bf2_row = jnp.pad(params["bf2"], (0, 118))[None, :].astype(jnp.float32)  # (1, 128)

    tm = 8
    n_pad = pl.cdiv(n, tm) * tm
    flat_p = jnp.pad(flat, ((0, n_pad - n), (0, 0)))                # zero rows are discarded
    logits_pad = _fc_block(flat_p, wf1m, bf1_row, wf2m, bf2_row, tm=tm)
    return logits_pad[:n, :10]


if __name__ == "__main__":
    key = jax.random.PRNGKey(0)
    k_params, k_x = jax.random.split(key)
    params = init_params(k_params)
    # 28x28 single-channel input is required by the module (7*7*32 flatten).
    x = jax.random.normal(k_x, (2, 1, 28, 28), jnp.float32)

    logits = jax.jit(cnn_mnist_forward)(x, params)
    logits = jax.block_until_ready(logits)

    assert logits.shape == (2, 10), logits.shape
    assert bool(jnp.all(jnp.isfinite(logits)))
    print("KERNEL_OK")
</pallas_src>

<mosaic_0001>
module attributes {stable_mosaic.version = 11 : i64} {
  func.func @_conv_pool_kernel(%arg0: i32, %arg1: memref<1x32x32xbf16, #tpu.memory_space<vmem>>, %arg2: memref<5x32x448xbf16, #tpu.memory_space<vmem>>, %arg3: memref<5x32x448xbf16, #tpu.memory_space<vmem>>, %arg4: memref<14x28xf32, #tpu.memory_space<vmem>>, %arg5: memref<14x28xf32, #tpu.memory_space<vmem>>, %arg6: memref<1x448xf32, #tpu.memory_space<vmem>>, %arg7: memref<1x14x448xbf16, #tpu.memory_space<vmem>>) attributes {dimension_semantics = [#tpu.dimension_semantics<parallel>], iteration_bounds = array<i64: 2>, scalar_prefetch = 0 : i64, scratch_operands = 0 : i64, tpu.core_type = #tpu.core_type<tc>, window_params = [{transform_indices = @transform_0, window_bounds = array<i64: 1, 32, 32>}, {pipeline_mode = #tpu.pipeline_mode<synchronous>, transform_indices = @transform_1, window_bounds = array<i64: 5, 32, 448>}, {pipeline_mode = #tpu.pipeline_mode<synchronous>, transform_indices = @transform_2, window_bounds = array<i64: 5, 32, 448>}, {pipeline_mode = #tpu.pipeline_mode<synchronous>, transform_indices = @transform_3, window_bounds = array<i64: 14, 28>}, {pipeline_mode = #tpu.pipeline_mode<synchronous>, transform_indices = @transform_4, window_bounds = array<i64: 14, 28>}, {pipeline_mode = #tpu.pipeline_mode<synchronous>, transform_indices = @transform_5, window_bounds = array<i64: 1, 448>}, {transform_indices = @transform_6, window_bounds = array<i64: 1, 14, 448>}]} {
    %cst = arith.constant 0.000000e+00 : f32
    %0 = vector.broadcast %cst : f32 to vector<28x448xf32>
    %cst_0 = arith.constant 0.000000e+00 : f32
    %1 = vector.broadcast %cst_0 : f32 to vector<28x448xf32>
    %c0 = arith.constant 0 : index
    %c0_1 = arith.constant 0 : index
    %c0_2 = arith.constant 0 : index
    %2 = vector.load %arg1[%c0, %c0_1, %c0_2] : memref<1x32x32xbf16, #tpu.memory_space<vmem>>, vector<1x28x32xbf16>
    %3 = vector.shape_cast %2 : vector<1x28x32xbf16> to vector<28x32xbf16>
    %c0_3 = arith.constant 0 : index
    %c0_4 = arith.constant 0 : index
    %c0_5 = arith.constant 0 : index
    %4 = vector.load %arg2[%c0_3, %c0_4, %c0_5] : memref<5x32x448xbf16, #tpu.memory_space<vmem>>, vector<1x32x448xbf16>
    %5 = vector.shape_cast %4 : vector<1x32x448xbf16> to vector<32x448xbf16>
    %cst_6 = arith.constant dense<0.000000e+00> : vector<28x448xf32>
    %6 = tpu.matmul %3, %5, %cst_6 {dimension_numbers = #tpu.dot_dimension_numbers<[1], [0], [0], [1], [0, 0, 1, 1], [], []>} : vector<28x32xbf16>, vector<32x448xbf16>, vector<28x448xf32> -> vector<28x448xf32>
    %7 = arith.addf %0, %6 : vector<28x448xf32>
    %c0_7 = arith.constant 0 : index
    %c0_8 = arith.constant 0 : index
    %c0_9 = arith.constant 0 : index
    %8 = vector.load %arg3[%c0_7, %c0_8, %c0_9] : memref<5x32x448xbf16, #tpu.memory_space<vmem>>, vector<1x32x448xbf16>
    %9 = vector.shape_cast %8 : vector<1x32x448xbf16> to vector<32x448xbf16>
    %cst_10 = arith.constant dense<0.000000e+00> : vector<28x448xf32>
    %10 = tpu.matmul %3, %9, %cst_10 {dimension_numbers = #tpu.dot_dimension_numbers<[1], [0], [0], [1], [0, 0, 1, 1], [], []>} : vector<28x32xbf16>, vector<32x448xbf16>, vector<28x448xf32> -> vector<28x448xf32>
    %11 = arith.addf %1, %10 : vector<28x448xf32>
    %c0_11 = arith.constant 0 : index
    %c1 = arith.constant 1 : index
    %c0_12 = arith.constant 0 : index
    %12 = vector.load %arg1[%c0_11, %c1, %c0_12] : memref<1x32x32xbf16, #tpu.memory_space<vmem>>, vector<1x28x32xbf16>
    %13 = vector.shape_cast %12 : vector<1x28x32xbf16> to vector<28x32xbf16>
    %c1_13 = arith.constant 1 : index
    %c0_14 = arith.constant 0 : index
    %c0_15 = arith.constant 0 : index
    %14 = vector.load %arg2[%c1_13, %c0_14, %c0_15] : memref<5x32x448xbf16, #tpu.memory_space<vmem>>, vector<1x32x448xbf16>
    %15 = vector.shape_cast %14 : vector<1x32x448xbf16> to vector<32x448xbf16>
    %cst_16 = arith.constant dense<0.000000e+00> : vector<28x448xf32>
    %16 = tpu.matmul %13, %15, %cst_16 {dimension_numbers = #tpu.dot_dimension_numbers<[1], [0], [0], [1], [0, 0, 1, 1], [], []>} : vector<28x32xbf16>, vector<32x448xbf16>, vector<28x448xf32> -> vector<28x448xf32>
    %17 = arith.addf %7, %16 : vector<28x448xf32>
    %c1_17 = arith.constant 1 : index
    %c0_18 = arith.constant 0 : index
    %c0_19 = arith.constant 0 : index
    %18 = vector.load %arg3[%c1_17, %c0_18, %c0_19] : memref<5x32x448xbf16, #tpu.memory_space<vmem>>, vector<1x32x448xbf16>
    %19 = vector.shape_cast %18 : vector<1x32x448xbf16> to vector<32x448xbf16>
    %cst_20 = arith.constant dense<0.000000e+00> : vector<28x448xf32>
    %20 = tpu.matmul %13, %19, %cst_20 {dimension_numbers = #tpu.dot_dimension_numbers<[1], [0], [0], [1], [0, 0, 1, 1], [], []>} : vector<28x32xbf16>, vector<32x448xbf16>, vector<28x448xf32> -> vector<28x448xf32>
    %21 = arith.addf %11, %20 : vector<28x448xf32>
    %c0_21 = arith.constant 0 : index
    %c2 = arith.constant 2 : index
    %c0_22 = arith.constant 0 : index
    %22 = vector.load %arg1[%c0_21, %c2, %c0_22] : memref<1x32x32xbf16, #tpu.memory_space<vmem>>, vector<1x28x32xbf16>
    %23 = vector.shape_cast %22 : vector<1x28x32xbf16> to vector<28x32xbf16>
    %c2_23 = arith.constant 2 : index
    %c0_24 = arith.constant 0 : index
    %c0_25 = arith.constant 0 : index
    %24 = vector.load %arg2[%c2_23, %c0_24, %c0_25] : memref<5x32x448xbf16, #tpu.memory_space<vmem>>, vector<1x32x448xbf16>
    %25 = vector.shape_cast %24 : vector<1x32x448xbf16> to vector<32x448xbf16>
    %cst_26 = arith.constant dense<0.000000e+00> : vector<28x448xf32>
    %26 = tpu.matmul %23, %25, %cst_26 {dimension_numbers = #tpu.dot_dimension_numbers<[1], [0], [0], [1], [0, 0, 1, 1], [], []>} : vector<28x32xbf16>, vector<32x448xbf16>, vector<28x448xf32> -> vector<28x448xf32>
    %27 = arith.addf %17, %26 : vector<28x448xf32>
    %c2_27 = arith.constant 2 : index
    %c0_28 = arith.constant 0 : index
    %c0_29 = arith.constant 0 : index
    %28 = vector.load %arg3[%c2_27, %c0_28, %c0_29] : memref<5x32x448xbf16, #tpu.memory_space<vmem>>, vector<1x32x448xbf16>
    %29 = vector.shape_cast %28 : vector<1x32x448xbf16> to vector<32x448xbf16>
    %cst_30 = arith.constant dense<0.000000e+00> : vector<28x448xf32>
    %30 = tpu.matmul %23, %29, %cst_30 {dimension_numbers = #tpu.dot_dimension_numbers<[1], [0], [0], [1], [0, 0, 1, 1], [], []>} : vector<28x32xbf16>, vector<32x448xbf16>, vector<28x448xf32> -> vector<28x448xf32>
    %31 = arith.addf %21, %30 : vector<28x448xf32>
    %c0_31 = arith.constant 0 : index
    %c3 = arith.constant 3 : index
    %c0_32 = arith.constant 0 : index
    %32 = vector.load %arg1[%c0_31, %c3, %c0_32] : memref<1x32x32xbf16, #tpu.memory_space<vmem>>, vector<1x28x32xbf16>
    %33 = vector.shape_cast %32 : vector<1x28x32xbf16> to vector<28x32xbf16>
    %c3_33 = arith.constant 3 : index
    %c0_34 = arith.constant 0 : index
    %c0_35 = arith.constant 0 : index
    %34 = vector.load %arg2[%c3_33, %c0_34, %c0_35] : memref<5x32x448xbf16, #tpu.memory_space<vmem>>, vector<1x32x448xbf16>
    %35 = vector.shape_cast %34 : vector<1x32x448xbf16> to vector<32x448xbf16>
    %cst_36 = arith.constant dense<0.000000e+00> : vector<28x448xf32>
    %36 = tpu.matmul %33, %35, %cst_36 {dimension_numbers = #tpu.dot_dimension_numbers<[1], [0], [0], [1], [0, 0, 1, 1], [], []>} : vector<28x32xbf16>, vector<32x448xbf16>, vector<28x448xf32> -> vector<28x448xf32>
    %37 = arith.addf %27, %36 : vector<28x448xf32>
    %c3_37 = arith.constant 3 : index
    %c0_38 = arith.constant 0 : index
    %c0_39 = arith.constant 0 : index
    %38 = vector.load %arg3[%c3_37, %c0_38, %c0_39] : memref<5x32x448xbf16, #tpu.memory_space<vmem>>, vector<1x32x448xbf16>
    %39 = vector.shape_cast %38 : vector<1x32x448xbf16> to vector<32x448xbf16>
    %cst_40 = arith.constant dense<0.000000e+00> : vector<28x448xf32>
    %40 = tpu.matmul %33, %39, %cst_40 {dimension_numbers = #tpu.dot_dimension_numbers<[1], [0], [0], [1], [0, 0, 1, 1], [], []>} : vector<28x32xbf16>, vector<32x448xbf16>, vector<28x448xf32> -> vector<28x448xf32>
    %41 = arith.addf %31, %40 : vector<28x448xf32>
    %c0_41 = arith.constant 0 : index
    %c4 = arith.constant 4 : index
    %c0_42 = arith.constant 0 : index
    %42 = vector.load %arg1[%c0_41, %c4, %c0_42] : memref<1x32x32xbf16, #tpu.memory_space<vmem>>, vector<1x28x32xbf16>
    %43 = vector.shape_cast %42 : vector<1x28x32xbf16> to vector<28x32xbf16>
    %c4_43 = arith.constant 4 : index
    %c0_44 = arith.constant 0 : index
    %c0_45 = arith.constant 0 : index
    %44 = vector.load %arg2[%c4_43, %c0_44, %c0_45] : memref<5x32x448xbf16, #tpu.memory_space<vmem>>, vector<1x32x448xbf16>
    %45 = vector.shape_cast %44 : vector<1x32x448xbf16> to vector<32x448xbf16>
    %cst_46 = arith.constant dense<0.000000e+00> : vector<28x448xf32>
    %46 = tpu.matmul %43, %45, %cst_46 {dimension_numbers = #tpu.dot_dimension_numbers<[1], [0], [0], [1], [0, 0, 1, 1], [], []>} : vector<28x32xbf16>, vector<32x448xbf16>, vector<28x448xf32> -> vector<28x448xf32>
    %47 = arith.addf %37, %46 : vector<28x448xf32>
    %c4_47 = arith.constant 4 : index
    %c0_48 = arith.constant 0 : index
    %c0_49 = arith.constant 0 : index
    %48 = vector.load %arg3[%c4_47, %c0_48, %c0_49] : memref<5x32x448xbf16, #tpu.memory_space<vmem>>, vector<1x32x448xbf16>
    %49 = vector.shape_cast %48 : vector<1x32x448xbf16> to vector<32x448xbf16>
    %cst_50 = arith.constant dense<0.000000e+00> : vector<28x448xf32>
    %50 = tpu.matmul %43, %49, %cst_50 {dimension_numbers = #tpu.dot_dimension_numbers<[1], [0], [0], [1], [0, 0, 1, 1], [], []>} : vector<28x32xbf16>, vector<32x448xbf16>, vector<28x448xf32> -> vector<28x448xf32>
    %51 = arith.addf %41, %50 : vector<28x448xf32>
    %52 = arith.maximumf %47, %51 : vector<28x448xf32>
    %c0_51 = arith.constant 0 : index
    %c0_52 = arith.constant 0 : index
    %53 = vector.load %arg4[%c0_51, %c0_52] : memref<14x28xf32, #tpu.memory_space<vmem>>, vector<14x28xf32>
    %cst_53 = arith.constant dense<0.000000e+00> : vector<14x448xf32>
    %54 = tpu.matmul %53, %52, %cst_53 {dimension_numbers = #tpu.dot_dimension_numbers<[1], [0], [0], [1], [0, 0, 1, 1], [], []>} : vector<14x28xf32>, vector<28x448xf32>, vector<14x448xf32> -> vector<14x448xf32>
    %c0_54 = arith.constant 0 : index
    %c0_55 = arith.constant 0 : index
    %55 = vector.load %arg5[%c0_54, %c0_55] : memref<14x28xf32, #tpu.memory_space<vmem>>, vector<14x28xf32>
    %cst_56 = arith.constant dense<0.000000e+00> : vector<14x448xf32>
    %56 = tpu.matmul %55, %52, %cst_56 {dimension_numbers = #tpu.dot_dimension_numbers<[1], [0], [0], [1], [0, 0, 1, 1], [], []>} : vector<14x28xf32>, vector<28x448xf32>, vector<14x448xf32> -> vector<14x448xf32>
    %57 = arith.maximumf %54, %56 : vector<14x448xf32>
    %c0_57 = arith.constant 0 : index
    %c0_58 = arith.constant 0 : index
    %58 = vector.load %arg6[%c0_57, %c0_58] : memref<1x448xf32, #tpu.memory_space<vmem>>, vector<1x448xf32>
    %59 = vector.broadcast %58 : vector<1x448xf32> to vector<14x448xf32>
    %60 = arith.addf %57, %59 : vector<14x448xf32>
    %cst_59 = arith.constant 0.000000e+00 : f32
    %61 = vector.broadcast %cst_59 : f32 to vector<14x448xf32>
    %62 = arith.maximumf %60, %61 : vector<14x448xf32>
    %63 = arith.truncf %62 : vector<14x448xf32> to vector<14x448xbf16>
    %c0_60 = arith.constant 0 : index
    %c0_61 = arith.constant 0 : index
    %c0_62 = arith.constant 0 : index
    %64 = vector.load %arg7[%c0_60, %c0_61, %c0_62] : memref<1x14x448xbf16, #tpu.memory_space<vmem>>, vector<1x14x448xbf16>
    %65 = vector.shape_cast %64 : vector<1x14x448xbf16> to vector<14x448xbf16>
    %66 = vector.shape_cast %63 : vector<14x448xbf16> to vector<1x14x448xbf16>
    tpu.vector_store %arg7[%c0_60, %c0_61, %c0_62], %66 {strides = array<i32>} : memref<1x14x448xbf16, #tpu.memory_space<vmem>>, vector<1x14x448xbf16>,
    return
  }
  func.func @transform_0(%arg0: i32) -> (i32, i32, i32) {
    %c0_i32 = arith.constant 0 : i32
    %c0_i32_0 = arith.constant 0 : i32
    %c0_i32_1 = arith.constant 0 : i32
    return %arg0, %c0_i32, %c0_i32_0 : i32, i32, i32
  }
  func.func @transform_1(%arg0: i32) -> (i32, i32, i32) {
    %c0_i32 = arith.constant 0 : i32
    %c0_i32_0 = arith.constant 0 : i32
    %c0_i32_1 = arith.constant 0 : i32
    %c0_i32_2 = arith.constant 0 : i32
    return %c0_i32, %c0_i32_0, %c0_i32_1 : i32, i32, i32
  }
  func.func @transform_2(%arg0: i32) -> (i32, i32, i32) {
    %c0_i32 = arith.constant 0 : i32
    %c0_i32_0 = arith.constant 0 : i32
    %c0_i32_1 = arith.constant 0 : i32
    %c0_i32_2 = arith.constant 0 : i32
    return %c0_i32, %c0_i32_0, %c0_i32_1 : i32, i32, i32
  }
  func.func @transform_3(%arg0: i32) -> (i32, i32) {
    %c0_i32 = arith.constant 0 : i32
    %c0_i32_0 = arith.constant 0 : i32
    %c0_i32_1 = arith.constant 0 : i32
    return %c0_i32, %c0_i32_0 : i32, i32
  }
  func.func @transform_4(%arg0: i32) -> (i32, i32) {
    %c0_i32 = arith.constant 0 : i32
    %c0_i32_0 = arith.constant 0 : i32
    %c0_i32_1 = arith.constant 0 : i32
    return %c0_i32, %c0_i32_0 : i32, i32
  }
  func.func @transform_5(%arg0: i32) -> (i32, i32) {
    %c0_i32 = arith.constant 0 : i32
    %c0_i32_0 = arith.constant 0 : i32
    %c0_i32_1 = arith.constant 0 : i32
    return %c0_i32, %c0_i32_0 : i32, i32
  }
  func.func @transform_6(%arg0: i32) -> (i32, i32, i32) {
    %c0_i32 = arith.constant 0 : i32
    %c0_i32_0 = arith.constant 0 : i32
    %c0_i32_1 = arith.constant 0 : i32
    return %arg0, %c0_i32, %c0_i32_0 : i32, i32, i32
  }
}

module attributes {stable_mosaic.version = 11 : i64} {
  func.func @_conv_pool_kernel(%arg0: i32, %arg1: memref<1x18x576xbf16, #tpu.memory_space<vmem>>, %arg2: memref<5x576x224xbf16, #tpu.memory_space<vmem>>, %arg3: memref<5x576x224xbf16, #tpu.memory_space<vmem>>, %arg4: memref<7x14xf32, #tpu.memory_space<vmem>>, %arg5: memref<7x14xf32, #tpu.memory_space<vmem>>, %arg6: memref<1x224xf32, #tpu.memory_space<vmem>>, %arg7: memref<1x7x224xbf16, #tpu.memory_space<vmem>>) attributes {dimension_semantics = [#tpu.dimension_semantics<parallel>], iteration_bounds = array<i64: 2>, scalar_prefetch = 0 : i64, scratch_operands = 0 : i64, tpu.core_type = #tpu.core_type<tc>, window_params = [{transform_indices = @transform_0, window_bounds = array<i64: 1, 18, 576>}, {pipeline_mode = #tpu.pipeline_mode<synchronous>, transform_indices = @transform_1, window_bounds = array<i64: 5, 576, 224>}, {pipeline_mode = #tpu.pipeline_mode<synchronous>, transform_indices = @transform_2, window_bounds = array<i64: 5, 576, 224>}, {pipeline_mode = #tpu.pipeline_mode<synchronous>, transform_indices = @transform_3, window_bounds = array<i64: 7, 14>}, {pipeline_mode = #tpu.pipeline_mode<synchronous>, transform_indices = @transform_4, window_bounds = array<i64: 7, 14>}, {pipeline_mode = #tpu.pipeline_mode<synchronous>, transform_indices = @transform_5, window_bounds = array<i64: 1, 224>}, {transform_indices = @transform_6, window_bounds = array<i64: 1, 7, 224>}]} {
    %cst = arith.constant 0.000000e+00 : f32
    %0 = vector.broadcast %cst : f32 to vector<14x224xf32>
    %cst_0 = arith.constant 0.000000e+00 : f32
    %1 = vector.broadcast %cst_0 : f32 to vector<14x224xf32>
    %c0 = arith.constant 0 : index
    %c0_1 = arith.constant 0 : index
    %c0_2 = arith.constant 0 : index
    %2 = vector.load %arg1[%c0, %c0_1, %c0_2] : memref<1x18x576xbf16, #tpu.memory_space<vmem>>, vector<1x14x576xbf16>
    %3 = vector.shape_cast %2 : vector<1x14x576xbf16> to vector<14x576xbf16>
    %c0_3 = arith.constant 0 : index
    %c0_4 = arith.constant 0 : index
    %c0_5 = arith.constant 0 : index
    %4 = vector.load %arg2[%c0_3, %c0_4, %c0_5] : memref<5x576x224xbf16, #tpu.memory_space<vmem>>, vector<1x576x224xbf16>
    %5 = vector.shape_cast %4 : vector<1x576x224xbf16> to vector<576x224xbf16>
    %cst_6 = arith.constant dense<0.000000e+00> : vector<14x224xf32>
    %6 = tpu.matmul %3, %5, %cst_6 {dimension_numbers = #tpu.dot_dimension_numbers<[1], [0], [0], [1], [0, 0, 1, 1], [], []>} : vector<14x576xbf16>, vector<576x224xbf16>, vector<14x224xf32> -> vector<14x224xf32>
    %7 = arith.addf %0, %6 : vector<14x224xf32>
    %c0_7 = arith.constant 0 : index
    %c0_8 = arith.constant 0 : index
    %c0_9 = arith.constant 0 : index
    %8 = vector.load %arg3[%c0_7, %c0_8, %c0_9] : memref<5x576x224xbf16, #tpu.memory_space<vmem>>, vector<1x576x224xbf16>
    %9 = vector.shape_cast %8 : vector<1x576x224xbf16> to vector<576x224xbf16>
    %cst_10 = arith.constant dense<0.000000e+00> : vector<14x224xf32>
    %10 = tpu.matmul %3, %9, %cst_10 {dimension_numbers = #tpu.dot_dimension_numbers<[1], [0], [0], [1], [0, 0, 1, 1], [], []>} : vector<14x576xbf16>, vector<576x224xbf16>, vector<14x224xf32> -> vector<14x224xf32>
    %11 = arith.addf %1, %10 : vector<14x224xf32>
    %c0_11 = arith.constant 0 : index
    %c1 = arith.constant 1 : index
    %c0_12 = arith.constant 0 : index
    %12 = vector.load %arg1[%c0_11, %c1, %c0_12] : memref<1x18x576xbf16, #tpu.memory_space<vmem>>, vector<1x14x576xbf16>
    %13 = vector.shape_cast %12 : vector<1x14x576xbf16> to vector<14x576xbf16>
    %c1_13 = arith.constant 1 : index
    %c0_14 = arith.constant 0 : index
    %c0_15 = arith.constant 0 : index
    %14 = vector.load %arg2[%c1_13, %c0_14, %c0_15] : memref<5x576x224xbf16, #tpu.memory_space<vmem>>, vector<1x576x224xbf16>
    %15 = vector.shape_cast %14 : vector<1x576x224xbf16> to vector<576x224xbf16>
    %cst_16 = arith.constant dense<0.000000e+00> : vector<14x224xf32>
    %16 = tpu.matmul %13, %15, %cst_16 {dimension_numbers = #tpu.dot_dimension_numbers<[1], [0], [0], [1], [0, 0, 1, 1], [], []>} : vector<14x576xbf16>, vector<576x224xbf16>, vector<14x224xf32> -> vector<14x224xf32>
    %17 = arith.addf %7, %16 : vector<14x224xf32>
    %c1_17 = arith.constant 1 : index
    %c0_18 = arith.constant 0 : index
    %c0_19 = arith.constant 0 : index
    %18 = vector.load %arg3[%c1_17, %c0_18, %c0_19] : memref<5x576x224xbf16, #tpu.memory_space<vmem>>, vector<1x576x224xbf16>
    %19 = vector.shape_cast %18 : vector<1x576x224xbf16> to vector<576x224xbf16>
    %cst_20 = arith.constant dense<0.000000e+00> : vector<14x224xf32>
    %20 = tpu.matmul %13, %19, %cst_20 {dimension_numbers = #tpu.dot_dimension_numbers<[1], [0], [0], [1], [0, 0, 1, 1], [], []>} : vector<14x576xbf16>, vector<576x224xbf16>, vector<14x224xf32> -> vector<14x224xf32>
    %21 = arith.addf %11, %20 : vector<14x224xf32>
    %c0_21 = arith.constant 0 : index
    %c2 = arith.constant 2 : index
    %c0_22 = arith.constant 0 : index
    %22 = vector.load %arg1[%c0_21, %c2, %c0_22] : memref<1x18x576xbf16, #tpu.memory_space<vmem>>, vector<1x14x576xbf16>
    %23 = vector.shape_cast %22 : vector<1x14x576xbf16> to vector<14x576xbf16>
    %c2_23 = arith.constant 2 : index
    %c0_24 = arith.constant 0 : index
    %c0_25 = arith.constant 0 : index
    %24 = vector.load %arg2[%c2_23, %c0_24, %c0_25] : memref<5x576x224xbf16, #tpu.memory_space<vmem>>, vector<1x576x224xbf16>
    %25 = vector.shape_cast %24 : vector<1x576x224xbf16> to vector<576x224xbf16>
    %cst_26 = arith.constant dense<0.000000e+00> : vector<14x224xf32>
    %26 = tpu.matmul %23, %25, %cst_26 {dimension_numbers = #tpu.dot_dimension_numbers<[1], [0], [0], [1], [0, 0, 1, 1], [], []>} : vector<14x576xbf16>, vector<576x224xbf16>, vector<14x224xf32> -> vector<14x224xf32>
    %27 = arith.addf %17, %26 : vector<14x224xf32>
    %c2_27 = arith.constant 2 : index
    %c0_28 = arith.constant 0 : index
    %c0_29 = arith.constant 0 : index
    %28 = vector.load %arg3[%c2_27, %c0_28, %c0_29] : memref<5x576x224xbf16, #tpu.memory_space<vmem>>, vector<1x576x224xbf16>
    %29 = vector.shape_cast %28 : vector<1x576x224xbf16> to vector<576x224xbf16>
    %cst_30 = arith.constant dense<0.000000e+00> : vector<14x224xf32>
    %30 = tpu.matmul %23, %29, %cst_30 {dimension_numbers = #tpu.dot_dimension_numbers<[1], [0], [0], [1], [0, 0, 1, 1], [], []>} : vector<14x576xbf16>, vector<576x224xbf16>, vector<14x224xf32> -> vector<14x224xf32>
    %31 = arith.addf %21, %30 : vector<14x224xf32>
    %c0_31 = arith.constant 0 : index
    %c3 = arith.constant 3 : index
    %c0_32 = arith.constant 0 : index
    %32 = vector.load %arg1[%c0_31, %c3, %c0_32] : memref<1x18x576xbf16, #tpu.memory_space<vmem>>, vector<1x14x576xbf16>
    %33 = vector.shape_cast %32 : vector<1x14x576xbf16> to vector<14x576xbf16>
    %c3_33 = arith.constant 3 : index
    %c0_34 = arith.constant 0 : index
    %c0_35 = arith.constant 0 : index
    %34 = vector.load %arg2[%c3_33, %c0_34, %c0_35] : memref<5x576x224xbf16, #tpu.memory_space<vmem>>, vector<1x576x224xbf16>
    %35 = vector.shape_cast %34 : vector<1x576x224xbf16> to vector<576x224xbf16>
    %cst_36 = arith.constant dense<0.000000e+00> : vector<14x224xf32>
    %36 = tpu.matmul %33, %35, %cst_36 {dimension_numbers = #tpu.dot_dimension_numbers<[1], [0], [0], [1], [0, 0, 1, 1], [], []>} : vector<14x576xbf16>, vector<576x224xbf16>, vector<14x224xf32> -> vector<14x224xf32>
    %37 = arith.addf %27, %36 : vector<14x224xf32>
    %c3_37 = arith.constant 3 : index
    %c0_38 = arith.constant 0 : index
    %c0_39 = arith.constant 0 : index
    %38 = vector.load %arg3[%c3_37, %c0_38, %c0_39] : memref<5x576x224xbf16, #tpu.memory_space<vmem>>, vector<1x576x224xbf16>
    %39 = vector.shape_cast %38 : vector<1x576x224xbf16> to vector<576x224xbf16>
    %cst_40 = arith.constant dense<0.000000e+00> : vector<14x224xf32>
    %40 = tpu.matmul %33, %39, %cst_40 {dimension_numbers = #tpu.dot_dimension_numbers<[1], [0], [0], [1], [0, 0, 1, 1], [], []>} : vector<14x576xbf16>, vector<576x224xbf16>, vector<14x224xf32> -> vector<14x224xf32>
    %41 = arith.addf %31, %40 : vector<14x224xf32>
    %c0_41 = arith.constant 0 : index
    %c4 = arith.constant 4 : index
    %c0_42 = arith.constant 0 : index
    %42 = vector.load %arg1[%c0_41, %c4, %c0_42] : memref<1x18x576xbf16, #tpu.memory_space<vmem>>, vector<1x14x576xbf16>
    %43 = vector.shape_cast %42 : vector<1x14x576xbf16> to vector<14x576xbf16>
    %c4_43 = arith.constant 4 : index
    %c0_44 = arith.constant 0 : index
    %c0_45 = arith.constant 0 : index
    %44 = vector.load %arg2[%c4_43, %c0_44, %c0_45] : memref<5x576x224xbf16, #tpu.memory_space<vmem>>, vector<1x576x224xbf16>
    %45 = vector.shape_cast %44 : vector<1x576x224xbf16> to vector<576x224xbf16>
    %cst_46 = arith.constant dense<0.000000e+00> : vector<14x224xf32>
    %46 = tpu.matmul %43, %45, %cst_46 {dimension_numbers = #tpu.dot_dimension_numbers<[1], [0], [0], [1], [0, 0, 1, 1], [], []>} : vector<14x576xbf16>, vector<576x224xbf16>, vector<14x224xf32> -> vector<14x224xf32>
    %47 = arith.addf %37, %46 : vector<14x224xf32>
    %c4_47 = arith.constant 4 : index
    %c0_48 = arith.constant 0 : index
    %c0_49 = arith.constant 0 : index
    %48 = vector.load %arg3[%c4_47, %c0_48, %c0_49] : memref<5x576x224xbf16, #tpu.memory_space<vmem>>, vector<1x576x224xbf16>
    %49 = vector.shape_cast %48 : vector<1x576x224xbf16> to vector<576x224xbf16>
    %cst_50 = arith.constant dense<0.000000e+00> : vector<14x224xf32>
    %50 = tpu.matmul %43, %49, %cst_50 {dimension_numbers = #tpu.dot_dimension_numbers<[1], [0], [0], [1], [0, 0, 1, 1], [], []>} : vector<14x576xbf16>, vector<576x224xbf16>, vector<14x224xf32> -> vector<14x224xf32>
    %51 = arith.addf %41, %50 : vector<14x224xf32>
    %52 = arith.maximumf %47, %51 : vector<14x224xf32>
    %c0_51 = arith.constant 0 : index
    %c0_52 = arith.constant 0 : index
    %53 = vector.load %arg4[%c0_51, %c0_52] : memref<7x14xf32, #tpu.memory_space<vmem>>, vector<7x14xf32>
    %cst_53 = arith.constant dense<0.000000e+00> : vector<7x224xf32>
    %54 = tpu.matmul %53, %52, %cst_53 {dimension_numbers = #tpu.dot_dimension_numbers<[1], [0], [0], [1], [0, 0, 1, 1], [], []>} : vector<7x14xf32>, vector<14x224xf32>, vector<7x224xf32> -> vector<7x224xf32>
    %c0_54 = arith.constant 0 : index
    %c0_55 = arith.constant 0 : index
    %55 = vector.load %arg5[%c0_54, %c0_55] : memref<7x14xf32, #tpu.memory_space<vmem>>, vector<7x14xf32>
    %cst_56 = arith.constant dense<0.000000e+00> : vector<7x224xf32>
    %56 = tpu.matmul %55, %52, %cst_56 {dimension_numbers = #tpu.dot_dimension_numbers<[1], [0], [0], [1], [0, 0, 1, 1], [], []>} : vector<7x14xf32>, vector<14x224xf32>, vector<7x224xf32> -> vector<7x224xf32>
    %57 = arith.maximumf %54, %56 : vector<7x224xf32>
    %c0_57 = arith.constant 0 : index
    %c0_58 = arith.constant 0 : index
    %58 = vector.load %arg6[%c0_57, %c0_58] : memref<1x224xf32, #tpu.memory_space<vmem>>, vector<1x224xf32>
    %59 = vector.broadcast %58 : vector<1x224xf32> to vector<7x224xf32>
    %60 = arith.addf %57, %59 : vector<7x224xf32>
    %cst_59 = arith.constant 0.000000e+00 : f32
    %61 = vector.broadcast %cst_59 : f32 to vector<7x224xf32>
    %62 = arith.maximumf %60, %61 : vector<7x224xf32>
    %63 = arith.truncf %62 : vector<7x224xf32> to vector<7x224xbf16>
    %c0_60 = arith.constant 0 : index
    %c0_61 = arith.constant 0 : index
    %c0_62 = arith.constant 0 : index
    %64 = vector.load %arg7[%c0_60, %c0_61, %c0_62] : memref<1x7x224xbf16, #tpu.memory_space<vmem>>, vector<1x7x224xbf16>
    %65 = vector.shape_cast %64 : vector<1x7x224xbf16> to vector<7x224xbf16>
    %66 = vector.shape_cast %63 : vector<7x224xbf16> to vector<1x7x224xbf16>
    tpu.vector_store %arg7[%c0_60, %c0_61, %c0_62], %66 {strides = array<i32>} : memref<1x7x224xbf16, #tpu.memory_space<vmem>>, vector<1x7x224xbf16>,
    return
  }
  func.func @transform_0(%arg0: i32) -> (i32, i32, i32) {
    %c0_i32 = arith.constant 0 : i32
    %c0_i32_0 = arith.constant 0 : i32
    %c0_i32_1 = arith.constant 0 : i32
    return %arg0, %c0_i32, %c0_i32_0 : i32, i32, i32
  }
  func.func @transform_1(%arg0: i32) -> (i32, i32, i32) {
    %c0_i32 = arith.constant 0 : i32
    %c0_i32_0 = arith.constant 0 : i32
    %c0_i32_1 = arith.constant 0 : i32
    %c0_i32_2 = arith.constant 0 : i32
    return %c0_i32, %c0_i32_0, %c0_i32_1 : i32, i32, i32
  }
  func.func @transform_2(%arg0: i32) -> (i32, i32, i32) {
    %c0_i32 = arith.constant 0 : i32
    %c0_i32_0 = arith.constant 0 : i32
    %c0_i32_1 = arith.constant 0 : i32
    %c0_i32_2 = arith.constant 0 : i32
    return %c0_i32, %c0_i32_0, %c0_i32_1 : i32, i32, i32
  }
  func.func @transform_3(%arg0: i32) -> (i32, i32) {
    %c0_i32 = arith.constant 0 : i32
    %c0_i32_0 = arith.constant 0 : i32
    %c0_i32_1 = arith.constant 0 : i32
    return %c0_i32, %c0_i32_0 : i32, i32
  }
  func.func @transform_4(%arg0: i32) -> (i32, i32) {
    %c0_i32 = arith.constant 0 : i32
    %c0_i32_0 = arith.constant 0 : i32
    %c0_i32_1 = arith.constant 0 : i32
    return %c0_i32, %c0_i32_0 : i32, i32
  }
  func.func @transform_5(%arg0: i32) -> (i32, i32) {
    %c0_i32 = arith.constant 0 : i32
    %c0_i32_0 = arith.constant 0 : i32
    %c0_i32_1 = arith.constant 0 : i32
    return %c0_i32, %c0_i32_0 : i32, i32
  }
  func.func @transform_6(%arg0: i32) -> (i32, i32, i32) {
    %c0_i32 = arith.constant 0 : i32
    %c0_i32_0 = arith.constant 0 : i32
    %c0_i32_1 = arith.constant 0 : i32
    return %arg0, %c0_i32, %c0_i32_0 : i32, i32, i32
  }
}

module attributes {stable_mosaic.version = 11 : i64} {
  func.func @_fc_kernel(%arg0: i32, %arg1: memref<8x1568xbf16, #tpu.memory_space<vmem>>, %arg2: memref<1568x128xbf16, #tpu.memory_space<vmem>>, %arg3: memref<1x128xf32, #tpu.memory_space<vmem>>, %arg4: memref<128x128xbf16, #tpu.memory_space<vmem>>, %arg5: memref<1x128xf32, #tpu.memory_space<vmem>>, %arg6: memref<8x128xf32, #tpu.memory_space<vmem>>) attributes {dimension_semantics = [#tpu.dimension_semantics<parallel>], iteration_bounds = array<i64: 1>, scalar_prefetch = 0 : i64, scratch_operands = 0 : i64, tpu.core_type = #tpu.core_type<tc>, window_params = [{transform_indices = @transform_0, window_bounds = array<i64: 8, 1568>}, {pipeline_mode = #tpu.pipeline_mode<synchronous>, transform_indices = @transform_1, window_bounds = array<i64: 1568, 128>}, {pipeline_mode = #tpu.pipeline_mode<synchronous>, transform_indices = @transform_2, window_bounds = array<i64: 1, 128>}, {pipeline_mode = #tpu.pipeline_mode<synchronous>, transform_indices = @transform_3, window_bounds = array<i64: 128, 128>}, {pipeline_mode = #tpu.pipeline_mode<synchronous>, transform_indices = @transform_4, window_bounds = array<i64: 1, 128>}, {transform_indices = @transform_5, window_bounds = array<i64: 8, 128>}]} {
    %c0 = arith.constant 0 : index
    %c0_0 = arith.constant 0 : index
    %0 = vector.load %arg1[%c0, %c0_0] : memref<8x1568xbf16, #tpu.memory_space<vmem>>, vector<8x1568xbf16>
    %c0_1 = arith.constant 0 : index
    %c0_2 = arith.constant 0 : index
    %1 = vector.load %arg2[%c0_1, %c0_2] : memref<1568x128xbf16, #tpu.memory_space<vmem>>, vector<1568x128xbf16>
    %cst = arith.constant dense<0.000000e+00> : vector<8x128xf32>
    %2 = tpu.matmul %0, %1, %cst {dimension_numbers = #tpu.dot_dimension_numbers<[1], [0], [0], [1], [0, 0, 1, 1], [], []>} : vector<8x1568xbf16>, vector<1568x128xbf16>, vector<8x128xf32> -> vector<8x128xf32>
    %c0_3 = arith.constant 0 : index
    %c0_4 = arith.constant 0 : index
    %3 = vector.load %arg3[%c0_3, %c0_4] : memref<1x128xf32, #tpu.memory_space<vmem>>, vector<1x128xf32>
    %4 = vector.broadcast %3 : vector<1x128xf32> to vector<8x128xf32>
    %5 = arith.addf %2, %4 : vector<8x128xf32>
    %cst_5 = arith.constant 0.000000e+00 : f32
    %6 = vector.broadcast %cst_5 : f32 to vector<8x128xf32>
    %7 = arith.maximumf %5, %6 : vector<8x128xf32>
    %8 = arith.truncf %7 : vector<8x128xf32> to vector<8x128xbf16>
    %c0_6 = arith.constant 0 : index
    %c0_7 = arith.constant 0 : index
    %9 = vector.load %arg4[%c0_6, %c0_7] : memref<128x128xbf16, #tpu.memory_space<vmem>>, vector<128x128xbf16>
    %cst_8 = arith.constant dense<0.000000e+00> : vector<8x128xf32>
    %10 = tpu.matmul %8, %9, %cst_8 {dimension_numbers = #tpu.dot_dimension_numbers<[1], [0], [0], [1], [0, 0, 1, 1], [], []>} : vector<8x128xbf16>, vector<128x128xbf16>, vector<8x128xf32> -> vector<8x128xf32>
    %c0_9 = arith.constant 0 : index
    %c0_10 = arith.constant 0 : index
    %11 = vector.load %arg5[%c0_9, %c0_10] : memref<1x128xf32, #tpu.memory_space<vmem>>, vector<1x128xf32>
    %12 = vector.broadcast %11 : vector<1x128xf32> to vector<8x128xf32>
    %13 = arith.addf %10, %12 : vector<8x128xf32>
    %c0_11 = arith.constant 0 : index
    %c0_12 = arith.constant 0 : index
    %14 = vector.load %arg6[%c0_11, %c0_12] : memref<8x128xf32, #tpu.memory_space<vmem>>, vector<8x128xf32>
    tpu.vector_store %arg6[%c0_11, %c0_12], %13 {strides = array<i32>} : memref<8x128xf32, #tpu.memory_space<vmem>>, vector<8x128xf32>,
    return
  }
  func.func @transform_0(%arg0: i32) -> (i32, i32) {
    %c0_i32 = arith.constant 0 : i32
    %c0_i32_0 = arith.constant 0 : i32
    return %arg0, %c0_i32 : i32, i32
  }
  func.func @transform_1(%arg0: i32) -> (i32, i32) {
    %c0_i32 = arith.constant 0 : i32
    %c0_i32_0 = arith.constant 0 : i32
    %c0_i32_1 = arith.constant 0 : i32
    return %c0_i32, %c0_i32_0 : i32, i32
  }
  func.func @transform_2(%arg0: i32) -> (i32, i32) {
    %c0_i32 = arith.constant 0 : i32
    %c0_i32_0 = arith.constant 0 : i32
    %c0_i32_1 = arith.constant 0 : i32
    return %c0_i32, %c0_i32_0 : i32, i32
  }
  func.func @transform_3(%arg0: i32) -> (i32, i32) {
    %c0_i32 = arith.constant 0 : i32
    %c0_i32_0 = arith.constant 0 : i32
    %c0_i32_1 = arith.constant 0 : i32
    return %c0_i32, %c0_i32_0 : i32, i32
  }
  func.func @transform_4(%arg0: i32) -> (i32, i32) {
    %c0_i32 = arith.constant 0 : i32
    %c0_i32_0 = arith.constant 0 : i32
    %c0_i32_1 = arith.constant 0 : i32
    return %c0_i32, %c0_i32_0 : i32, i32
  }
  func.func @transform_5(%arg0: i32) -> (i32, i32) {
    %c0_i32 = arith.constant 0 : i32
    %c0_i32_0 = arith.constant 0 : i32
    return %arg0, %c0_i32 : i32, i32
  }
}

</mosaic_0001>

<bundles_post_ra>
// kernel: tile.13
= control target key start
LH: loop header
LB: loop body
LE: loop exit
PB: predicated region body
PF: predicated region fallthrough
CT: control target
= control target key end

     0   :  { %s28_s0 = inlined_call_operand.vmem [shape: f32[32], index: 0, kind: input, shape index: {}]   ;;  %s29_s1 = inlined_call_operand.vmem [shape: f32[14,32], index: 1, kind: output, shape index: {}]  }
   0x1   :  { %v4_v0 = vld [vmem:[%s28_s0] ss:$0 sm:$0xff] }
   0x2   :  { %5 = vst [vmem:[%s29_s1] sm:$0xff] %v4_v0  ;;  %8 = vst [vmem:[%s29_s1 + $0x8] sm:$0xff] %v4_v0 }

// kernel: tile.14
= control target key start
LH: loop header
LB: loop body
LE: loop exit
PB: predicated region body
PF: predicated region fallthrough
CT: control target
= control target key end

     0   :  { %s57_s8 = smov 96   ;;  %vm3_vm0 = vcmask 261120   ;;  %s59_s15 = smov 64   ;;  %vm9_vm1 = vcmask 1048320   ;;  %vm15_vm2 = vcmask 785920   ;;  %vm21_vm3 = vcmask 523520   ;;  %s94_s0 = inlined_call_operand.vmem [shape: f32[14,32], index: 0, kind: input, shape index: {}]   ;;  %s95_s1 = inlined_call_operand.vmem [shape: f32[1,448], index: 1, kind: output, shape index: {}]  }
   0x1   :  { %v48_v0 = vld [vmem:[%s94_s0 + $0x3] ss:$4 sm:$0x7]   ;;  %v49_v1 = vld [vmem:[%s94_s0 + $0x2] ss:$4 sm:$0x7]  }
   0x2   :  { %7 = vrot.lane.b32.xlu0 %v48_v0, %s57_s8  ;;  %v50_v2 = vld [vmem:[%s94_s0 + $0x1] ss:$4 sm:$0xf]   ;;  %v2_v3 = vld [vmem:[%s94_s0] ss:$4 sm:$0xf]  }
   0x3   :  { %s58_s0 = smov 32   ;;  %4 = vst.msk [vmem:[#allocation0] ss:$8 sm:$0xf] %vm3_vm0, %v2_v3  }
   0x4   :  { %19 = vrot.lane.b32.xlu1 %v50_v2, %s58_s0 }
   0x6   :  { %13 = vrot.lane.b32.xlu0 %v49_v1, %s59_s15 }
  0x74   :  { %v8_v4 = vpop.permute.xlu0 %7  }
  0x75   :  { %10 = vst.msk [vmem:[#allocation0] ss:$8 sm:$0x7] %vm9_vm1, %v8_v4  }
  0x76   :  { %v20_v5 = vpop.permute.xlu1 %19  }
  0x78   :  { %v14_v6 = vpop.permute.xlu0 %13  }
  0x79   :  { %16 = vst.msk [vmem:[#allocation0] ss:$8 sm:$0x7] %vm15_vm2, %v14_v6  }
  0x7a   :  { %22 = vst.msk [vmem:[#allocation0] ss:$8 sm:$0xf] %vm21_vm3, %v20_v5  }
  0x81   :  { %v26_v7 = vld [vmem:[#allocation0] sm:$0x1]  ;;  %v30_v8 = vld [vmem:[#allocation0 + $0x8] sm:$0x1]  ;;  %v35_v9 = vld [vmem:[#allocation0 + $0x10] sm:$0x1] }
  0x82   :  { %28 = vst [vmem:[%s95_s1] sm:$0x1] %v26_v7  ;;  %51 = vst [vmem:[%s95_s1 + $0x1] sm:$0x1] %v30_v8  ;;  %v41_v10 = vld [vmem:[#allocation0 + $0x18] sm:$0x1] }
  0x83   :  { %52 = vst [vmem:[%s95_s1 + $0x2] sm:$0x1] %v35_v9  ;;  %53 = vst [vmem:[%s95_s1 + $0x3] sm:$0x1] %v41_v10 }

// kernel: cnn_mnist_forward.3
= control target key start
LH: loop header
LB: loop body
LE: loop exit
PB: predicated region body
PF: predicated region fallthrough
CT: control target
= control target key end

     0   :  { %s3065_s21 = smov 0   ;;  %s3550_s0 = inlined_call_operand.vmem [shape: bf16[2,32,32], index: 0, kind: input, shape index: {}]   ;;  %s3551_s1 = inlined_call_operand.vmem [shape: bf16[5,32,448], index: 1, kind: input, shape index: {}]   ;;  %s3552_s2 = inlined_call_operand.vmem [shape: bf16[5,32,448], index: 2, kind: input, shape index: {}]   ;;  %s3553_s3 = inlined_call_operand.vmem [shape: f32[14,28], index: 3, kind: input, shape index: {}]   ;;  %s3554_s4 = inlined_call_operand.vmem [shape: f32[14,28], index: 4, kind: input, shape index: {}]   ;;  %s3555_s5 = inlined_call_operand.vmem [shape: f32[1,448], index: 5, kind: input, shape index: {}]   ;;  %s3556_s6 = inlined_call_operand.vmem [shape: bf16[2,14,448], index: 6, kind: output, shape index: {}]  }
   0x1 LB: > { %s2487_s22 = sadd.s32 4294967295, %s3025_s21   ;;  %p2491_p0 = scmp.ge.s32.totalorder %s3025_s21, 1  ;;  %s3025_s21 = sphi %s3065_s21, %s16_s21  }
   0x2   : > { %p212_p1 = scmp.lt.s32.totalorder %s3025_s21, 3 }
   0x4   : > { %p213_p2 = pnand %p2491_p0, %p212_p1 }
   0x5   : > { %v2893_v0 = vld [vmem:[%s3551_s1 + $0x44] ss:$16 sps:$4 sm:$0xff] (!%p213_p2)   ;;  %p242_p3 = scmp.lt.s32.totalorder (!%p213_p2), %s2487_s22, 1  ;;  %v2895_v1 = vld [vmem:[%s3551_s1 + $0x4c] ss:$16 sps:$4 sm:$0xff] (!%p213_p2)   ;;  %v3027_v2 = vmov (!%p213_p2), 0  }
   0x6   : > { %216 = sbr.rel (%p213_p2) target bundleno = 635 (0x27b), region = 44  ;;  %388 = vmatprep.mubr.bf16.mxu0 (!%p213_p2), %v3027_v2  ;;  %441 = vmatprep.mubr.bf16.mxu1 (!%p213_p2), %v3027_v2  ;;  %v2897_v3 = vld [vmem:[%s3551_s1 + $0x40] ss:$16 sps:$4 sm:$0xff] (!%p213_p2)   ;;  %v2898_v4 = vld [vmem:[%s3551_s1 + $0x48] ss:$16 sps:$4 sm:$0xff] (!%p213_p2)   ;;  %vm349_vm1 = vcmask (!%p213_p2), 261120  }
   0x7   : > { %356 = vmatprep.subr.bf16.mxu0 (!%p213_p2), %v2893_v0  ;;  %409 = vmatprep.subr.bf16.mxu1 (!%p213_p2), %v2895_v1  ;;  %v2899_v5 = vld [vmem:[%s3551_s1 + $0x64] ss:$16 sps:$4 sm:$0xff] (!%p213_p2)   ;;  %v2901_v6 = vld [vmem:[%s3551_s1 + $0x6c] ss:$16 sps:$4 sm:$0xff] (!%p213_p2)   ;;  %v2903_v7 = vld [vmem:[%s3551_s1 + $0x60] ss:$16 sps:$4 sm:$0xff] (!%p213_p2)  }
   0x8   : > { %357 = vmatpush1.bf16.msra.mxu0 (!%p213_p2), %v2897_v3  ;;  %410 = vmatpush1.bf16.msra.mxu1 (!%p213_p2), %v2898_v4  ;;  %v2904_v8 = vld [vmem:[%s3551_s1 + $0x68] ss:$16 sps:$4 sm:$0xff] (!%p213_p2)   ;;  %v2910_v17 = vld [vmem:[%s3551_s1 + $0x4] ss:$16 sps:$4 sm:$0xff] (!%p213_p2)   ;;  %v2913_v20 = vld [vmem:[%s3551_s1 + $0xc] ss:$16 sps:$4 sm:$0xff] (!%p213_p2)  }
   0x9   : > { %358 = vmatprep.subr.bf16.mxu0 (!%p213_p2), %v2899_v5  ;;  %411 = vmatprep.subr.bf16.mxu1 (!%p213_p2), %v2901_v6  ;;  %vm293_vm0 = vsmask.f32 (!%p213_p2), 7424  ;;  %v2908_v25 = vld [vmem:[%s3551_s1] ss:$16 sps:$4 sm:$0xff] (!%p213_p2)   ;;  %v2911_v26 = vld [vmem:[%s3551_s1 + $0x8] ss:$16 sps:$4 sm:$0xff] (!%p213_p2)  }
   0xa   : > { %v2916_v28 = vld [vmem:[%s3551_s1 + $0x24] ss:$16 sps:$4 sm:$0xff] (!%p213_p2)   ;;  %v2919_v29 = vld [vmem:[%s3551_s1 + $0x2c] ss:$16 sps:$4 sm:$0xff] (!%p213_p2)   ;;  %v2914_v31 = vld [vmem:[%s3551_s1 + $0x20] ss:$16 sps:$4 sm:$0xff] (!%p213_p2)  }
   0xb   : > { %v2917_v32 = vld [vmem:[%s3551_s1 + $0x28] ss:$16 sps:$4 sm:$0xff] (!%p213_p2)   ;;  %v2922_v33 = vld [vmem:[%s3552_s2 + $0x44] ss:$16 sps:$4 sm:$0xff] (!%p213_p2)   ;;  %v2925_v34 = vld [vmem:[%s3552_s2 + $0x4c] ss:$16 sps:$4 sm:$0xff] (!%p213_p2)  }
   0xc   : > { %359 = vmatpush1.bf16.msra.mxu0 (!%p213_p2), %v2903_v7  ;;  %412 = vmatpush1.bf16.msra.mxu1 (!%p213_p2), %v2904_v8  ;;  %v2920_v38 = vld [vmem:[%s3552_s2 + $0x40] ss:$16 sps:$4 sm:$0xff] (!%p213_p2)   ;;  %v2923_v39 = vld [vmem:[%s3552_s2 + $0x48] ss:$16 sps:$4 sm:$0xff] (!%p213_p2)   ;;  %v2929_v42 = vld [vmem:[%s3552_s2 + $0x64] ss:$16 sps:$4 sm:$0xff] (!%p213_p2)  }
   0xd   : > { %s3560_s22 = smov (!%p242_p3, %s2487_s22), 1  ;;  %510 = vmatprep.subr.bf16.mxu0 %v2910_v17  ;;  %563 = vmatprep.subr.bf16.mxu1 %v2913_v20  ;;  %vm930_vm2 = vcmask 1046528   ;;  %v2932_v46 = vld [vmem:[%s3552_s2 + $0x6c] ss:$16 sps:$4 sm:$0xff]   ;;  %v2927_v48 = vld [vmem:[%s3552_s2 + $0x60] ss:$16 sps:$4 sm:$0xff]  }
   0xe   : > { %s2708_s13 = sshll.u32 %s3560_s22, 4  ;;  %v2930_v50 = vld [vmem:[%s3552_s2 + $0x68] ss:$16 sps:$4 sm:$0xff]   ;;  %v2935_v51 = vld [vmem:[%s3552_s2 + $0x4] ss:$16 sps:$4 sm:$0xff]   ;;  %vm1656_vm4 = vcmask 1045504  }
   0xf   : > { %s3105_s18 = scalar_lea.vmem %s3550_s0, %s2708_s13  ;;  %v2938_v53 = vld [vmem:[%s3552_s2 + $0xc] ss:$16 sps:$4 sm:$0xff]   ;;  %vm1286_vm3 = vsmask.f32 6400  ;;  %v2933_v62 = vld [vmem:[%s3552_s2] ss:$16 sps:$4 sm:$0xff]  }
  0x10   : > { %v253_v9 = vld [vmem:[%s3105_s18] sm:$0xf]  ;;  %v3109_v10 = vld [vmem:[%s3105_s18 + $0x4] sm:$0xf]  ;;  %v3112_v11 = vld [vmem:[%s3105_s18 + $0x8] sm:$0xf] }
  0x11   : > { %v273_v12 = vld [vmem:[%s3105_s18 + $0xc] sm:$0x7]  ;;  %v3116_v13 = vcombine.low %v253_v9, %v3109_v10  ;;  %v917_v40 = vld [vmem:[%s3105_s18] sm:$0xe]  ;;  %v2936_v63 = vld [vmem:[%s3552_s2 + $0x8] ss:$16 sps:$4 sm:$0xff]  }
  0x12   : > { %v1273_v14 = vld [vmem:[%s3105_s18 + $0xc] sm:$0xf]  ;;  %v2505_v15 = vcombine.low %v3112_v11, %v273_v12  ;;  %v2571_v43 = vcombine.low %v917_v40, %v3109_v10  ;;  %v2941_v0 = vld [vmem:[%s3552_s2 + $0x24] ss:$16 sps:$4 sm:$0xff]   ;;  %v2939_v3 = vld [vmem:[%s3552_s2 + $0x20] ss:$16 sps:$4 sm:$0xff]  }
  0x13   : > { %v3121_v16 = vcombine.low %v3112_v11, %v1273_v14  ;;  %v295_v18 = vshrl.u32 %v3116_v13, 16  ;;  %v297_v19 = vshll.u32 %v3116_v13, 16  ;;  %v256_v47 = vld [vmem:[%s3105_s18 + $0xc] sm:$0x3]  ;;  %v2942_v4 = vld [vmem:[%s3552_s2 + $0x28] ss:$16 sps:$4 sm:$0xff]  }
  0x14   : > { %v302_v21 = vshll.u32 %v2505_v15, 16  ;;  %v306_v30 = vshrl.u32 %v2505_v15, 16  ;;  %v3180_v41 = vrot.slane %v2505_v15, 1  ;;  %v931_v49 = vrot.slane %v2571_v43, 1  ;;  %v2944_v1 = vld [vmem:[%s3552_s2 + $0x2c] ss:$16 sps:$4 sm:$0xff]  }
  0x15   : > { %v299_v22 = vrot.slane %v297_v19, 1  ;;  %v1296_v36 = vshrl.u32 %v3121_v16, 16  ;;  %v1299_v37 = vshll.u32 %v3121_v16, 16  ;;  %v1288_v52 = vshrl.u32 %v2571_v43, 16  ;;  %v2947_v5 = vld [vmem:[%s3551_s1 + $0x84] ss:$16 sps:$4 sm:$0xff]  }
  0x16   : > { %v304_v23 = vrot.slane %v302_v21, 1  ;;  %v3210_v54 = vsel %vm930_vm2, %v931_v49, %v3180_v41  ;;  %v1291_v55 = vshll.u32 %v2571_v43, 16  ;;  %v3213_v57 = vcombine.low %v3112_v11, %v256_v47  ;;  %v2950_v6 = vld [vmem:[%s3551_s1 + $0x8c] ss:$16 sps:$4 sm:$0xff]   ;;  %v1643_v7 = vld [vmem:[%s3105_s18] sm:$0xc] }
  0x17   : > { %v300_v24 = vor.u32 %v299_v22, %v295_v18  ;;  %v1298_v44 = vrot.slane %v1296_v36, 1  ;;  %v1301_v45 = vrot.slane %v1299_v37, 2  ;;  %v1290_v56 = vrot.slane %v1288_v52, 1  ;;  %v2948_v14 = vld [vmem:[%s3551_s1 + $0x88] ss:$16 sps:$4 sm:$0xff]   ;;  %s2709_s23 = sshll.u32 %s3560_s22, 5 }
  0x18   : > { %v3163_v35 = vor.u32 %v306_v30, %v304_v23  ;;  %v1293_v58 = vrot.slane %v1291_v55, 2  ;;  %v2653_v8 = vcombine.low %v1643_v7, %v3109_v10  ;;  %v3259_v9 = vrot.slane %v3121_v16, 2  ;;  %v2945_v10 = vld [vmem:[%s3551_s1 + $0x80] ss:$16 sps:$4 sm:$0xff]   ;;  %v2953_v15 = vld [vmem:[%s3551_s1 + $0xa4] ss:$16 sps:$4 sm:$0xff]   ;;  %s251_s26 = scalar_lea.vmem %s3556_s6, %s2709_s23 }
  0x19   : > { %v3137_v27 = vsel %vm293_vm0, %v300_v24, %v304_v23  ;;  %v3215_v59 = vor.u32 %v1301_v45, %v1298_v44  ;;  %v2956_v16 = vld [vmem:[%s3551_s1 + $0xac] ss:$16 sps:$4 sm:$0xff]   ;;  %v2951_v17 = vld [vmem:[%s3551_s1 + $0xa0] ss:$16 sps:$4 sm:$0xff]   ;;  %v2954_v18 = vld [vmem:[%s3551_s1 + $0xa8] ss:$16 sps:$4 sm:$0xff]  }
  0x1a   : > { %2514 = vmatmul.mubr.msk.bf16.vlgmr.msra.gmra.mrb[0].mxu0 %vm349_vm1, %v3137_v27  ;;  %2516 = vmatmul.mubr.msk.bf16.vlgmr.msra.gmra.mrb[0].mxu1 %vm349_vm1, %v3137_v27  ;;  %v1294_v60 = vor.u32 %v1293_v58, %v1290_v56  ;;  %v1657_v11 = vrot.slane %v2653_v8, 2  ;;  %v2960_v19 = vld [vmem:[%s3552_s2 + $0x84] ss:$16 sps:$4 sm:$0xff]   ;;  %v2958_v20 = vld [vmem:[%s3552_s2 + $0x80] ss:$16 sps:$4 sm:$0xff]   ;;  %v3028_v58 = vmov 0.0  }
  0x1b   : > { %511 = vmatpush1.bf16.msra.mxu0 %v2908_v25  ;;  %564 = vmatpush1.bf16.msra.mxu1 %v2911_v26  ;;  %v2961_v21 = vld [vmem:[%s3552_s2 + $0x88] ss:$16 sps:$4 sm:$0xff]   ;;  %v2966_v22 = vld [vmem:[%s3552_s2 + $0xa4] ss:$16 sps:$4 sm:$0xff]   ;;  %v2969_v23 = vld [vmem:[%s3552_s2 + $0xac] ss:$16 sps:$4 sm:$0xff]  }
  0x1c   : > { %398 = vmatprep.mubr.bf16.mxu0 %v3027_v2  ;;  %451 = vmatprep.mubr.bf16.mxu1 %v3027_v2  ;;  %v3222_v61 = vsel %vm1286_vm3, %v1294_v60, %v3215_v59  ;;  %v3266_v12 = vsel %vm1656_vm4, %v1657_v11, %v3259_v9  ;;  %v2964_v24 = vld [vmem:[%s3552_s2 + $0xa0] ss:$16 sps:$4 sm:$0xff]   ;;  %v2967_v25 = vld [vmem:[%s3552_s2 + $0xa8] ss:$16 sps:$4 sm:$0xff]   ;;  %v2972_v26 = vld [vmem:[%s3551_s1 + $0xc4] ss:$16 sps:$4 sm:$0xff]  }
  0x1d   : > { %512 = vmatprep.subr.bf16.mxu0 %v2916_v28  ;;  %565 = vmatprep.subr.bf16.mxu1 %v2919_v29  ;;  %v2970_v28 = vld [vmem:[%s3551_s1 + $0xc0] ss:$16 sps:$4 sm:$0xff]   ;;  %v2973_v29 = vld [vmem:[%s3551_s1 + $0xc8] ss:$16 sps:$4 sm:$0xff]   ;;  %v2978_v30 = vld [vmem:[%s3551_s1 + $0xe4] ss:$16 sps:$4 sm:$0xff]  }
  0x1e   : > { %v2982_v36 = vld [vmem:[%s3552_s2 + $0xc0] ss:$16 sps:$4 sm:$0xff]   ;;  %v2985_v37 = vld [vmem:[%s3552_s2 + $0xc8] ss:$16 sps:$4 sm:$0xff]   ;;  %v2999_v43 = vld [vmem:[%s3551_s1 + $0x10c] ss:$16 sps:$4 sm:$0xff]  }
  0x1f   : > { %513 = vmatpush1.bf16.msra.mxu0 %v2914_v31  ;;  %566 = vmatpush1.bf16.msra.mxu1 %v2917_v32  ;;  %v2981_v31 = vld [vmem:[%s3551_s1 + $0xec] ss:$16 sps:$4 sm:$0xff]   ;;  %v2976_v32 = vld [vmem:[%s3551_s1 + $0xe0] ss:$16 sps:$4 sm:$0xff]   ;;  %v2997_v45 = vld [vmem:[%s3551_s1 + $0x108] ss:$16 sps:$4 sm:$0xff]  }
  0x20   : > { %665 = vmatprep.subr.bf16.mxu0 %v2922_v33  ;;  %718 = vmatprep.subr.bf16.mxu1 %v2925_v34  ;;  %v2979_v33 = vld [vmem:[%s3551_s1 + $0xe8] ss:$16 sps:$4 sm:$0xff]   ;;  %v2984_v34 = vld [vmem:[%s3552_s2 + $0xc4] ss:$16 sps:$4 sm:$0xff]   ;;  %v2988_v40 = vld [vmem:[%s3552_s2 + $0xe0] ss:$16 sps:$4 sm:$0xff]  }
  0x21   : > { %v2994_v44 = vld [vmem:[%s3551_s1 + $0x100] ss:$16 sps:$4 sm:$0xff]   ;;  %v3005_v47 = vld [vmem:[%s3551_s1 + $0x12c] ss:$16 sps:$4 sm:$0xff]   ;;  %v3003_v49 = vld [vmem:[%s3551_s1 + $0x128] ss:$16 sps:$4 sm:$0xff]  }
  0x22   : > { %2515 = vmatmul.mubr.msk.bf16.gmra.mrb[4].mxu0 %vm349_vm1, %v3163_v35  ;;  %2517 = vmatmul.mubr.msk.bf16.gmra.mrb[4].mxu1 %vm349_vm1, %v3163_v35  ;;  %v3007_v52 = vld [vmem:[%s3552_s2 + $0x100] ss:$16 sps:$4 sm:$0xff]   ;;  %v3018_v55 = vld [vmem:[%s3552_s2 + $0x12c] ss:$16 sps:$4 sm:$0xff]   ;;  %vm2024_vm5 = vcmask 1043456   ;;  %vm3029_vm6 = vmmov 1  }
  0x23   : > { %542 = vmatprep.mubr.bf16.mxu0 %v3027_v2  ;;  %595 = vmatprep.mubr.bf16.mxu1 %v3027_v2  ;;  %v3013_v56 = vld [vmem:[%s3552_s2 + $0x120] ss:$16 sps:$4 sm:$0xff]   ;;  %vm3493_vm7 = vmpackc.low %vm2024_vm5, %vm3029_vm6  ;;  %vm2017_vm8 = vcmask 228352   ;;  %vm2424_vm9 = vcmask 523268   ;;  %vm2428_vm11 = vcmask 1042432   ;;  %vm2429_vm12 = vcmask 522244  }
  0x24   : > { %vm2425_vm10 = vmor %vm2424_vm9, %vm2024_vm5 }
  0x25   : > { %vm2430_vm13 = vmor %vm2429_vm12, %vm2428_vm11 }
  0x2a   : > { %2527 = vmatmul.mubr.msk.bf16.vlgmr.msra.gmra.mrb[0].mxu0 %vm349_vm1, %v3116_v13  ;;  %2529 = vmatmul.mubr.msk.bf16.vlgmr.msra.gmra.mrb[0].mxu1 %vm349_vm1, %v3116_v13 }
  0x2b   : > { %666 = vmatpush1.bf16.msra.mxu0 %v2920_v38  ;;  %719 = vmatpush1.bf16.msra.mxu1 %v2923_v39  ;;  %v2990_v38 = vld [vmem:[%s3552_s2 + $0xe4] ss:$16 sps:$4 sm:$0xff]   ;;  %v2993_v39 = vld [vmem:[%s3552_s2 + $0xec] ss:$16 sps:$4 sm:$0xff]  }
  0x2c   : > { %552 = vmatprep.mubr.bf16.mxu0 %v3027_v2  ;;  %605 = vmatprep.mubr.bf16.mxu1 %v3027_v2 }
  0x2d   : > { %667 = vmatprep.subr.bf16.mxu0 %v2929_v42  ;;  %720 = vmatprep.subr.bf16.mxu1 %v2932_v46  ;;  %v2996_v42 = vld [vmem:[%s3551_s1 + $0x104] ss:$16 sps:$4 sm:$0xff]  }
  0x2e   : > { %v3002_v46 = vld [vmem:[%s3551_s1 + $0x124] ss:$16 sps:$4 sm:$0xff]  }
  0x2f   : > { %668 = vmatpush1.bf16.msra.mxu0 %v2927_v48  ;;  %721 = vmatpush1.bf16.msra.mxu1 %v2930_v50  ;;  %v3000_v48 = vld [vmem:[%s3551_s1 + $0x120] ss:$16 sps:$4 sm:$0xff]   ;;  %v3009_v50 = vld [vmem:[%s3552_s2 + $0x104] ss:$16 sps:$4 sm:$0xff]  }
  0x30   : > { %811 = vmatprep.subr.bf16.mxu0 %v2935_v51  ;;  %864 = vmatprep.subr.bf16.mxu1 %v2938_v53  ;;  %v3012_v51 = vld [vmem:[%s3552_s2 + $0x10c] ss:$16 sps:$4 sm:$0xff]   ;;  %v3010_v53 = vld [vmem:[%s3552_s2 + $0x108] ss:$16 sps:$4 sm:$0xff]  }
  0x32   : > { %2528 = vmatmul.mubr.msk.bf16.gmra.mrb[4].mxu0 %vm349_vm1, %v3213_v57  ;;  %2530 = vmatmul.mubr.msk.bf16.gmra.mrb[4].mxu1 %vm349_vm1, %v3213_v57 }
  0x33   : > { %697 = vmatprep.mubr.bf16.mxu0 %v3027_v2  ;;  %750 = vmatprep.mubr.bf16.mxu1 %v3027_v2 }
  0x3a   : > { %2547 = vmatmul.mubr.msk.bf16.vlgmr.msra.gmra.mrb[8].mxu0 %vm349_vm1, %v3137_v27  ;;  %2549 = vmatmul.mubr.msk.bf16.vlgmr.msra.gmra.mrb[8].mxu1 %vm349_vm1, %v3137_v27  ;;  %v2975_v27 = vld [vmem:[%s3551_s1 + $0xcc] ss:$16 sps:$4 sm:$0xff]  }
  0x3b   : > { %812 = vmatpush1.bf16.msra.mxu0 %v2933_v62  ;;  %865 = vmatpush1.bf16.msra.mxu1 %v2936_v63 }
  0x3c   : > { %707 = vmatprep.mubr.bf16.mxu0 %v3027_v2  ;;  %760 = vmatprep.mubr.bf16.mxu1 %v3027_v2 }
  0x3d   : > { %813 = vmatprep.subr.bf16.mxu0 %v2941_v0  ;;  %866 = vmatprep.subr.bf16.mxu1 %v2944_v1 }
  0x3f   : > { %814 = vmatpush1.bf16.msra.mxu0 %v2939_v3  ;;  %867 = vmatpush1.bf16.msra.mxu1 %v2942_v4 }
  0x40   : > { %980 = vmatprep.subr.bf16.mxu0 %v2947_v5  ;;  %1033 = vmatprep.subr.bf16.mxu1 %v2950_v6 }
  0x42   : > { %2548 = vmatmul.mubr.msk.bf16.gmra.mrb[12].mxu0 %vm349_vm1, %v3163_v35  ;;  %2550 = vmatmul.mubr.msk.bf16.gmra.mrb[12].mxu1 %vm349_vm1, %v3163_v35  ;;  %v2987_v35 = vld [vmem:[%s3552_s2 + $0xcc] ss:$16 sps:$4 sm:$0xff]  }
  0x43   : > { %843 = vmatprep.mubr.bf16.mxu0 %v3027_v2  ;;  %896 = vmatprep.mubr.bf16.mxu1 %v3027_v2 }
  0x4a   : > { %2559 = vmatmul.mubr.msk.bf16.vlgmr.msra.gmra.mrb[8].mxu0 %vm349_vm1, %v3116_v13  ;;  %2561 = vmatmul.mubr.msk.bf16.vlgmr.msra.gmra.mrb[8].mxu1 %vm349_vm1, %v3116_v13  ;;  %v2963_v13 = vld [vmem:[%s3552_s2 + $0x8c] ss:$16 sps:$4 sm:$0xff]  }
  0x4b   : > { %981 = vmatpush1.bf16.msra.mxu0 %v2945_v10  ;;  %1034 = vmatpush1.bf16.msra.mxu1 %v2948_v14 }
  0x4c   : > { %853 = vmatprep.mubr.bf16.mxu0 %v3027_v2  ;;  %906 = vmatprep.mubr.bf16.mxu1 %v3027_v2 }
  0x4d   : > { %982 = vmatprep.subr.bf16.mxu0 %v2953_v15  ;;  %1035 = vmatprep.subr.bf16.mxu1 %v2956_v16 }
  0x4f   : > { %983 = vmatpush1.bf16.msra.mxu0 %v2951_v17  ;;  %1036 = vmatpush1.bf16.msra.mxu1 %v2954_v18 }
  0x50   : > { %1151 = vmatprep.subr.bf16.mxu0 %v2960_v19  ;;  %1204 = vmatprep.subr.bf16.mxu1 %v2963_v13 }
  0x52   : > { %2560 = vmatmul.mubr.msk.bf16.gmra.mrb[12].mxu0 %vm349_vm1, %v3213_v57  ;;  %2562 = vmatmul.mubr.msk.bf16.gmra.mrb[12].mxu1 %vm349_vm1, %v3213_v57  ;;  %v3016_v57 = vld [vmem:[%s3552_s2 + $0x128] ss:$16 sps:$4 sm:$0xff]  }
  0x53   : > { %1012 = vmatprep.mubr.bf16.mxu0 %v3027_v2  ;;  %1065 = vmatprep.mubr.bf16.mxu1 %v3027_v2 }
  0x5a   : > { %2580 = vmatmul.mubr.msk.bf16.vlgmr.msra.gmra.mrb[0].mxu0 %vm349_vm1, %v3210_v54  ;;  %2582 = vmatmul.mubr.msk.bf16.vlgmr.msra.gmra.mrb[0].mxu1 %vm349_vm1, %v3210_v54 }
  0x5b   : > { %1152 = vmatpush1.bf16.msra.mxu0 %v2958_v20  ;;  %1205 = vmatpush1.bf16.msra.mxu1 %v2961_v21 }
  0x5c   : > { %1022 = vmatprep.mubr.bf16.mxu0 %v3027_v2  ;;  %1075 = vmatprep.mubr.bf16.mxu1 %v3027_v2 }
  0x5d   : > { %1153 = vmatprep.subr.bf16.mxu0 %v2966_v22  ;;  %1206 = vmatprep.subr.bf16.mxu1 %v2969_v23 }
  0x5f   : > { %1154 = vmatpush1.bf16.msra.mxu0 %v2964_v24  ;;  %1207 = vmatpush1.bf16.msra.mxu1 %v2967_v25 }
  0x60   : > { %1350 = vmatprep.subr.bf16.mxu0 %v2972_v26  ;;  %1403 = vmatprep.subr.bf16.mxu1 %v2975_v27 }
  0x62   : > { %2581 = vmatmul.mubr.msk.bf16.gmra.mrb[4].mxu0 %vm349_vm1, %v3180_v41  ;;  %2583 = vmatmul.mubr.msk.bf16.gmra.mrb[4].mxu1 %vm349_vm1, %v3180_v41 }
  0x63   : > { %1183 = vmatprep.mubr.bf16.mxu0 %v3027_v2  ;;  %1236 = vmatprep.mubr.bf16.mxu1 %v3027_v2 }
  0x6a   : > { %2600 = vmatmul.mubr.msk.bf16.vlgmr.msra.gmra.mrb[8].mxu0 %vm349_vm1, %v3210_v54  ;;  %2602 = vmatmul.mubr.msk.bf16.vlgmr.msra.gmra.mrb[8].mxu1 %vm349_vm1, %v3210_v54  ;;  %v3015_v54 = vld [vmem:[%s3552_s2 + $0x124] ss:$16 sps:$4 sm:$0xff]  }
  0x6b   : > { %1351 = vmatpush1.bf16.msra.mxu0 %v2970_v28  ;;  %1404 = vmatpush1.bf16.msra.mxu1 %v2973_v29 }
  0x6c   : > { %1193 = vmatprep.mubr.bf16.mxu0 %v3027_v2  ;;  %1246 = vmatprep.mubr.bf16.mxu1 %v3027_v2 }
  0x6d   : > { %1352 = vmatprep.subr.bf16.mxu0 %v2978_v30  ;;  %1405 = vmatprep.subr.bf16.mxu1 %v2981_v31 }
  0x6f   : > { %1353 = vmatpush1.bf16.msra.mxu0 %v2976_v32  ;;  %1406 = vmatpush1.bf16.msra.mxu1 %v2979_v33 }
  0x70   : > { %1521 = vmatprep.subr.bf16.mxu0 %v2984_v34  ;;  %1574 = vmatprep.subr.bf16.mxu1 %v2987_v35 }
  0x72   : > { %2601 = vmatmul.mubr.msk.bf16.gmra.mrb[12].mxu0 %vm349_vm1, %v3180_v41  ;;  %2603 = vmatmul.mubr.msk.bf16.gmra.mrb[12].mxu1 %vm349_vm1, %v3180_v41  ;;  %v2991_v41 = vld [vmem:[%s3552_s2 + $0xe8] ss:$16 sps:$4 sm:$0xff]  }
  0x73   : > { %1382 = vmatprep.mubr.bf16.mxu0 %v3027_v2  ;;  %1435 = vmatprep.mubr.bf16.mxu1 %v3027_v2 }
  0x7a   : > { %2621 = vmatmul.mubr.msk.bf16.vlgmr.msra.gmra.mrb[0].mxu0 %vm349_vm1, %v3222_v61  ;;  %2623 = vmatmul.mubr.msk.bf16.vlgmr.msra.gmra.mrb[0].mxu1 %vm349_vm1, %v3222_v61 }
  0x7b   : > { %1522 = vmatpush1.bf16.msra.mxu0 %v2982_v36  ;;  %1575 = vmatpush1.bf16.msra.mxu1 %v2985_v37 }
  0x7c   : > { %1392 = vmatprep.mubr.bf16.mxu0 %v3027_v2  ;;  %1445 = vmatprep.mubr.bf16.mxu1 %v3027_v2 }
  0x7d   : > { %1523 = vmatprep.subr.bf16.mxu0 %v2990_v38  ;;  %1576 = vmatprep.subr.bf16.mxu1 %v2993_v39 }
  0x7f   : > { %1524 = vmatpush1.bf16.msra.mxu0 %v2988_v40  ;;  %1577 = vmatpush1.bf16.msra.mxu1 %v2991_v41 }
  0x80   : > { %1706 = vmatprep.subr.bf16.mxu0 %v2996_v42  ;;  %1759 = vmatprep.subr.bf16.mxu1 %v2999_v43 }
  0x82   : > { %2622 = vmatmul.mubr.msk.bf16.gmra.mrb[4].mxu0 %vm349_vm1, %v3215_v59  ;;  %2624 = vmatmul.mubr.msk.bf16.gmra.mrb[4].mxu1 %vm349_vm1, %v3215_v59 }
  0x83   : > { %1553 = vmatprep.mubr.bf16.mxu0 %v3027_v2  ;;  %1606 = vmatprep.mubr.bf16.mxu1 %v3027_v2 }
  0x8a   : > { %2641 = vmatmul.mubr.msk.bf16.vlgmr.msra.gmra.mrb[8].mxu0 %vm349_vm1, %v3222_v61  ;;  %2643 = vmatmul.mubr.msk.bf16.vlgmr.msra.gmra.mrb[8].mxu1 %vm349_vm1, %v3222_v61 }
  0x8b   : > { %1707 = vmatpush1.bf16.msra.mxu0 %v2994_v44  ;;  %1760 = vmatpush1.bf16.msra.mxu1 %v2997_v45 }
  0x8c   : > { %1563 = vmatprep.mubr.bf16.mxu0 %v3027_v2  ;;  %1616 = vmatprep.mubr.bf16.mxu1 %v3027_v2 }
  0x8d   : > { %1708 = vmatprep.subr.bf16.mxu0 %v3002_v46  ;;  %1761 = vmatprep.subr.bf16.mxu1 %v3005_v47 }
  0x8f   : > { %1709 = vmatpush1.bf16.msra.mxu0 %v3000_v48  ;;  %1762 = vmatpush1.bf16.msra.mxu1 %v3003_v49 }
  0x90   : > { %1877 = vmatprep.subr.bf16.mxu0 %v3009_v50  ;;  %1930 = vmatprep.subr.bf16.mxu1 %v3012_v51 }
  0x92   : > { %2642 = vmatmul.mubr.msk.bf16.gmra.mrb[12].mxu0 %vm349_vm1, %v3215_v59  ;;  %2644 = vmatmul.mubr.msk.bf16.gmra.mrb[12].mxu1 %vm349_vm1, %v3215_v59 }
  0x93   : > { %1738 = vmatprep.mubr.bf16.mxu0 %v3027_v2  ;;  %1791 = vmatprep.mubr.bf16.mxu1 %v3027_v2 }
  0x9a   : > { %2662 = vmatmul.mubr.msk.bf16.vlgmr.msra.gmra.mrb[0].mxu0 %vm349_vm1, %v3266_v12  ;;  %2664 = vmatmul.mubr.msk.bf16.vlgmr.msra.gmra.mrb[0].mxu1 %vm349_vm1, %v3266_v12 }
  0x9b   : > { %1878 = vmatpush1.bf16.msra.mxu0 %v3007_v52  ;;  %1931 = vmatpush1.bf16.msra.mxu1 %v3010_v53  ;;  %v2015_v52 = vld [vmem:[%s3553_s3] sm:$0xff]  ;;  %v2016_v53 = vld [vmem:[%s3553_s3 + $0x8] sm:$0x3f] }
  0x9c   : > { %1748 = vmatprep.mubr.bf16.mxu0 %v3027_v2  ;;  %1801 = vmatprep.mubr.bf16.mxu1 %v3027_v2 }
  0x9d   : > { %1879 = vmatprep.subr.bf16.mxu0 %v3015_v54  ;;  %1932 = vmatprep.subr.bf16.mxu1 %v3018_v55  ;;  %v2191_v54 = vld [vmem:[%s3554_s4] sm:$0xff]  ;;  %v2192_v55 = vld [vmem:[%s3554_s4 + $0x8] sm:$0x3f] }
  0x9f   : > { %1880 = vmatpush1.bf16.msra.mxu0 %v3013_v56  ;;  %1933 = vmatpush1.bf16.msra.mxu1 %v3016_v57  ;;  %v2363_v56 = vlaneseq }
  0xa1   : > { %v2364_v57 = vshrl.u32 %v2363_v56, 7 }
  0xa2   : > { %2663 = vmatmul.mubr.msk.bf16.gmra.mrb[4].mxu0 %vm349_vm1, %v3259_v9  ;;  %2665 = vmatmul.mubr.msk.bf16.gmra.mrb[4].mxu1 %vm349_vm1, %v3259_v9 }
  0xa3   : > { %1909 = vmatprep.mubr.bf16.mxu0 %v3027_v2  ;;  %1962 = vmatprep.mubr.bf16.mxu1 %v3027_v2 }
  0xaa   : > { %2682 = vmatmul.mubr.msk.bf16.vlgmr.msra.gmra.mrb[8].mxu0 %vm349_vm1, %v3266_v12  ;;  %2684 = vmatmul.mubr.msk.bf16.vlgmr.msra.gmra.mrb[8].mxu1 %vm349_vm1, %v3266_v12 }
  0xab   : > { %1919 = vmatprep.mubr.bf16.mxu0 %v3027_v2  ;;  %1972 = vmatprep.mubr.bf16.mxu1 %v3027_v2 }
  0xb2   : > { %2683 = vmatmul.mubr.msk.bf16.gmra.mrb[12].mxu0 %vm349_vm1, %v3259_v9  ;;  %2685 = vmatmul.mubr.msk.bf16.gmra.mrb[12].mxu1 %vm349_vm1, %v3259_v9 }
  0xb3   : > { %2101 = vmatprep.mubr.f32.mxu0 %v3028_v58  ;;  %2178 = vmatprep.mubr.f32.mxu1 %v3028_v58 }
 0x16d   : > { %v1740_v59 = vpop.f32.mrb[0].mxu0  ;;  %v1793_v60 = vpop.f32.mrb[0].mxu1 }
 0x16e   : > { %v1742_v61 = vpop.f32.mrb[1].mxu0  ;;  %v1795_v62 = vpop.f32.mrb[1].mxu1 }
 0x16f   : > { %v1744_v63 = vpop.f32.mrb[2].mxu0  ;;  %v1797_v0 = vpop.f32.mrb[2].mxu1 }
 0x170   : > { %v1746_v1 = vpop.f32.mrb[3].mxu0  ;;  %v1799_v3 = vpop.f32.mrb[3].mxu1 }
 0x175   : > { %v1750_v2 = vpop.f32.mrb[4].mxu0  ;;  %v1803_v4 = vpop.f32.mrb[4].mxu1 }
 0x176   : > { %v1752_v5 = vpop.f32.mrb[5].mxu0  ;;  %v1805_v6 = vpop.f32.mrb[5].mxu1 }
 0x177   : > { %v1754_v7 = vpop.f32.mrb[6].mxu0  ;;  %v1807_v8 = vpop.f32.mrb[6].mxu1 }
 0x178   : > { %v1756_v9 = vpop.f32.mrb[7].mxu0  ;;  %v1809_v11 = vpop.f32.mrb[7].mxu1 }
 0x17d   : > { %v1911_v12 = vpop.f32.mrb[8].mxu0  ;;  %v1964_v10 = vpop.f32.mrb[8].mxu1 }
 0x17e   : > { %v1999_v14 = vmax.f32 %v1740_v59, %v1911_v12  ;;  %v2001_v15 = vmax.f32 %v1793_v60, %v1964_v10  ;;  %v1913_v16 = vpop.f32.mrb[9].mxu0  ;;  %v1966_v17 = vpop.f32.mrb[9].mxu1 }
 0x17f   : > { %v2000_v18 = vmax.f32 %v1742_v61, %v1913_v16  ;;  %v2002_v19 = vmax.f32 %v1795_v62, %v1966_v17  ;;  %v1915_v13 = vpop.f32.mrb[10].mxu0  ;;  %v1968_v20 = vpop.f32.mrb[10].mxu1 }
 0x180   : > { %v2003_v21 = vmax.f32 %v1744_v63, %v1915_v13  ;;  %v2005_v22 = vmax.f32 %v1797_v0, %v1968_v20  ;;  %v1917_v23 = vpop.f32.mrb[11].mxu0  ;;  %v1970_v24 = vpop.f32.mrb[11].mxu1  ;;  %v2365_v63 = vsub.s32 0, %v2364_v57  ;;  %v2373_v0 = vsub.s32 2, %v2364_v57 }
 0x181   : > { %v2004_v25 = vmax.f32 %v1746_v1, %v1917_v23  ;;  %v2006_v26 = vmax.f32 %v1799_v3, %v1970_v24 }
 0x182   : > { %v2716_v27 = vpack.c.bf16 %v2003_v21, %v1999_v14  ;;  %v2726_v28 = vpack.c.bf16 %v2005_v22, %v2001_v15 }
 0x183   : > { %v2714_v29 = vpack.c.bf16 %v2004_v25, %v2000_v18  ;;  %v2724_v30 = vpack.c.bf16 %v2006_v26, %v2002_v19 }
 0x185   : > { %v1921_v31 = vpop.f32.mrb[12].mxu0  ;;  %v1974_v32 = vpop.f32.mrb[12].mxu1  ;;  %2715 = vmatprep.subr.bf16.mxu0 %v2714_v29  ;;  %2725 = vmatprep.subr.bf16.mxu1 %v2724_v30 }
 0x186   : > { %v2007_v33 = vmax.f32 %v1750_v2, %v1921_v31  ;;  %v2009_v34 = vmax.f32 %v1803_v4, %v1974_v32  ;;  %v1923_v35 = vpop.f32.mrb[13].mxu0  ;;  %v1976_v36 = vpop.f32.mrb[13].mxu1  ;;  %2717 = vmatpush1.bf16.msra.mxu0 %v2716_v27  ;;  %2727 = vmatpush1.bf16.msra.mxu1 %v2726_v28  ;;  %v2369_v2 = vsub.s32 1, %v2364_v57  ;;  %v2377_v4 = vsub.s32 3, %v2364_v57 }
 0x187   : > { %v2008_v37 = vmax.f32 %v1752_v5, %v1923_v35  ;;  %v2010_v38 = vmax.f32 %v1805_v6, %v1976_v36  ;;  %v1925_v39 = vpop.f32.mrb[14].mxu0  ;;  %v1978_v40 = vpop.f32.mrb[14].mxu1 }
 0x188   : > { %v2011_v41 = vmax.f32 %v1754_v7, %v1925_v39  ;;  %v2013_v42 = vmax.f32 %v1807_v8, %v1978_v40  ;;  %v1927_v43 = vpop.f32.mrb[15].mxu0  ;;  %v1980_v44 = vpop.f32.mrb[15].mxu1 }
 0x189   : > { %v2012_v45 = vmax.f32 %v1756_v9, %v1927_v43  ;;  %v2014_v46 = vmax.f32 %v1809_v11, %v1980_v44 }
 0x18a   : > { %v2721_v47 = vpack.c.bf16 %v2011_v41, %v2007_v33  ;;  %v2731_v48 = vpack.c.bf16 %v2013_v42, %v2009_v34 }
 0x18b   : > { %v2718_v50 = vpack.c.bf16 %v2012_v45, %v2008_v37  ;;  %v2728_v51 = vpack.c.bf16 %v2014_v46, %v2010_v38 }
 0x18d   : > { %2720 = vmatprep.subr.msk.bf16.mxu0 %vm3493_vm7, %v2718_v50  ;;  %2730 = vmatprep.subr.msk.bf16.mxu1 %vm3493_vm7, %v2728_v51 }
 0x18e   : > { %2723 = vmatpush1.bf16.msk.msra.mxu0 %vm3493_vm7, %v2721_v47  ;;  %2733 = vmatpush1.bf16.msk.msra.mxu1 %vm3493_vm7, %v2731_v48 }
 0x18f   : > { %2735 = vmatprep.subr.bf16.mxu0 %v2714_v29  ;;  %2745 = vmatprep.subr.bf16.mxu1 %v2724_v30 }
 0x191   : > { %2688 = vmatmul.mubr.msk.f32.vlgmr.msra.gmra.mrb[16].mxu0 %vm2017_vm8, %v2015_v52  ;;  %2692 = vmatmul.mubr.msk.f32.vlgmr.msra.gmra.mrb[16].mxu1 %vm2017_vm8, %v2015_v52 }
 0x192   : > { %2737 = vmatpush1.bf16.msra.mxu0 %v2716_v27  ;;  %2747 = vmatpush1.bf16.msra.mxu1 %v2726_v28 }
 0x193   : > { %2740 = vmatprep.subr.msk.bf16.mxu0 %vm3493_vm7, %v2718_v50  ;;  %2750 = vmatprep.subr.msk.bf16.mxu1 %vm3493_vm7, %v2728_v51 }
 0x194   : > { %2107 = vmatprep.mubr.f32.mxu0 %v3028_v58  ;;  %2184 = vmatprep.mubr.f32.mxu1 %v3028_v58 }
 0x195   : > { %2689 = vmatmul.mubr.msk.f32.gmra.mrb[18].mxu0 %vm2017_vm8, %v2016_v53  ;;  %2693 = vmatmul.mubr.msk.f32.gmra.mrb[18].mxu1 %vm2017_vm8, %v2016_v53 }
 0x196   : > { %2743 = vmatpush1.bf16.msk.msra.mxu0 %vm3493_vm7, %v2721_v47  ;;  %2753 = vmatpush1.bf16.msk.msra.mxu1 %vm3493_vm7, %v2731_v48 }
 0x197   : > { %2263 = vmatprep.mubr.f32.mxu0 %v3028_v58  ;;  %2340 = vmatprep.mubr.f32.mxu1 %v3028_v58 }
 0x199   : > { %2696 = vmatmul.mubr.msk.f32.vlgmr.msra.gmra.mrb[20].mxu0 %vm2017_vm8, %v2191_v54  ;;  %2700 = vmatmul.mubr.msk.f32.vlgmr.msra.gmra.mrb[20].mxu1 %vm2017_vm8, %v2191_v54 }
 0x19a   : > { %2269 = vmatprep.mubr.f32.mxu0 %v3028_v58  ;;  %2346 = vmatprep.mubr.f32.mxu1 %v3028_v58  ;;  %v2361_v58 = vld [vmem:[%s3555_s5] sm:$0xf] }
 0x19b   : > { %v2366_v7 = vrot.slane %v2361_v58, %v2365_v63  ;;  %v2374_v8 = vrot.slane %v2361_v58, %v2373_v0  ;;  %v2370_v12 = vrot.slane %v2361_v58, %v2369_v2  ;;  %v2378_v10 = vrot.slane %v2361_v58, %v2377_v4 }
 0x19d   : > { %2697 = vmatmul.mubr.msk.f32.gmra.mrb[22].mxu0 %vm2017_vm8, %v2192_v55  ;;  %2701 = vmatmul.mubr.msk.f32.gmra.mrb[22].mxu1 %vm2017_vm8, %v2192_v55 }
 0x264   : > { %v2103_v59 = vpop.f32.mrb[16].mxu0  ;;  %v2180_v60 = vpop.f32.mrb[16].mxu1 }
 0x265   : > { %v2105_v61 = vpop.f32.mrb[17].mxu0  ;;  %v2182_v62 = vpop.f32.mrb[17].mxu1 }
 0x268   : > { %v2109_v1 = vpop.f32.mrb[18].mxu0  ;;  %v2186_v3 = vpop.f32.mrb[18].mxu1 }
 0x269   : > { %v2111_v5 = vpop.f32.mrb[19].mxu0  ;;  %v2188_v6 = vpop.f32.mrb[19].mxu1 }
 0x26c   : > { %v2265_v9 = vpop.f32.mrb[20].mxu0  ;;  %v2342_v11 = vpop.f32.mrb[20].mxu1 }
 0x26d   : > { %v2353_v14 = vmax.f32 %v2103_v59, %v2265_v9  ;;  %v2355_v15 = vmax.f32 %v2180_v60, %v2342_v11  ;;  %v2267_v16 = vpop.f32.mrb[21].mxu0  ;;  %v2344_v17 = vpop.f32.mrb[21].mxu1 }
 0x26e   : > { %v2354_v18 = vmax.f32 %v2105_v61, %v2267_v16  ;;  %v2356_v19 = vmax.f32 %v2182_v62, %v2344_v17 }
 0x26f   : > { %v2383_v13 = vadd.f32 %v2366_v7, %v2353_v14  ;;  %v2385_v20 = vadd.f32 %v2374_v8, %v2355_v15 }
 0x270   : > { %v2384_v21 = vadd.f32 %v2370_v12, %v2354_v18  ;;  %v2386_v22 = vadd.f32 %v2378_v10, %v2356_v19  ;;  %v2271_v23 = vpop.f32.mrb[22].mxu0  ;;  %v2348_v24 = vpop.f32.mrb[22].mxu1 }
 0x271   : > { %v2391_v25 = vmax.f32 %v2383_v13, 0.0  ;;  %v2393_v26 = vmax.f32 %v2385_v20, 0.0  ;;  %v2357_v27 = vmax.f32 %v2109_v1, %v2271_v23  ;;  %v2359_v28 = vmax.f32 %v2186_v3, %v2348_v24  ;;  %v2273_v29 = vpop.f32.mrb[23].mxu0  ;;  %v2350_v30 = vpop.f32.mrb[23].mxu1 }
 0x272   : > { %v2392_v31 = vmax.f32 %v2384_v21, 0.0  ;;  %v2394_v32 = vmax.f32 %v2386_v22, 0.0  ;;  %v2358_v33 = vmax.f32 %v2111_v5, %v2273_v29  ;;  %v2360_v34 = vmax.f32 %v2188_v6, %v2350_v30 }
 0x273   : > { %v2387_v35 = vadd.f32 %v2366_v7, %v2357_v27  ;;  %v2389_v36 = vadd.f32 %v2374_v8, %v2359_v28 }
 0x274   : > { %v2710_v37 = vpack.c.bf16 %v2392_v31, %v2391_v25  ;;  %v2711_v38 = vpack.c.bf16 %v2394_v32, %v2393_v26  ;;  %v2388_v39 = vadd.f32 %v2370_v12, %v2358_v33  ;;  %v2390_v40 = vadd.f32 %v2378_v10, %v2360_v34 }
 0x275   : > { %v2395_v41 = vmax.f32 %v2387_v35, 0.0  ;;  %v2397_v42 = vmax.f32 %v2389_v36, 0.0 }
 0x276   : > { %2423 = vst [vmem:[%s251_s26] sm:$0xff] %v2710_v37  ;;  %2426 = vst.msk [vmem:[%s251_s26 + $0x8] sm:$0xff] %vm2425_vm10, %v2711_v38  ;;  %v2396_v43 = vmax.f32 %v2388_v39, 0.0  ;;  %v2398_v44 = vmax.f32 %v2390_v40, 0.0 }
 0x278   : > { %v2712_v45 = vpack.c.bf16 %v2396_v43, %v2395_v41  ;;  %v2713_v46 = vpack.c.bf16 %v2398_v44, %v2397_v42 }
 0x27a   : > { %2427 = vst [vmem:[%s251_s26 + $0x10] sm:$0x77] %v2712_v45  ;;  %2431 = vst.msk [vmem:[%s251_s26 + $0x18] sm:$0x77] %vm2430_vm13, %v2713_v46 }
 0x27b PF: > { %s16_s21 = sadd.s32 1, %s3025_s21  }
 0x27c   : > { %p13_p4 = scmp.ge.s32.totalorder %s16_s21, 4  }
 0x27e   :  { %15 = sbr.rel (!%p13_p4) target bundleno = 1 (0x1), region = 82 }

// kernel: tile.18
= control target key start
LH: loop header
LB: loop body
LE: loop exit
PB: predicated region body
PF: predicated region fallthrough
CT: control target
= control target key end

     0   :  { %s22_s0 = inlined_call_operand.vmem [shape: f32[32], index: 0, kind: input, shape index: {}]   ;;  %s23_s1 = inlined_call_operand.vmem [shape: f32[7,32], index: 1, kind: output, shape index: {}]  }
   0x1   :  { %v4_v0 = vld [vmem:[%s22_s0] ss:$0 sm:$0xff] }
   0x2   :  { %5 = vst [vmem:[%s23_s1] sm:$0xff] %v4_v0 }

// kernel: tile.19
= control target key start
LH: loop header
LB: loop body
LE: loop exit
PB: predicated region body
PF: predicated region fallthrough
CT: control target
= control target key end

     0   :  { %s13_s8 = smov 3  ;;  %s44_s9 = smov 96   ;;  %vm4_vm0 = vcmask 261120   ;;  %vm10_vm1 = vcmask 1048320   ;;  %vm17_vm2 = vcmask 785920   ;;  %vm24_vm3 = vcmask 523520   ;;  %s75_s0 = inlined_call_operand.vmem [shape: f32[7,32], index: 0, kind: input, shape index: {}]   ;;  %s76_s1 = inlined_call_operand.vmem [shape: f32[1,224], index: 1, kind: output, shape index: {}]  }
   0x1   :  { %v37_v0 = vld [vmem:[%s75_s0 + $0x3] sm:$0x1]   ;;  %s20_s10 = smov 3  ;;  %v38_v1 = vld [vmem:[%s75_s0 + $0x2] ss:$4 sm:%s13_s8]   ;;  %s2_s15 = smov 3 }
   0x2   :  { %8 = vrot.lane.b32.xlu0 %v37_v0, %s44_s9  ;;  %v39_v2 = vld [vmem:[%s75_s0 + $0x1] ss:$4 sm:%s20_s10]   ;;  %s45_s16 = smov 32  }
   0x3   :  { %22 = vrot.lane.b32.xlu1 %v39_v2, %s45_s16  ;;  %v3_v3 = vld [vmem:[%s75_s0] ss:$4 sm:%s2_s15]   ;;  %s46_s0 = smov 64  }
   0x4   :  { %5 = vst.msk [vmem:[#allocation0] ss:$8 sm:$0x3] %vm4_vm0, %v3_v3  }
   0x6   :  { %15 = vrot.lane.b32.xlu0 %v38_v1, %s46_s0 }
  0x74   :  { %v9_v4 = vpop.permute.xlu0 %8  }
  0x75   :  { %11 = vst.msk [vmem:[#allocation0] sm:$0x1] %vm10_vm1, %v9_v4   ;;  %v23_v5 = vpop.permute.xlu1 %22  }
  0x78   :  { %v16_v6 = vpop.permute.xlu0 %15  }
  0x79   :  { %18 = vst.msk [vmem:[#allocation0] ss:$8 sm:$0x3] %vm17_vm2, %v16_v6  }
  0x7a   :  { %25 = vst.msk [vmem:[#allocation0] ss:$8 sm:$0x3] %vm24_vm3, %v23_v5  }
  0x81   :  { %v29_v7 = vld [vmem:[#allocation0] sm:$0x1]  ;;  %v33_v8 = vld [vmem:[#allocation0 + $0x8] sm:$0x1] }
  0x82   :  { %31 = vst [vmem:[%s76_s1] sm:$0x1] %v29_v7  ;;  %40 = vst [vmem:[%s76_s1 + $0x1] sm:$0x1] %v33_v8 }

// kernel: cnn_mnist_forward.5
= control target key start
LH: loop header
LB: loop body
LE: loop exit
PB: predicated region body
PF: predicated region fallthrough
CT: control target
= control target key end

     0   :  { %vm1682_vm0 = vmmov 0   ;;  %vm864_vm1 = vcmask 261120   ;;  %s2061_s1 = inlined_call_operand.vmem [shape: bf16[1568,128], index: 1, kind: input, shape index: {}]   ;;  %s2062_s0 = inlined_call_operand.vmem [shape: bf16[8,1568], index: 0, kind: input, shape index: {}]   ;;  %s2063_s3 = inlined_call_operand.vmem [shape: bf16[128,128], index: 3, kind: input, shape index: {}]   ;;  %s2064_s2 = inlined_call_operand.vmem [shape: f32[1,128], index: 2, kind: input, shape index: {}]   ;;  %s2065_s4 = inlined_call_operand.vmem [shape: f32[1,128], index: 4, kind: input, shape index: {}]   ;;  %s2066_s5 = inlined_call_operand.vmem [shape: f32[8,128], index: 5, kind: output, shape index: {}]  }
   0x1   :  { %v1562_v0 = vld [vmem:[%s2061_s1 + $0x40] sm:$0xff]   ;;  %v1566_v4 = vld [vmem:[%s2061_s1 + $0x48] sm:$0xff]   ;;  %v1570_v8 = vld [vmem:[%s2061_s1 + $0x50] sm:$0xff]  }
   0x2   :  { %v1563_v1 = vld [vmem:[%s2061_s1] sm:$0xff]   ;;  %1388 = vmatprep.subr.bf16.mxu0 %v1562_v0  ;;  %v1567_v5 = vld [vmem:[%s2061_s1 + $0x8] sm:$0xff]   ;;  %v1571_v9 = vld [vmem:[%s2061_s1 + $0x10] sm:$0xff]  }
   0x3   :  { %v1564_v2 = vld [vmem:[%s2061_s1 + $0xc0] sm:$0xff]   ;;  %1389 = vmatpush3.bf16.msra.mxu0 %v1563_v1  ;;  %v1568_v6 = vld [vmem:[%s2061_s1 + $0xc8] sm:$0xff]   ;;  %v1572_v10 = vld [vmem:[%s2061_s1 + $0xd0] sm:$0xff]  }
   0x4   :  { %v1565_v3 = vld [vmem:[%s2061_s1 + $0x80] sm:$0xff]   ;;  %1410 = vmatprep.subr.bf16.mxu1 %v1564_v2  ;;  %1390 = vmatprep.subr.bf16.mxu0 %v1566_v4  ;;  %v1569_v7 = vld [vmem:[%s2061_s1 + $0x88] sm:$0xff]   ;;  %v1573_v11 = vld [vmem:[%s2061_s1 + $0x90] sm:$0xff]  }
   0x5   :  { %1411 = vmatpush3.bf16.msra.mxu1 %v1565_v3  ;;  %v1574_v12 = vld [vmem:[%s2061_s1 + $0x58] sm:$0xff]   ;;  %v1578_v16 = vld [vmem:[%s2061_s1 + $0x60] sm:$0xff]   ;;  %v1582_v20 = vld [vmem:[%s2061_s1 + $0x68] sm:$0xff]  }
   0x6   :  { %1412 = vmatprep.subr.bf16.mxu1 %v1568_v6  ;;  %v1575_v13 = vld [vmem:[%s2061_s1 + $0x18] sm:$0xff]   ;;  %v1579_v17 = vld [vmem:[%s2061_s1 + $0x20] sm:$0xff]   ;;  %v1583_v21 = vld [vmem:[%s2061_s1 + $0x28] sm:$0xff]  }
   0x7   :  { %1391 = vmatpush3.bf16.msra.mxu0 %v1567_v5  ;;  %v1576_v14 = vld [vmem:[%s2061_s1 + $0xd8] sm:$0xff]   ;;  %v1580_v18 = vld [vmem:[%s2061_s1 + $0xe0] sm:$0xff]   ;;  %v1584_v22 = vld [vmem:[%s2061_s1 + $0xe8] sm:$0xff]  }
   0x8   :  { %1392 = vmatprep.subr.bf16.mxu0 %v1570_v8  ;;  %v1577_v15 = vld [vmem:[%s2061_s1 + $0x98] sm:$0xff]   ;;  %v1581_v19 = vld [vmem:[%s2061_s1 + $0xa0] sm:$0xff]   ;;  %v1585_v23 = vld [vmem:[%s2061_s1 + $0xa8] sm:$0xff]  }
   0x9   :  { %1413 = vmatpush3.bf16.msra.mxu1 %v1569_v7  ;;  %v1586_v24 = vld [vmem:[%s2061_s1 + $0x70] sm:$0xff]   ;;  %v1590_v28 = vld [vmem:[%s2061_s1 + $0x78] sm:$0xff]   ;;  %v21_v32 = vld [vmem:[%s2062_s0] sm:$0xff] }
   0xa   :  { %1414 = vmatprep.subr.bf16.mxu1 %v1572_v10  ;;  %v1587_v25 = vld [vmem:[%s2061_s1 + $0x30] sm:$0xff]   ;;  %v1591_v29 = vld [vmem:[%s2061_s1 + $0x38] sm:$0xff]   ;;  %v1267_v33 = vcombine.low %v21_v32, %v21_v32  ;;  %v1268_v34 = vcombine.high %v21_v32, %v21_v32  ;;  %v1596_v35 = vld [vmem:[%s2061_s1 + $0x140] sm:$0xff]  }
   0xb   :  { %1393 = vmatpush3.bf16.msra.mxu0 %v1571_v9  ;;  %v1588_v26 = vld [vmem:[%s2061_s1 + $0xf0] sm:$0xff]   ;;  %v1592_v30 = vld [vmem:[%s2061_s1 + $0xf8] sm:$0xff]   ;;  %v22_v36 = vld [vmem:[%s2062_s0 + $0x8] sm:$0xff] }
   0xc   :  { %1394 = vmatprep.subr.bf16.mxu0 %v1574_v12  ;;  %v1589_v27 = vld [vmem:[%s2061_s1 + $0xb0] sm:$0xff]   ;;  %v1593_v31 = vld [vmem:[%s2061_s1 + $0xb8] sm:$0xff]   ;;  %v1269_v37 = vcombine.low %v22_v36, %v22_v36  ;;  %v1270_v38 = vcombine.high %v22_v36, %v22_v36  ;;  %v1599_v39 = vld [vmem:[%s2061_s1 + $0x100] sm:$0xff]   ;;  %900 = vmatprep.mubr.bf16.mxu0 %v1268_v34 }
   0xd   :  { %1415 = vmatpush3.bf16.msra.mxu1 %v1573_v11  ;;  %v1600_v40 = vld [vmem:[%s2061_s1 + $0x1c0] sm:$0xff]   ;;  %v1602_v42 = vld [vmem:[%s2061_s1 + $0x148] sm:$0xff]   ;;  %v1606_v46 = vld [vmem:[%s2061_s1 + $0x150] sm:$0xff]  }
   0xe   :  { %1416 = vmatprep.subr.bf16.mxu1 %v1576_v14  ;;  %940 = vmatprep.mubr.bf16.mxu1 %v1270_v38  ;;  %v1601_v41 = vld [vmem:[%s2061_s1 + $0x180] sm:$0xff]   ;;  %v1603_v43 = vld [vmem:[%s2061_s1 + $0x108] sm:$0xff]   ;;  %v1607_v47 = vld [vmem:[%s2061_s1 + $0x110] sm:$0xff]  }
   0xf   :  { %1395 = vmatpush3.bf16.msra.mxu0 %v1575_v13  ;;  %v1604_v44 = vld [vmem:[%s2061_s1 + $0x1c8] sm:$0xff]   ;;  %v1608_v48 = vld [vmem:[%s2061_s1 + $0x1d0] sm:$0xff]   ;;  %v1610_v50 = vld [vmem:[%s2061_s1 + $0x158] sm:$0xff]  }
  0x10   :  { %1396 = vmatprep.subr.bf16.mxu0 %v1578_v16  ;;  %v1605_v45 = vld [vmem:[%s2061_s1 + $0x188] sm:$0xff]   ;;  %v1609_v49 = vld [vmem:[%s2061_s1 + $0x190] sm:$0xff]   ;;  %v1611_v51 = vld [vmem:[%s2061_s1 + $0x118] sm:$0xff]  }
  0x11   :  { %1417 = vmatpush3.bf16.msra.mxu1 %v1577_v15  ;;  %v1612_v52 = vld [vmem:[%s2061_s1 + $0x1d8] sm:$0xff]   ;;  %v1614_v54 = vld [vmem:[%s2061_s1 + $0x160] sm:$0xff]   ;;  %v1618_v58 = vld [vmem:[%s2061_s1 + $0x168] sm:$0xff]  }
  0x12   :  { %1418 = vmatprep.subr.bf16.mxu1 %v1580_v18  ;;  %v1613_v53 = vld [vmem:[%s2061_s1 + $0x198] sm:$0xff]   ;;  %v1615_v55 = vld [vmem:[%s2061_s1 + $0x120] sm:$0xff]   ;;  %v1619_v59 = vld [vmem:[%s2061_s1 + $0x128] sm:$0xff]  }
  0x13   :  { %1397 = vmatpush3.bf16.msra.mxu0 %v1579_v17  ;;  %v1616_v56 = vld [vmem:[%s2061_s1 + $0x1e0] sm:$0xff]   ;;  %v1620_v60 = vld [vmem:[%s2061_s1 + $0x1e8] sm:$0xff]   ;;  %v1622_v62 = vld [vmem:[%s2061_s1 + $0x170] sm:$0xff]  }
  0x14   :  { %1398 = vmatprep.subr.bf16.mxu0 %v1582_v20  ;;  %v1617_v57 = vld [vmem:[%s2061_s1 + $0x1a0] sm:$0xff]   ;;  %v1621_v61 = vld [vmem:[%s2061_s1 + $0x1a8] sm:$0xff]   ;;  %v1623_v63 = vld [vmem:[%s2061_s1 + $0x130] sm:$0xff]  }
  0x15   :  { %1419 = vmatpush3.bf16.msra.mxu1 %v1581_v19  ;;  %v1624_v0 = vld [vmem:[%s2061_s1 + $0x1f0] sm:$0xff]   ;;  %v1626_v2 = vld [vmem:[%s2061_s1 + $0x178] sm:$0xff]   ;;  %v1632_v9 = vld [vmem:[%s2061_s1 + $0x240] sm:$0xff]  }
  0x16   :  { %1420 = vmatprep.subr.bf16.mxu1 %v1584_v22  ;;  %v1625_v1 = vld [vmem:[%s2061_s1 + $0x1b0] sm:$0xff]   ;;  %v1627_v3 = vld [vmem:[%s2061_s1 + $0x138] sm:$0xff]   ;;  %v1635_v13 = vld [vmem:[%s2061_s1 + $0x200] sm:$0xff]  }
  0x17   :  { %1399 = vmatpush3.bf16.msra.mxu0 %v1583_v21  ;;  %v1628_v4 = vld [vmem:[%s2061_s1 + $0x1f8] sm:$0xff]   ;;  %v23_v6 = vld [vmem:[%s2062_s0 + $0x10] sm:$0xff]  ;;  %v1636_v14 = vld [vmem:[%s2061_s1 + $0x2c0] sm:$0xff]  }
  0x18   :  { %1400 = vmatprep.subr.bf16.mxu0 %v1586_v24  ;;  %v1629_v5 = vld [vmem:[%s2061_s1 + $0x1b8] sm:$0xff]   ;;  %v1271_v7 = vcombine.low %v23_v6, %v23_v6  ;;  %v1272_v8 = vcombine.high %v23_v6, %v23_v6  ;;  %v1637_v15 = vld [vmem:[%s2061_s1 + $0x280] sm:$0xff]   ;;  %v1638_v16 = vld [vmem:[%s2061_s1 + $0x248] sm:$0xff]  }
  0x19   :  { %1421 = vmatpush3.bf16.msra.mxu1 %v1585_v23  ;;  %v24_v10 = vld [vmem:[%s2062_s0 + $0x18] sm:$0xff]  ;;  %v1639_v17 = vld [vmem:[%s2061_s1 + $0x208] sm:$0xff]   ;;  %v1642_v20 = vld [vmem:[%s2061_s1 + $0x250] sm:$0xff]  }
  0x1a   :  { %1422 = vmatprep.subr.bf16.mxu1 %v1588_v26  ;;  %v1273_v11 = vcombine.low %v24_v10, %v24_v10  ;;  %v1274_v12 = vcombine.high %v24_v10, %v24_v10  ;;  %v1640_v18 = vld [vmem:[%s2061_s1 + $0x2c8] sm:$0xff]   ;;  %v1643_v21 = vld [vmem:[%s2061_s1 + $0x210] sm:$0xff]   ;;  %v1646_v24 = vld [vmem:[%s2061_s1 + $0x258] sm:$0xff]  }
  0x1b   :  { %1401 = vmatpush3.bf16.msra.mxu0 %v1587_v25  ;;  %v1641_v19 = vld [vmem:[%s2061_s1 + $0x288] sm:$0xff]   ;;  %v1644_v22 = vld [vmem:[%s2061_s1 + $0x2d0] sm:$0xff]   ;;  %v1647_v25 = vld [vmem:[%s2061_s1 + $0x218] sm:$0xff]  }
  0x1c   :  { %1402 = vmatprep.subr.bf16.mxu0 %v1590_v28  ;;  %v1645_v23 = vld [vmem:[%s2061_s1 + $0x290] sm:$0xff]   ;;  %v1648_v26 = vld [vmem:[%s2061_s1 + $0x2d8] sm:$0xff]   ;;  %v1650_v28 = vld [vmem:[%s2061_s1 + $0x260] sm:$0xff]  }
  0x1d   :  { %1423 = vmatpush3.bf16.msra.mxu1 %v1589_v27  ;;  %v1649_v27 = vld [vmem:[%s2061_s1 + $0x298] sm:$0xff]   ;;  %v1654_v32 = vld [vmem:[%s2061_s1 + $0x268] sm:$0xff]   ;;  %v1658_v36 = vld [vmem:[%s2061_s1 + $0x270] sm:$0xff]  }
  0x1e   :  { %1424 = vmatprep.subr.bf16.mxu1 %v1592_v30  ;;  %v1652_v30 = vld [vmem:[%s2061_s1 + $0x2e0] sm:$0xff]   ;;  %v1656_v34 = vld [vmem:[%s2061_s1 + $0x2e8] sm:$0xff]   ;;  %v1660_v38 = vld [vmem:[%s2061_s1 + $0x2f0] sm:$0xff]  }
  0x1f   :  { %1403 = vmatpush3.bf16.msra.mxu0 %v1591_v29  ;;  %v1651_v29 = vld [vmem:[%s2061_s1 + $0x220] sm:$0xff]  }
  0x20   :  { %1432 = vmatprep.subr.bf16.mxu0 %v1596_v35  ;;  %v1657_v35 = vld [vmem:[%s2061_s1 + $0x2a8] sm:$0xff]  }
  0x21   :  { %1425 = vmatpush3.bf16.msra.mxu1 %v1593_v31  ;;  %v1653_v31 = vld [vmem:[%s2061_s1 + $0x2a0] sm:$0xff]  }
  0x22   :  { %901 = vmatmul.mubr.bf16.vlgmr.msra.gmra.mrb[0].mxu0 %v1267_v33  ;;  %1454 = vmatprep.subr.bf16.mxu1 %v1600_v40  ;;  %v1655_v33 = vld [vmem:[%s2061_s1 + $0x228] sm:$0xff]   ;;  %v1662_v40 = vld [vmem:[%s2061_s1 + $0x278] sm:$0xff]  }
  0x23   :  { %1433 = vmatpush3.bf16.msra.mxu0 %v1599_v39  ;;  %980 = vmatprep.mubr.bf16.mxu0 %v1272_v8  ;;  %v1661_v39 = vld [vmem:[%s2061_s1 + $0x2b0] sm:$0xff]  }
  0x24   :  { %941 = vmatmul.mubr.bf16.vlgmr.msra.gmra.mrb[0].mxu1 %v1269_v37  ;;  %1434 = vmatprep.subr.bf16.mxu0 %v1602_v42  ;;  %v1659_v37 = vld [vmem:[%s2061_s1 + $0x230] sm:$0xff]   ;;  %v1664_v42 = vld [vmem:[%s2061_s1 + $0x2f8] sm:$0xff]  }
  0x25   :  { %1455 = vmatpush3.bf16.msra.mxu1 %v1601_v41  ;;  %1020 = vmatprep.mubr.bf16.mxu1 %v1274_v12  ;;  %v1663_v41 = vld [vmem:[%s2061_s1 + $0x238] sm:$0xff]  }
  0x26   :  { %1456 = vmatprep.subr.bf16.mxu1 %v1604_v44  ;;  %v25_v44 = vld [vmem:[%s2062_s0 + $0x20] sm:$0xff] }
  0x27   :  { %1435 = vmatpush3.bf16.msra.mxu0 %v1603_v43  ;;  %v1665_v43 = vld [vmem:[%s2061_s1 + $0x2b8] sm:$0xff]  }
  0x28   :  { %1436 = vmatprep.subr.bf16.mxu0 %v1606_v46  ;;  %v1275_v46 = vcombine.low %v25_v44, %v25_v44 }
  0x29   :  { %1457 = vmatpush3.bf16.msra.mxu1 %v1605_v45  ;;  %v26_v45 = vld [vmem:[%s2062_s0 + $0x28] sm:$0xff] }
  0x2a   :  { %1458 = vmatprep.subr.bf16.mxu1 %v1608_v48  ;;  %v1277_v48 = vcombine.low %v26_v45, %v26_v45 }
  0x2b   :  { %1437 = vmatpush3.bf16.msra.mxu0 %v1607_v47  ;;  %v1276_v47 = vcombine.high %v25_v44, %v25_v44 }
  0x2c   :  { %1438 = vmatprep.subr.bf16.mxu0 %v1610_v50  ;;  %v1670_v50 = vld [vmem:[%s2061_s1 + $0x300] sm:$0xff]  }
  0x2d   :  { %1459 = vmatpush3.bf16.msra.mxu1 %v1609_v49  ;;  %v1278_v49 = vcombine.high %v26_v45, %v26_v45 }
  0x2e   :  { %1460 = vmatprep.subr.bf16.mxu1 %v1612_v52  ;;  %v1671_v52 = vld [vmem:[%s2061_s1 + $0x308] sm:$0xff]  }
  0x2f   :  { %1439 = vmatpush3.bf16.msra.mxu0 %v1611_v51  ;;  %v1681_v51 = vmov 0.0  }
  0x30   :  { %1440 = vmatprep.subr.bf16.mxu0 %v1614_v54  ;;  %v1673_v54 = vld [vmem:[%s2063_s3] sm:$0xff]  }
  0x31   :  { %1461 = vmatpush3.bf16.msra.mxu1 %v1613_v53  ;;  %v1672_v53 = vld [vmem:[%s2062_s0 + $0x30] ss:$0 sps:$4 sm:$0xff]  }
  0x32   :  { %1462 = vmatprep.subr.bf16.mxu1 %v1616_v56  ;;  %v1675_v56 = vld [vmem:[%s2063_s3 + $0x10] sm:$0xff]  }
  0x33   :  { %1441 = vmatpush3.bf16.msra.mxu0 %v1615_v55  ;;  %v1674_v55 = vld [vmem:[%s2063_s3 + $0x8] sm:$0xff]  }
  0x34   :  { %1442 = vmatprep.subr.bf16.mxu0 %v1618_v58  ;;  %v1677_v58 = vld [vmem:[%s2063_s3 + $0x20] sm:$0xff]  }
  0x35   :  { %1463 = vmatpush3.bf16.msra.mxu1 %v1617_v57  ;;  %v1676_v57 = vld [vmem:[%s2063_s3 + $0x18] sm:$0xff]  }
  0x36   :  { %1464 = vmatprep.subr.bf16.mxu1 %v1620_v60  ;;  %v1679_v60 = vld [vmem:[%s2063_s3 + $0x30] sm:$0xff]  }
  0x37   :  { %1443 = vmatpush3.bf16.msra.mxu0 %v1619_v59  ;;  %v1678_v59 = vld [vmem:[%s2063_s3 + $0x28] sm:$0xff]  }
  0x38   :  { %1444 = vmatprep.subr.bf16.mxu0 %v1622_v62 }
  0x39   :  { %1465 = vmatpush3.bf16.msra.mxu1 %v1621_v61  ;;  %v1680_v61 = vld [vmem:[%s2063_s3 + $0x38] sm:$0xff]  }
  0x3a   :  { %1466 = vmatprep.subr.bf16.mxu1 %v1624_v0 }
  0x3b   :  { %1445 = vmatpush3.bf16.msra.mxu0 %v1623_v63  ;;  %v1266_v63 = vld [vmem:[%s2064_s2] ss:$0 sm:$0xff] }
  0x3c   :  { %1446 = vmatprep.subr.bf16.mxu0 %v1626_v2 }
  0x3d   :  { %1467 = vmatpush3.bf16.msra.mxu1 %v1625_v1 }
  0x3e   :  { %1468 = vmatprep.subr.bf16.mxu1 %v1628_v4 }
  0x3f   :  { %1447 = vmatpush3.bf16.msra.mxu0 %v1627_v3 }
  0x40   :  { %1476 = vmatprep.subr.bf16.mxu0 %v1632_v9 }
  0x41   :  { %1469 = vmatpush3.bf16.msra.mxu1 %v1629_v5 }
  0x42   :  { %981 = vmatmul.mubr.bf16.vlgmr.msra.gmra.mrb[4].mxu0 %v1271_v7  ;;  %1498 = vmatprep.subr.bf16.mxu1 %v1636_v14 }
  0x43   :  { %1477 = vmatpush3.bf16.msra.mxu0 %v1635_v13  ;;  %1060 = vmatprep.mubr.bf16.mxu0 %v1276_v47 }
  0x44   :  { %1021 = vmatmul.mubr.bf16.vlgmr.msra.gmra.mrb[4].mxu1 %v1273_v11  ;;  %1478 = vmatprep.subr.bf16.mxu0 %v1638_v16 }
  0x45   :  { %1499 = vmatpush3.bf16.msra.mxu1 %v1637_v15  ;;  %1100 = vmatprep.mubr.bf16.mxu1 %v1278_v49 }
  0x46   :  { %1500 = vmatprep.subr.bf16.mxu1 %v1640_v18 }
  0x47   :  { %1479 = vmatpush3.bf16.msra.mxu0 %v1639_v17 }
  0x48   :  { %1480 = vmatprep.subr.bf16.mxu0 %v1642_v20 }
  0x49   :  { %1501 = vmatpush3.bf16.msra.mxu1 %v1641_v19 }
  0x4a   :  { %1502 = vmatprep.subr.bf16.mxu1 %v1644_v22 }
  0x4b   :  { %1481 = vmatpush3.bf16.msra.mxu0 %v1643_v21 }
  0x4c   :  { %1482 = vmatprep.subr.bf16.mxu0 %v1646_v24 }
  0x4d   :  { %1503 = vmatpush3.bf16.msra.mxu1 %v1645_v23 }
  0x4e   :  { %1504 = vmatprep.subr.bf16.mxu1 %v1648_v26 }
  0x4f   :  { %1483 = vmatpush3.bf16.msra.mxu0 %v1647_v25 }
  0x50   :  { %1484 = vmatprep.subr.bf16.mxu0 %v1650_v28 }
  0x51   :  { %1505 = vmatpush3.bf16.msra.mxu1 %v1649_v27 }
  0x52   :  { %1506 = vmatprep.subr.bf16.mxu1 %v1652_v30 }
  0x53   :  { %1485 = vmatpush3.bf16.msra.mxu0 %v1651_v29 }
  0x54   :  { %1486 = vmatprep.subr.bf16.mxu0 %v1654_v32 }
  0x55   :  { %1507 = vmatpush3.bf16.msra.mxu1 %v1653_v31 }
  0x56   :  { %1508 = vmatprep.subr.bf16.mxu1 %v1656_v34 }
  0x57   :  { %1487 = vmatpush3.bf16.msra.mxu0 %v1655_v33 }
  0x58   :  { %1488 = vmatprep.subr.bf16.mxu0 %v1658_v36 }
  0x59   :  { %1509 = vmatpush3.bf16.msra.mxu1 %v1657_v35 }
  0x5a   :  { %1510 = vmatprep.subr.bf16.mxu1 %v1660_v38 }
  0x5b   :  { %1489 = vmatpush3.bf16.msra.mxu0 %v1659_v37 }
  0x5c   :  { %1490 = vmatprep.subr.bf16.mxu0 %v1662_v40 }
  0x5d   :  { %1511 = vmatpush3.bf16.msra.mxu1 %v1661_v39 }
  0x5e   :  { %1512 = vmatprep.subr.bf16.mxu1 %v1664_v42  ;;  %v1379_v42 = vld [vmem:[%s2065_s4] ss:$0 sm:$0xff] }
  0x5f   :  { %1491 = vmatpush3.bf16.msra.mxu0 %v1663_v41 }
  0x60   :  { %1532 = vmatprep.subr.bf16.mxu0 %v1681_v51 }
  0x61   :  { %1513 = vmatpush3.bf16.msra.mxu1 %v1665_v43 }
  0x62   :  { %1061 = vmatmul.mubr.bf16.vlgmr.msra.gmra.mrb[8].mxu0 %v1275_v46  ;;  %1540 = vmatprep.subr.bf16.mxu1 %v1681_v51 }
  0x63   :  { %1533 = vmatpush3.bf16.msra.mxu0 %v1670_v50  ;;  %1536 = vmatprep.mubr.msk.bf16.mxu0 %vm1682_vm0, %v1681_v51 }
  0x64   :  { %1101 = vmatmul.mubr.bf16.vlgmr.msra.gmra.mrb[8].mxu1 %v1277_v48  ;;  %1534 = vmatprep.subr.bf16.mxu0 %v1681_v51 }
  0x65   :  { %1556 = vmatprep.mubr.msk.bf16.mxu1 %vm1682_vm0, %v1681_v51  ;;  %1541 = vmatpush3.bf16.msra.mxu1 %v1673_v54 }
  0x66   :  { %1542 = vmatprep.subr.bf16.mxu1 %v1681_v51 }
  0x67   :  { %1535 = vmatpush3.bf16.msra.mxu0 %v1671_v52 }
  0x69   :  { %1543 = vmatpush3.bf16.msra.mxu1 %v1674_v55 }
  0x6a   :  { %1537 = vmatmul.mubr.msk.bf16.vlgmr.msra.gmra.mrb[12].mxu0 %vm864_vm1, %v1672_v53  ;;  %1544 = vmatprep.subr.bf16.mxu1 %v1681_v51 }
  0x6d   :  { %1545 = vmatpush3.bf16.msra.mxu1 %v1675_v56 }
  0x6e   :  { %1546 = vmatprep.subr.bf16.mxu1 %v1681_v51 }
  0x71   :  { %1547 = vmatpush3.bf16.msra.mxu1 %v1676_v57 }
  0x72   :  { %1548 = vmatprep.subr.bf16.mxu1 %v1681_v51 }
  0x75   :  { %1549 = vmatpush3.bf16.msra.mxu1 %v1677_v58 }
  0x76   :  { %1550 = vmatprep.subr.bf16.mxu1 %v1681_v51 }
  0x79   :  { %1551 = vmatpush3.bf16.msra.mxu1 %v1678_v59 }
  0x7a   :  { %1552 = vmatprep.subr.bf16.mxu1 %v1681_v51 }
  0x7d   :  { %1553 = vmatpush3.bf16.msra.mxu1 %v1679_v60 }
  0x7e   :  { %1554 = vmatprep.subr.bf16.mxu1 %v1681_v51 }
  0x81   :  { %1555 = vmatpush3.bf16.msra.mxu1 %v1680_v61 }
  0xf5   :  { %v1404_v62 = vpop.f32.mrb[0].mxu0 }
  0xf6   :  { %v1405_v0 = vpop.f32.mrb[1].mxu0 }
  0xf7   :  { %v1406_v1 = vadd.f32 %v1405_v0, %v1404_v62  ;;  %v1407_v2 = vpop.f32.mrb[2].mxu0  ;;  %v1426_v3 = vpop.f32.mrb[0].mxu1 }
  0xf8   :  { %v1408_v4 = vpop.f32.mrb[3].mxu0  ;;  %v1427_v5 = vpop.f32.mrb[1].mxu1 }
  0xf9   :  { %v903_v6 = vadd.f32 %v1406_v1, %v1266_v63  ;;  %v1428_v7 = vadd.f32 %v1427_v5, %v1426_v3  ;;  %v1429_v8 = vpop.f32.mrb[2].mxu1 }
  0xfa   :  { %v1430_v9 = vpop.f32.mrb[3].mxu1 }
  0xfb   :  { %v943_v10 = vadd.f32 %v1428_v7, %v903_v6 }
 0x115   :  { %v1448_v11 = vpop.f32.mrb[4].mxu0 }
 0x116   :  { %v1449_v12 = vpop.f32.mrb[5].mxu0 }
 0x117   :  { %v1450_v13 = vadd.f32 %v1449_v12, %v1448_v11  ;;  %v1451_v14 = vpop.f32.mrb[6].mxu0  ;;  %v1470_v15 = vpop.f32.mrb[4].mxu1 }
 0x118   :  { %v1452_v16 = vpop.f32.mrb[7].mxu0  ;;  %v1471_v17 = vpop.f32.mrb[5].mxu1 }
 0x119   :  { %v983_v18 = vadd.f32 %v1450_v13, %v943_v10  ;;  %v1472_v19 = vadd.f32 %v1471_v17, %v1470_v15  ;;  %v1473_v20 = vpop.f32.mrb[6].mxu1 }
 0x11a   :  { %v1474_v21 = vpop.f32.mrb[7].mxu1 }
 0x11b   :  { %v1023_v22 = vadd.f32 %v1472_v19, %v983_v18 }
 0x135   :  { %v1492_v23 = vpop.f32.mrb[8].mxu0 }
 0x136   :  { %v1493_v24 = vpop.f32.mrb[9].mxu0 }
 0x137   :  { %v1514_v25 = vpop.f32.mrb[8].mxu1  ;;  %v1494_v26 = vadd.f32 %v1493_v24, %v1492_v23  ;;  %v1495_v27 = vpop.f32.mrb[10].mxu0 }
 0x138   :  { %v1515_v28 = vpop.f32.mrb[9].mxu1  ;;  %v1496_v30 = vpop.f32.mrb[11].mxu0 }
 0x139   :  { %v1516_v29 = vadd.f32 %v1515_v28, %v1514_v25  ;;  %v1517_v31 = vpop.f32.mrb[10].mxu1  ;;  %v1063_v32 = vadd.f32 %v1494_v26, %v1023_v22 }
 0x13a   :  { %v1518_v33 = vpop.f32.mrb[11].mxu1 }
 0x13b   :  { %v1103_v34 = vadd.f32 %v1516_v29, %v1063_v32 }
 0x13d   :  { %v1142_v35 = vpop.f32.mrb[12].mxu0 }
 0x13e   :  { %v1143_v36 = vadd.f32 %v1142_v35, %v1103_v34  ;;  %v1538_v37 = vpop.f32.mrb[13].mxu0 }
 0x13f   :  { %v1145_v38 = vpop.f32.mrb[14].mxu0 }
 0x140   :  { %v1148_v39 = vmax.f32 %v1143_v36, 0.0  ;;  %v1539_v40 = vpop.f32.mrb[15].mxu0 }
 0x142   :  { %v1149_v41 = vpack.c.bf16 %v1148_v39, %v1148_v39 }
 0x144   :  { %1557 = vmatmul.mubr.bf16.vlgmr.msra.gmra.mrb[12].mxu1 %v1149_v41 }
 0x217   :  { %v1255_v43 = vpop.f32.mrb[12].mxu1 }
 0x218   :  { %v1256_v44 = vadd.f32 %v1379_v42, %v1255_v43  ;;  %v1558_v45 = vpop.f32.mrb[13].mxu1 }
 0x219   :  { %v1258_v46 = vpop.f32.mrb[14].mxu1 }
 0x21a   :  { %1261 = vst [vmem:[%s2066_s5] sm:$0xff] %v1256_v44  ;;  %v1559_v47 = vpop.f32.mrb[15].mxu1 }

// kernel: cnn_mnist_forward.4
= control target key start
LH: loop header
LB: loop body
LE: loop exit
PB: predicated region body
PF: predicated region fallthrough
CT: control target
= control target key end

     0   :  { %s9078_s21 = smov 0   ;;  %s11437_s0 = inlined_call_operand.vmem [shape: bf16[2,18,576], index: 0, kind: input, shape index: {}]   ;;  %s11438_s1 = inlined_call_operand.vmem [shape: bf16[5,576,224], index: 1, kind: input, shape index: {}]   ;;  %s11439_s2 = inlined_call_operand.vmem [shape: bf16[5,576,224], index: 2, kind: input, shape index: {}]   ;;  %s11440_s3 = inlined_call_operand.vmem [shape: f32[7,14], index: 3, kind: input, shape index: {}]   ;;  %s11441_s4 = inlined_call_operand.vmem [shape: f32[7,14], index: 4, kind: input, shape index: {}]   ;;  %s11442_s5 = inlined_call_operand.vmem [shape: f32[1,224], index: 5, kind: input, shape index: {}]   ;;  %s11443_s6 = inlined_call_operand.vmem [shape: bf16[2,7,224], index: 6, kind: output, shape index: {}]  }
   0x1 LB: > { %s6424_s22 = sadd.s32 4294967295, %s9038_s21   ;;  %p6428_p0 = scmp.ge.s32.totalorder %s9038_s21, 1  ;;  %s9038_s21 = sphi %s9078_s21, %s16_s21  }
   0x2   : > { %p212_p1 = scmp.lt.s32.totalorder %s9038_s21, 3 }
   0x4   : > { %p213_p2 = pnand %p6428_p0, %p212_p1 }
   0x5   : > { %v7915_v0 = vld [vmem:[%s11438_s1 + $0x244] ss:$8 sps:$4 sm:$0xff] (!%p213_p2)   ;;  %v7919_v2 = vld [vmem:[%s11438_s1 + $0x240] ss:$8 sps:$4 sm:$0xff] (!%p213_p2)   ;;  %v7921_v4 = vld [vmem:[%s11438_s1 + $0x254] ss:$8 sps:$4 sm:$0xff] (!%p213_p2)  }
   0x6   : > { %216 = sbr.rel (%p213_p2) target bundleno = 1173 (0x495), region = 44  ;;  %v7917_v1 = vld [vmem:[%s11439_s2 + $0x244] ss:$8 sps:$4 sm:$0xff] (!%p213_p2)   ;;  %903 = vmatprep.subr.bf16.mxu0 (!%p213_p2), %v7915_v0  ;;  %v7920_v3 = vld [vmem:[%s11439_s2 + $0x240] ss:$8 sps:$4 sm:$0xff] (!%p213_p2)   ;;  %p242_p3 = scmp.lt.s32.totalorder (!%p213_p2), %s6424_s22, 1 }
   0x7   : > { %1974 = vmatprep.subr.bf16.mxu1 (!%p213_p2), %v7917_v1  ;;  %904 = vmatpush1.bf16.msra.mxu0 (!%p213_p2), %v7919_v2  ;;  %v7923_v5 = vld [vmem:[%s11439_s2 + $0x254] ss:$8 sps:$4 sm:$0xff] (!%p213_p2)   ;;  %v7925_v6 = vld [vmem:[%s11438_s1 + $0x250] ss:$8 sps:$4 sm:$0xff] (!%p213_p2)   ;;  %v7927_v8 = vld [vmem:[%s11438_s1 + $0x264] ss:$8 sps:$4 sm:$0xff] (!%p213_p2)  }
   0x8   : > { %1975 = vmatpush1.bf16.msra.mxu1 (!%p213_p2), %v7920_v3  ;;  %905 = vmatprep.subr.bf16.mxu0 (!%p213_p2), %v7921_v4  ;;  %v7926_v7 = vld [vmem:[%s11439_s2 + $0x250] ss:$8 sps:$4 sm:$0xff] (!%p213_p2)   ;;  %v7929_v9 = vld [vmem:[%s11439_s2 + $0x264] ss:$8 sps:$4 sm:$0xff] (!%p213_p2)   ;;  %v7931_v10 = vld [vmem:[%s11438_s1 + $0x260] ss:$8 sps:$4 sm:$0xff] (!%p213_p2)  }
   0x9   : > { %1976 = vmatprep.subr.bf16.mxu1 (!%p213_p2), %v7923_v5  ;;  %v7932_v11 = vld [vmem:[%s11439_s2 + $0x260] ss:$8 sps:$4 sm:$0xff] (!%p213_p2)   ;;  %v7933_v12 = vld [vmem:[%s11438_s1 + $0x274] ss:$8 sps:$4 sm:$0xff] (!%p213_p2)   ;;  %v7937_v14 = vld [vmem:[%s11438_s1 + $0x270] ss:$8 sps:$4 sm:$0xff] (!%p213_p2)  }
   0xa   : > { %v7935_v13 = vld [vmem:[%s11439_s2 + $0x274] ss:$8 sps:$4 sm:$0xff] (!%p213_p2)   ;;  %v7938_v15 = vld [vmem:[%s11439_s2 + $0x270] ss:$8 sps:$4 sm:$0xff] (!%p213_p2)   ;;  %v7939_v16 = vld [vmem:[%s11438_s1 + $0x284] ss:$8 sps:$4 sm:$0xff] (!%p213_p2)  }
   0xb   : > { %906 = vmatpush1.bf16.msra.mxu0 (!%p213_p2), %v7925_v6  ;;  %v7941_v17 = vld [vmem:[%s11439_s2 + $0x284] ss:$8 sps:$4 sm:$0xff] (!%p213_p2)   ;;  %v7943_v18 = vld [vmem:[%s11438_s1 + $0x280] ss:$8 sps:$4 sm:$0xff] (!%p213_p2)   ;;  %v7945_v20 = vld [vmem:[%s11438_s1 + $0x294] ss:$8 sps:$4 sm:$0xff] (!%p213_p2)  }
   0xc   : > { %1977 = vmatpush1.bf16.msra.mxu1 (!%p213_p2), %v7926_v7  ;;  %907 = vmatprep.subr.bf16.mxu0 (!%p213_p2), %v7927_v8  ;;  %v7944_v19 = vld [vmem:[%s11439_s2 + $0x280] ss:$8 sps:$4 sm:$0xff] (!%p213_p2)   ;;  %v7947_v21 = vld [vmem:[%s11439_s2 + $0x294] ss:$8 sps:$4 sm:$0xff] (!%p213_p2)   ;;  %v7949_v22 = vld [vmem:[%s11438_s1 + $0x290] ss:$8 sps:$4 sm:$0xff] (!%p213_p2)  }
   0xd   : > { %1978 = vmatprep.subr.bf16.mxu1 %v7929_v9  ;;  %v7950_v23 = vld [vmem:[%s11439_s2 + $0x290] ss:$8 sps:$4 sm:$0xff]   ;;  %v7951_v24 = vld [vmem:[%s11438_s1 + $0x2a4] ss:$8 sps:$4 sm:$0xff]   ;;  %v7955_v26 = vld [vmem:[%s11438_s1 + $0x2a0] ss:$8 sps:$4 sm:$0xff]  }
   0xe   : > { %v7953_v25 = vld [vmem:[%s11439_s2 + $0x2a4] ss:$8 sps:$4 sm:$0xff]   ;;  %v7956_v27 = vld [vmem:[%s11439_s2 + $0x2a0] ss:$8 sps:$4 sm:$0xff]   ;;  %v7957_v28 = vld [vmem:[%s11438_s1 + $0x2b4] ss:$8 sps:$4 sm:$0xff]  }
   0xf   : > { %908 = vmatpush1.bf16.msra.mxu0 %v7931_v10  ;;  %v7959_v29 = vld [vmem:[%s11439_s2 + $0x2b4] ss:$8 sps:$4 sm:$0xff]   ;;  %v7961_v30 = vld [vmem:[%s11438_s1 + $0x2b0] ss:$8 sps:$4 sm:$0xff]   ;;  %v7963_v32 = vld [vmem:[%s11438_s1 + $0x2c4] ss:$8 sps:$4 sm:$0xff]  }
  0x10   : > { %1979 = vmatpush1.bf16.msra.mxu1 %v7932_v11  ;;  %909 = vmatprep.subr.bf16.mxu0 %v7933_v12  ;;  %v7962_v31 = vld [vmem:[%s11439_s2 + $0x2b0] ss:$8 sps:$4 sm:$0xff]   ;;  %v7965_v33 = vld [vmem:[%s11439_s2 + $0x2c4] ss:$8 sps:$4 sm:$0xff]   ;;  %v7967_v34 = vld [vmem:[%s11438_s1 + $0x2c0] ss:$8 sps:$4 sm:$0xff]  }
  0x11   : > { %1980 = vmatprep.subr.bf16.mxu1 %v7935_v13  ;;  %v7968_v35 = vld [vmem:[%s11439_s2 + $0x2c0] ss:$8 sps:$4 sm:$0xff]   ;;  %s11445_s22 = smov (!%p242_p3, %s6424_s22), 1  ;;  %v7969_v36 = vld [vmem:[%s11438_s1 + $0x2d4] ss:$8 sps:$4 sm:$0xff]   ;;  %vm899_vm0 = vcmask 523264  }
  0x12   : > { %v7971_v37 = vld [vmem:[%s11439_s2 + $0x2d4] ss:$8 sps:$4 sm:$0xff]   ;;  %v7973_v38 = vld [vmem:[%s11438_s1 + $0x2d0] ss:$8 sps:$4 sm:$0xff]   ;;  %s7903_s11 = smul.u32 60, %s11445_s22  ;;  %vm5089_vm2 = vcmask 1045504  }
  0x13   : > { %910 = vmatpush1.bf16.msra.mxu0 %v7937_v14  ;;  %v7974_v39 = vld [vmem:[%s11439_s2 + $0x2d0] ss:$8 sps:$4 sm:$0xff]   ;;  %v7975_v40 = vld [vmem:[%s11438_s1 + $0x2e4] ss:$8 sps:$4 sm:$0xff]   ;;  %v7979_v42 = vld [vmem:[%s11438_s1 + $0x2e0] ss:$8 sps:$4 sm:$0xff]  }
  0x14   : > { %1981 = vmatpush1.bf16.msra.mxu1 %v7938_v15  ;;  %911 = vmatprep.subr.bf16.mxu0 %v7939_v16  ;;  %v7977_v41 = vld [vmem:[%s11439_s2 + $0x2e4] ss:$8 sps:$4 sm:$0xff]   ;;  %v7980_v43 = vld [vmem:[%s11439_s2 + $0x2e0] ss:$8 sps:$4 sm:$0xff]   ;;  %s9228_s26 = scalar_lea.vmem %s11437_s0, %s7903_s11  ;;  %v7981_v44 = vld [vmem:[%s11438_s1 + $0x2f4] ss:$8 sps:$4 sm:$0xff]  }
  0x15   : > { %1982 = vmatprep.subr.bf16.mxu1 %v7941_v17  ;;  %v7983_v45 = vld [vmem:[%s11439_s2 + $0x2f4] ss:$8 sps:$4 sm:$0xff]   ;;  %v9237_v46 = vld [vmem:[%s9228_s26] sm:$0xff]  ;;  %v7985_v48 = vld [vmem:[%s11438_s1 + $0x2f0] ss:$8 sps:$4 sm:$0xff]   ;;  %vm9042_vm3 = vmmov 1  }
  0x16   : > { %v403_v47 = vld [vmem:[%s9228_s26 + $0x14] sm:$0xff]  ;;  %v7987_v51 = vld [vmem:[%s11438_s1 + $0x304] ss:$8 sps:$4 sm:$0xff]   ;;  %v7991_v55 = vld [vmem:[%s11438_s1 + $0x300] ss:$8 sps:$4 sm:$0xff]   ;;  %vm6176_vm5 = vcmask 113664  }
  0x17   : > { %912 = vmatpush1.bf16.msra.mxu0 %v7943_v18  ;;  %v7986_v49 = vld [vmem:[%s11439_s2 + $0x2f0] ss:$8 sps:$4 sm:$0xff]   ;;  %v6505_v50 = vcombine.high %v9237_v46, %v403_v47  ;;  %v7989_v52 = vld [vmem:[%s11439_s2 + $0x304] ss:$8 sps:$4 sm:$0xff]   ;;  %v7992_v56 = vld [vmem:[%s11439_s2 + $0x300] ss:$8 sps:$4 sm:$0xff]   ;;  %v6504_v62 = vcombine.low %v9237_v46, %v403_v47 }
  0x18   : > { %1983 = vmatpush1.bf16.msra.mxu1 %v7944_v19  ;;  %913 = vmatprep.subr.bf16.mxu0 %v7945_v20  ;;  %v7993_v58 = vld [vmem:[%s11438_s1 + $0x314] ss:$8 sps:$4 sm:$0xff]   ;;  %v7997_v61 = vld [vmem:[%s11438_s1 + $0x310] ss:$8 sps:$4 sm:$0xff]   ;;  %v7999_v0 = vld [vmem:[%s11438_s1 + $0x324] ss:$8 sps:$4 sm:$0xff]  }
  0x19   : > { %1984 = vmatprep.subr.bf16.mxu1 %v7947_v21  ;;  %v508_v53 = vshrl.u32 %v6505_v50, 16  ;;  %v510_v54 = vshll.u32 %v6505_v50, 16  ;;  %v7995_v59 = vld [vmem:[%s11439_s2 + $0x314] ss:$8 sps:$4 sm:$0xff]   ;;  %v7998_v63 = vld [vmem:[%s11439_s2 + $0x310] ss:$8 sps:$4 sm:$0xff]   ;;  %vm7780_vm4 = vmpackc.low %vm5089_vm2, %vm9042_vm3 }
  0x1a   : > { %v8001_v1 = vld [vmem:[%s11439_s2 + $0x324] ss:$8 sps:$4 sm:$0xff]   ;;  %v8003_v2 = vld [vmem:[%s11438_s1 + $0x320] ss:$8 sps:$4 sm:$0xff]   ;;  %v503_v3 = vshll.u32 %v6504_v62, 16  ;;  %v501_v8 = vshrl.u32 %v6504_v62, 16 }
  0x1b   : > { %914 = vmatpush1.bf16.msra.mxu0 %v7949_v22  ;;  %v512_v57 = vrot.slane %v510_v54, 1  ;;  %v8004_v4 = vld [vmem:[%s11439_s2 + $0x320] ss:$8 sps:$4 sm:$0xff]   ;;  %v8005_v5 = vld [vmem:[%s11438_s1 + $0x334] ss:$8 sps:$4 sm:$0xff]   ;;  %vm6359_vm6 = vcmask 1043456  }
  0x1c   : > { %1985 = vmatpush1.bf16.msra.mxu1 %v7950_v23  ;;  %915 = vmatprep.subr.bf16.mxu0 %v7951_v24  ;;  %v8007_v6 = vld [vmem:[%s11439_s2 + $0x334] ss:$8 sps:$4 sm:$0xff]   ;;  %v8009_v7 = vld [vmem:[%s11438_s1 + $0x330] ss:$8 sps:$4 sm:$0xff]   ;;  %v505_v9 = vrot.slane %v503_v3, 1  ;;  %s7777_s16 = sshll.u32 %s11445_s22, 3 }
  0x1d   : > { %1986 = vmatprep.subr.bf16.mxu1 %v7953_v25  ;;  %v513_v60 = vor.u32 %v512_v57, %v508_v53  ;;  %v8010_v10 = vld [vmem:[%s11439_s2 + $0x330] ss:$8 sps:$4 sm:$0xff]   ;;  %v8014_v11 = vld [vmem:[%s11438_s1 + $0x344] ss:$8 sps:$4 sm:$0xff]   ;;  %v8012_v13 = vld [vmem:[%s11438_s1 + $0x340] ss:$8 sps:$4 sm:$0xff]   ;;  %s251_s19 = scalar_lea.vmem %s11443_s6, %s7777_s16 }
  0x1e   : > { %v8017_v12 = vld [vmem:[%s11439_s2 + $0x344] ss:$8 sps:$4 sm:$0xff]   ;;  %v506_v14 = vor.u32 %v505_v9, %v501_v8  ;;  %v8015_v15 = vld [vmem:[%s11439_s2 + $0x340] ss:$8 sps:$4 sm:$0xff]   ;;  %v8021_v16 = vld [vmem:[%s11438_s1 + $0x354] ss:$8 sps:$4 sm:$0xff]  }
  0x1f   : > { %916 = vmatpush1.bf16.msra.mxu0 %v7955_v26  ;;  %935 = vmatprep.mubr.bf16.mxu0 %v513_v60  ;;  %v8024_v17 = vld [vmem:[%s11439_s2 + $0x354] ss:$8 sps:$4 sm:$0xff]   ;;  %v8019_v18 = vld [vmem:[%s11438_s1 + $0x350] ss:$8 sps:$4 sm:$0xff]   ;;  %v8027_v20 = vld [vmem:[%s11438_s1 + $0x364] ss:$8 sps:$4 sm:$0xff]  }
  0x20   : > { %1987 = vmatpush1.bf16.msra.mxu1 %v7956_v27  ;;  %917 = vmatprep.subr.bf16.mxu0 %v7957_v28  ;;  %v8022_v19 = vld [vmem:[%s11439_s2 + $0x350] ss:$8 sps:$4 sm:$0xff]   ;;  %v8030_v21 = vld [vmem:[%s11439_s2 + $0x364] ss:$8 sps:$4 sm:$0xff]   ;;  %v8025_v22 = vld [vmem:[%s11438_s1 + $0x360] ss:$8 sps:$4 sm:$0xff]  }
  0x21   : > { %1988 = vmatprep.subr.bf16.mxu1 %v7959_v29  ;;  %2006 = vmatprep.mubr.bf16.mxu1 %v513_v60  ;;  %v8028_v23 = vld [vmem:[%s11439_s2 + $0x360] ss:$8 sps:$4 sm:$0xff]   ;;  %v8033_v24 = vld [vmem:[%s11438_s1 + $0x374] ss:$8 sps:$4 sm:$0xff]   ;;  %v8031_v26 = vld [vmem:[%s11438_s1 + $0x370] ss:$8 sps:$4 sm:$0xff]  }
  0x22   : > { %v8036_v25 = vld [vmem:[%s11439_s2 + $0x374] ss:$8 sps:$4 sm:$0xff]   ;;  %v8034_v27 = vld [vmem:[%s11439_s2 + $0x370] ss:$8 sps:$4 sm:$0xff]   ;;  %v8039_v28 = vld [vmem:[%s11438_s1 + $0x384] ss:$8 sps:$4 sm:$0xff]  }
  0x23   : > { %918 = vmatpush1.bf16.msra.mxu0 %v7961_v30  ;;  %v8042_v29 = vld [vmem:[%s11439_s2 + $0x384] ss:$8 sps:$4 sm:$0xff]   ;;  %v8037_v30 = vld [vmem:[%s11438_s1 + $0x380] ss:$8 sps:$4 sm:$0xff]   ;;  %v8058_v50 = vld [vmem:[%s11439_s2 + $0x3b0] ss:$8 sps:$4 sm:$0xff]  }
  0x24   : > { %1989 = vmatpush1.bf16.msra.mxu1 %v7962_v31  ;;  %919 = vmatprep.subr.bf16.mxu0 %v7963_v32  ;;  %v8040_v31 = vld [vmem:[%s11439_s2 + $0x380] ss:$8 sps:$4 sm:$0xff]   ;;  %v8045_v32 = vld [vmem:[%s11438_s1 + $0x394] ss:$8 sps:$4 sm:$0xff]   ;;  %v8075_v60 = vld [vmem:[%s11438_s1 + $0x3e4] ss:$8 sps:$4 sm:$0xff]  }
  0x25   : > { %1990 = vmatprep.subr.bf16.mxu1 %v7965_v33  ;;  %v8048_v33 = vld [vmem:[%s11439_s2 + $0x394] ss:$8 sps:$4 sm:$0xff]   ;;  %v8061_v54 = vld [vmem:[%s11438_s1 + $0x3c0] ss:$8 sps:$4 sm:$0xff]   ;;  %v8082_v3 = vld [vmem:[%s11439_s2 + $0x3f0] ss:$8 sps:$4 sm:$0xff]  }
  0x26   : > { %v8072_v57 = vld [vmem:[%s11439_s2 + $0x3d4] ss:$8 sps:$4 sm:$0xff]   ;;  %v8073_v62 = vld [vmem:[%s11438_s1 + $0x3e0] ss:$8 sps:$4 sm:$0xff]   ;;  %vm3868_vm1 = vsmask.f32 6400 }
  0x27   : > { %920 = vmatpush1.bf16.msra.mxu0 %v7967_v34  ;;  %v8043_v34 = vld [vmem:[%s11438_s1 + $0x390] ss:$8 sps:$4 sm:$0xff]   ;;  %v8093_v8 = vld [vmem:[%s11438_s1 + $0x414] ss:$8 sps:$4 sm:$0xff]   ;;  %vm6360_vm7 = vsmask.f32 3328 }
  0x28   : > { %1991 = vmatpush1.bf16.msra.mxu1 %v7968_v35  ;;  %921 = vmatprep.subr.bf16.mxu0 %v7969_v36  ;;  %v8046_v35 = vld [vmem:[%s11439_s2 + $0x390] ss:$8 sps:$4 sm:$0xff]   ;;  %v8051_v36 = vld [vmem:[%s11438_s1 + $0x3a4] ss:$8 sps:$4 sm:$0xff]   ;;  %v8096_v9 = vld [vmem:[%s11439_s2 + $0x414] ss:$8 sps:$4 sm:$0xff]  }
  0x29   : > { %1992 = vmatprep.subr.bf16.mxu1 %v7971_v37  ;;  %v8054_v37 = vld [vmem:[%s11439_s2 + $0x3a4] ss:$8 sps:$4 sm:$0xff]   ;;  %vm6362_vm8 = vcmask 785412   ;;  %vm6363_vm9 = vsmask.f32 7424  ;;  %vm6361_vm10 = vmand %vm6359_vm6, %vm6360_vm7 }
  0x2a   : > { %vm6364_vm11 = vmand %vm6362_vm8, %vm6363_vm9 }
  0x2b   : > { %922 = vmatpush1.bf16.msra.mxu0 %v7973_v38  ;;  %v9375_v38 = vld [vmem:[%s9228_s26 + $0x8] sm:$0xff]  ;;  %vm6365_vm12 = vmor %vm6364_vm11, %vm6361_vm10 }
  0x2c   : > { %1993 = vmatpush1.bf16.msra.mxu1 %v7974_v39  ;;  %923 = vmatprep.subr.bf16.mxu0 %v7975_v40  ;;  %v9378_v39 = vld [vmem:[%s9228_s26 + $0x1c] sm:$0xff] }
  0x2d   : > { %1994 = vmatprep.subr.bf16.mxu1 %v7977_v41  ;;  %v8049_v40 = vld [vmem:[%s11438_s1 + $0x3a0] ss:$8 sps:$4 sm:$0xff]   ;;  %v6507_v41 = vcombine.high %v9375_v38, %v9378_v39 }
  0x2f   : > { %924 = vmatpush1.bf16.msra.mxu0 %v7979_v42  ;;  %v8052_v42 = vld [vmem:[%s11439_s2 + $0x3a0] ss:$8 sps:$4 sm:$0xff]   ;;  %v524_v47 = vshll.u32 %v6507_v41, 16 }
  0x30   : > { %1995 = vmatpush1.bf16.msra.mxu1 %v7980_v43  ;;  %925 = vmatprep.subr.bf16.mxu0 %v7981_v44  ;;  %v8057_v43 = vld [vmem:[%s11438_s1 + $0x3b4] ss:$8 sps:$4 sm:$0xff]  }
  0x31   : > { %1996 = vmatprep.subr.bf16.mxu1 %v7983_v45  ;;  %v8060_v44 = vld [vmem:[%s11439_s2 + $0x3b4] ss:$8 sps:$4 sm:$0xff]   ;;  %v522_v45 = vshrl.u32 %v6507_v41, 16  ;;  %v8126_v41 = vld [vmem:[%s11439_s2 + $0x460] ss:$8 sps:$4 sm:$0xff]  }
  0x33   : > { %926 = vmatpush1.bf16.msra.mxu0 %v7985_v48  ;;  %v526_v48 = vrot.slane %v524_v47, 1 }
  0x34   : > { %1997 = vmatpush1.bf16.msra.mxu1 %v7986_v49  ;;  %927 = vmatprep.subr.bf16.mxu0 %v7987_v51  ;;  %v8055_v49 = vld [vmem:[%s11438_s1 + $0x3b0] ss:$8 sps:$4 sm:$0xff]   ;;  %v8063_v51 = vld [vmem:[%s11438_s1 + $0x3c4] ss:$8 sps:$4 sm:$0xff]  }
  0x35   : > { %1998 = vmatprep.subr.bf16.mxu1 %v7989_v52  ;;  %v8066_v52 = vld [vmem:[%s11439_s2 + $0x3c4] ss:$8 sps:$4 sm:$0xff]   ;;  %v527_v53 = vor.u32 %v526_v48, %v522_v45  ;;  %v8129_v45 = vld [vmem:[%s11438_s1 + $0x470] ss:$8 sps:$4 sm:$0xff]  }
  0x37   : > { %928 = vmatpush1.bf16.msra.mxu0 %v7991_v55  ;;  %v8064_v55 = vld [vmem:[%s11439_s2 + $0x3c0] ss:$8 sps:$4 sm:$0xff]  }
  0x38   : > { %1999 = vmatpush1.bf16.msra.mxu1 %v7992_v56  ;;  %929 = vmatprep.subr.bf16.mxu0 %v7993_v58  ;;  %v8069_v56 = vld [vmem:[%s11438_s1 + $0x3d4] ss:$8 sps:$4 sm:$0xff]   ;;  %v8067_v58 = vld [vmem:[%s11438_s1 + $0x3d0] ss:$8 sps:$4 sm:$0xff]  }
  0x39   : > { %2000 = vmatprep.subr.bf16.mxu1 %v7995_v59  ;;  %v8070_v59 = vld [vmem:[%s11439_s2 + $0x3d0] ss:$8 sps:$4 sm:$0xff]  }
  0x3b   : > { %930 = vmatpush1.bf16.msra.mxu0 %v7997_v61  ;;  %v8078_v61 = vld [vmem:[%s11439_s2 + $0x3e4] ss:$8 sps:$4 sm:$0xff]  }
  0x3c   : > { %2001 = vmatpush1.bf16.msra.mxu1 %v7998_v63  ;;  %931 = vmatprep.subr.bf16.mxu0 %v7999_v0  ;;  %v8076_v63 = vld [vmem:[%s11439_s2 + $0x3e0] ss:$8 sps:$4 sm:$0xff]   ;;  %v8081_v0 = vld [vmem:[%s11438_s1 + $0x3f4] ss:$8 sps:$4 sm:$0xff]  }
  0x3d   : > { %2002 = vmatprep.subr.bf16.mxu1 %v8001_v1  ;;  %v8084_v1 = vld [vmem:[%s11439_s2 + $0x3f4] ss:$8 sps:$4 sm:$0xff]  }
  0x3f   : > { %932 = vmatpush1.bf16.msra.mxu0 %v8003_v2  ;;  %v8079_v2 = vld [vmem:[%s11438_s1 + $0x3f0] ss:$8 sps:$4 sm:$0xff]  }
  0x40   : > { %2003 = vmatpush1.bf16.msra.mxu1 %v8004_v4  ;;  %933 = vmatprep.subr.bf16.mxu0 %v8005_v5  ;;  %v8087_v4 = vld [vmem:[%s11438_s1 + $0x404] ss:$8 sps:$4 sm:$0xff]  }
  0x41   : > { %2004 = vmatprep.subr.bf16.mxu1 %v8007_v6  ;;  %v8090_v5 = vld [vmem:[%s11439_s2 + $0x404] ss:$8 sps:$4 sm:$0xff]   ;;  %v8085_v6 = vld [vmem:[%s11438_s1 + $0x400] ss:$8 sps:$4 sm:$0xff]  }
  0x43   : > { %934 = vmatpush1.bf16.msra.mxu0 %v8009_v7  ;;  %v8088_v7 = vld [vmem:[%s11439_s2 + $0x400] ss:$8 sps:$4 sm:$0xff]  }
  0x44   : > { %2005 = vmatpush1.bf16.msra.mxu1 %v8010_v10  ;;  %946 = vmatprep.subr.bf16.mxu0 %v8014_v11  ;;  %v8091_v10 = vld [vmem:[%s11438_s1 + $0x410] ss:$8 sps:$4 sm:$0xff]  }
  0x45   : > { %2017 = vmatprep.subr.bf16.mxu1 %v8017_v12  ;;  %v8094_v11 = vld [vmem:[%s11439_s2 + $0x410] ss:$8 sps:$4 sm:$0xff]   ;;  %v6506_v12 = vcombine.low %v9375_v38, %v9378_v39  ;;  %v9040_v39 = vmov 0  }
  0x46   : > { %936 = vmatmul.mubr.bf16.vlgmr.msra.gmra.mrb[0].mxu0 %v506_v14 }
  0x47   : > { %2007 = vmatmul.mubr.bf16.vlgmr.msra.gmra.mrb[0].mxu1 %v506_v14  ;;  %947 = vmatpush1.bf16.msra.mxu0 %v8012_v13  ;;  %v8099_v13 = vld [vmem:[%s11438_s1 + $0x424] ss:$8 sps:$4 sm:$0xff]  }
  0x48   : > { %2018 = vmatpush1.bf16.msra.mxu1 %v8015_v15  ;;  %948 = vmatprep.subr.bf16.mxu0 %v8021_v16  ;;  %v8102_v14 = vld [vmem:[%s11439_s2 + $0x424] ss:$8 sps:$4 sm:$0xff]   ;;  %v8097_v15 = vld [vmem:[%s11438_s1 + $0x420] ss:$8 sps:$4 sm:$0xff]  }
  0x49   : > { %2019 = vmatprep.subr.bf16.mxu1 %v8024_v17  ;;  %978 = vmatprep.mubr.bf16.mxu0 %v527_v53  ;;  %v8100_v16 = vld [vmem:[%s11439_s2 + $0x420] ss:$8 sps:$4 sm:$0xff]   ;;  %v517_v17 = vshll.u32 %v6506_v12, 16 }
  0x4a   : > { %2049 = vmatprep.mubr.bf16.mxu1 %v527_v53 }
  0x4b   : > { %949 = vmatpush1.bf16.msra.mxu0 %v8019_v18  ;;  %v8105_v18 = vld [vmem:[%s11438_s1 + $0x434] ss:$8 sps:$4 sm:$0xff]  }
  0x4c   : > { %2020 = vmatpush1.bf16.msra.mxu1 %v8022_v19  ;;  %950 = vmatprep.subr.bf16.mxu0 %v8027_v20  ;;  %v8108_v19 = vld [vmem:[%s11439_s2 + $0x434] ss:$8 sps:$4 sm:$0xff]   ;;  %v8103_v20 = vld [vmem:[%s11438_s1 + $0x430] ss:$8 sps:$4 sm:$0xff]  }
  0x4d   : > { %2021 = vmatprep.subr.bf16.mxu1 %v8030_v21  ;;  %v8106_v21 = vld [vmem:[%s11439_s2 + $0x430] ss:$8 sps:$4 sm:$0xff]  }
  0x4f   : > { %951 = vmatpush1.bf16.msra.mxu0 %v8025_v22  ;;  %v515_v22 = vshrl.u32 %v6506_v12, 16  ;;  %v8174_v12 = vld [vmem:[%s11438_s1 + $0x64] ss:$8 sps:$4 sm:$0xff]  }
  0x50   : > { %2022 = vmatpush1.bf16.msra.mxu1 %v8028_v23  ;;  %952 = vmatprep.subr.bf16.mxu0 %v8033_v24  ;;  %v519_v23 = vrot.slane %v517_v17, 1  ;;  %v8112_v24 = vld [vmem:[%s11438_s1 + $0x444] ss:$8 sps:$4 sm:$0xff]   ;;  %v8183_v17 = vld [vmem:[%s11439_s2 + $0x74] ss:$8 sps:$4 sm:$0xff]  }
  0x51   : > { %2023 = vmatprep.subr.bf16.mxu1 %v8036_v25  ;;  %v8115_v25 = vld [vmem:[%s11439_s2 + $0x444] ss:$8 sps:$4 sm:$0xff]  }
  0x53   : > { %953 = vmatpush1.bf16.msra.mxu0 %v8031_v26  ;;  %v8110_v26 = vld [vmem:[%s11438_s1 + $0x440] ss:$8 sps:$4 sm:$0xff]  }
  0x54   : > { %2024 = vmatpush1.bf16.msra.mxu1 %v8034_v27  ;;  %954 = vmatprep.subr.bf16.mxu0 %v8039_v28  ;;  %v8113_v27 = vld [vmem:[%s11439_s2 + $0x440] ss:$8 sps:$4 sm:$0xff]   ;;  %v520_v28 = vor.u32 %v519_v23, %v515_v22 }
  0x55   : > { %2025 = vmatprep.subr.bf16.mxu1 %v8042_v29  ;;  %v8119_v29 = vld [vmem:[%s11438_s1 + $0x454] ss:$8 sps:$4 sm:$0xff]   ;;  %v8184_v22 = vld [vmem:[%s11438_s1 + $0x80] ss:$8 sps:$4 sm:$0xff]  }
  0x56   : > { %v8187_v23 = vld [vmem:[%s11439_s2 + $0x80] ss:$8 sps:$4 sm:$0xff]  }
  0x57   : > { %955 = vmatpush1.bf16.msra.mxu0 %v8037_v30  ;;  %v255_v30 = vld [vmem:[%s9228_s26 + $0x10] sm:$0xf] }
  0x58   : > { %2026 = vmatpush1.bf16.msra.mxu1 %v8040_v31  ;;  %956 = vmatprep.subr.bf16.mxu0 %v8045_v32  ;;  %v405_v31 = vld [vmem:[%s9228_s26 + $0x24] sm:$0xf]  ;;  %v8122_v32 = vld [vmem:[%s11439_s2 + $0x454] ss:$8 sps:$4 sm:$0xff]  }
  0x59   : > { %2027 = vmatprep.subr.bf16.mxu1 %v8048_v33  ;;  %v8117_v33 = vld [vmem:[%s11438_s1 + $0x450] ss:$8 sps:$4 sm:$0xff]  }
  0x5b   : > { %957 = vmatpush1.bf16.msra.mxu0 %v8043_v34  ;;  %v8120_v34 = vld [vmem:[%s11439_s2 + $0x450] ss:$8 sps:$4 sm:$0xff]  }
  0x5c   : > { %2028 = vmatpush1.bf16.msra.mxu1 %v8046_v35  ;;  %958 = vmatprep.subr.bf16.mxu0 %v8051_v36  ;;  %v6508_v35 = vcombine.low %v255_v30, %v405_v31  ;;  %v8125_v36 = vld [vmem:[%s11438_s1 + $0x464] ss:$8 sps:$4 sm:$0xff]   ;;  %v8196_v30 = vld [vmem:[%s11438_s1 + $0xa0] ss:$8 sps:$4 sm:$0xff]  }
  0x5d   : > { %2029 = vmatprep.subr.bf16.mxu1 %v8054_v37  ;;  %v8128_v37 = vld [vmem:[%s11439_s2 + $0x464] ss:$8 sps:$4 sm:$0xff]   ;;  %v8199_v31 = vld [vmem:[%s11439_s2 + $0xa0] ss:$8 sps:$4 sm:$0xff]  }
  0x5e   : > { %v529_v47 = vshrl.u32 %v6508_v35, 16 }
  0x5f   : > { %959 = vmatpush1.bf16.msra.mxu0 %v8049_v40  ;;  %v8123_v40 = vld [vmem:[%s11438_s1 + $0x460] ss:$8 sps:$4 sm:$0xff]  }
  0x60   : > { %2030 = vmatpush1.bf16.msra.mxu1 %v8052_v42  ;;  %960 = vmatprep.subr.bf16.mxu0 %v8057_v43  ;;  %v531_v42 = vshll.u32 %v6508_v35, 16  ;;  %v8131_v43 = vld [vmem:[%s11438_s1 + $0x474] ss:$8 sps:$4 sm:$0xff]   ;;  %v8205_v35 = vld [vmem:[%s11439_s2 + $0xb0] ss:$8 sps:$4 sm:$0xff]  }
  0x61   : > { %2031 = vmatprep.subr.bf16.mxu1 %v8060_v44  ;;  %v8134_v44 = vld [vmem:[%s11439_s2 + $0x474] ss:$8 sps:$4 sm:$0xff]  }
  0x62   : > { %v533_v48 = vrot.slane %v531_v42, 1  ;;  %v8216_v42 = vld [vmem:[%s11438_s1 + $0xd4] ss:$8 sps:$4 sm:$0xff]  }
  0x63   : > { %961 = vmatpush1.bf16.msra.mxu0 %v8055_v49  ;;  %v8132_v49 = vld [vmem:[%s11439_s2 + $0x470] ss:$8 sps:$4 sm:$0xff]  }
  0x64   : > { %2032 = vmatpush1.bf16.msra.mxu1 %v8058_v50  ;;  %962 = vmatprep.subr.bf16.mxu0 %v8063_v51  ;;  %v8137_v50 = vld [vmem:[%s11438_s1 + $0x4] ss:$8 sps:$4 sm:$0xff]   ;;  %v534_v53 = vor.u32 %v533_v48, %v529_v47 }
  0x65   : > { %2033 = vmatprep.subr.bf16.mxu1 %v8066_v52  ;;  %v8140_v51 = vld [vmem:[%s11439_s2 + $0x4] ss:$8 sps:$4 sm:$0xff]   ;;  %v8135_v52 = vld [vmem:[%s11438_s1] ss:$8 sps:$4 sm:$0xff]  }
  0x66   : > { %v8222_v47 = vld [vmem:[%s11438_s1 + $0xe4] ss:$8 sps:$4 sm:$0xff]  }
  0x67   : > { %963 = vmatpush1.bf16.msra.mxu0 %v8061_v54  ;;  %v9560_v54 = vld [vmem:[%s9228_s26 + $0x14] sm:$0x77]  ;;  %v8225_v48 = vld [vmem:[%s11439_s2 + $0xe4] ss:$8 sps:$4 sm:$0xff]  }
  0x68   : > { %2034 = vmatpush1.bf16.msra.mxu1 %v8064_v55  ;;  %964 = vmatprep.subr.bf16.mxu0 %v8069_v56  ;;  %v8138_v55 = vld [vmem:[%s11439_s2] ss:$8 sps:$4 sm:$0xff]   ;;  %v8144_v56 = vld [vmem:[%s11438_s1 + $0x14] ss:$8 sps:$4 sm:$0xff]  }
  0x69   : > { %2035 = vmatprep.subr.bf16.mxu1 %v8072_v57  ;;  %v8147_v57 = vld [vmem:[%s11439_s2 + $0x14] ss:$8 sps:$4 sm:$0xff]  }
  0x6b   : > { %965 = vmatpush1.bf16.msra.mxu0 %v8067_v58  ;;  %v6583_v58 = vcombine.high %v9237_v46, %v9560_v54  ;;  %v8150_v46 = vld [vmem:[%s11438_s1 + $0x24] ss:$8 sps:$4 sm:$0xff]  }
  0x6c   : > { %2036 = vmatpush1.bf16.msra.mxu1 %v8070_v59  ;;  %966 = vmatprep.subr.bf16.mxu0 %v8075_v60  ;;  %v8142_v59 = vld [vmem:[%s11438_s1 + $0x10] ss:$8 sps:$4 sm:$0xff]  }
  0x6d   : > { %2037 = vmatprep.subr.bf16.mxu1 %v8078_v61  ;;  %v8145_v60 = vld [vmem:[%s11439_s2 + $0x10] ss:$8 sps:$4 sm:$0xff]   ;;  %v8153_v61 = vld [vmem:[%s11439_s2 + $0x24] ss:$8 sps:$4 sm:$0xff]  }
  0x6f   : > { %967 = vmatpush1.bf16.msra.mxu0 %v8073_v62  ;;  %v8148_v62 = vld [vmem:[%s11438_s1 + $0x20] ss:$8 sps:$4 sm:$0xff]  }
  0x70   : > { %2038 = vmatpush1.bf16.msra.mxu1 %v8076_v63  ;;  %968 = vmatprep.subr.bf16.mxu0 %v8081_v0  ;;  %v8151_v63 = vld [vmem:[%s11439_s2 + $0x20] ss:$8 sps:$4 sm:$0xff]   ;;  %v8156_v0 = vld [vmem:[%s11438_s1 + $0x34] ss:$8 sps:$4 sm:$0xff]  }
  0x71   : > { %2039 = vmatprep.subr.bf16.mxu1 %v8084_v1  ;;  %v8159_v1 = vld [vmem:[%s11439_s2 + $0x34] ss:$8 sps:$4 sm:$0xff]  }
  0x73   : > { %969 = vmatpush1.bf16.msra.mxu0 %v8079_v2  ;;  %v8154_v2 = vld [vmem:[%s11438_s1 + $0x30] ss:$8 sps:$4 sm:$0xff]  }
  0x74   : > { %2040 = vmatpush1.bf16.msra.mxu1 %v8082_v3  ;;  %970 = vmatprep.subr.bf16.mxu0 %v8087_v4  ;;  %v8157_v3 = vld [vmem:[%s11439_s2 + $0x30] ss:$8 sps:$4 sm:$0xff]   ;;  %v8162_v4 = vld [vmem:[%s11438_s1 + $0x44] ss:$8 sps:$4 sm:$0xff]  }
  0x75   : > { %2041 = vmatprep.subr.bf16.mxu1 %v8090_v5  ;;  %v8165_v5 = vld [vmem:[%s11439_s2 + $0x44] ss:$8 sps:$4 sm:$0xff]  }
  0x77   : > { %971 = vmatpush1.bf16.msra.mxu0 %v8085_v6  ;;  %v8160_v6 = vld [vmem:[%s11438_s1 + $0x40] ss:$8 sps:$4 sm:$0xff]  }
  0x78   : > { %2042 = vmatpush1.bf16.msra.mxu1 %v8088_v7  ;;  %972 = vmatprep.subr.bf16.mxu0 %v8093_v8  ;;  %v8163_v7 = vld [vmem:[%s11439_s2 + $0x40] ss:$8 sps:$4 sm:$0xff]   ;;  %v8168_v8 = vld [vmem:[%s11438_s1 + $0x54] ss:$8 sps:$4 sm:$0xff]  }
  0x79   : > { %2043 = vmatprep.subr.bf16.mxu1 %v8096_v9  ;;  %v8171_v9 = vld [vmem:[%s11439_s2 + $0x54] ss:$8 sps:$4 sm:$0xff]  }
  0x7b   : > { %973 = vmatpush1.bf16.msra.mxu0 %v8091_v10  ;;  %v8166_v10 = vld [vmem:[%s11438_s1 + $0x50] ss:$8 sps:$4 sm:$0xff]  }
  0x7c   : > { %2044 = vmatpush1.bf16.msra.mxu1 %v8094_v11  ;;  %974 = vmatprep.subr.bf16.mxu0 %v8099_v13  ;;  %v8169_v11 = vld [vmem:[%s11439_s2 + $0x50] ss:$8 sps:$4 sm:$0xff]   ;;  %v8177_v13 = vld [vmem:[%s11439_s2 + $0x64] ss:$8 sps:$4 sm:$0xff]  }
  0x7d   : > { %2045 = vmatprep.subr.bf16.mxu1 %v8102_v14  ;;  %v8172_v14 = vld [vmem:[%s11438_s1 + $0x60] ss:$8 sps:$4 sm:$0xff]  }
  0x7f   : > { %975 = vmatpush1.bf16.msra.mxu0 %v8097_v15  ;;  %v8175_v15 = vld [vmem:[%s11439_s2 + $0x60] ss:$8 sps:$4 sm:$0xff]  }
  0x80   : > { %2046 = vmatpush1.bf16.msra.mxu1 %v8100_v16  ;;  %976 = vmatprep.subr.bf16.mxu0 %v8105_v18  ;;  %v8180_v16 = vld [vmem:[%s11438_s1 + $0x74] ss:$8 sps:$4 sm:$0xff]   ;;  %v8178_v18 = vld [vmem:[%s11438_s1 + $0x70] ss:$8 sps:$4 sm:$0xff]  }
  0x81   : > { %2047 = vmatprep.subr.bf16.mxu1 %v8108_v19  ;;  %v8181_v19 = vld [vmem:[%s11439_s2 + $0x70] ss:$8 sps:$4 sm:$0xff]  }
  0x83   : > { %977 = vmatpush1.bf16.msra.mxu0 %v8103_v20  ;;  %v8186_v20 = vld [vmem:[%s11438_s1 + $0x84] ss:$8 sps:$4 sm:$0xff]  }
  0x84   : > { %2048 = vmatpush1.bf16.msra.mxu1 %v8106_v21  ;;  %989 = vmatprep.subr.bf16.mxu0 %v8112_v24  ;;  %v8189_v21 = vld [vmem:[%s11439_s2 + $0x84] ss:$8 sps:$4 sm:$0xff]   ;;  %v8192_v24 = vld [vmem:[%s11438_s1 + $0x94] ss:$8 sps:$4 sm:$0xff]  }
  0x85   : > { %2060 = vmatprep.subr.bf16.mxu1 %v8115_v25  ;;  %v8195_v25 = vld [vmem:[%s11439_s2 + $0x94] ss:$8 sps:$4 sm:$0xff]  }
  0x86   : > { %979 = vmatmul.mubr.bf16.vlgmr.msra.gmra.mrb[0].mxu0 %v520_v28 }
  0x87   : > { %2050 = vmatmul.mubr.bf16.vlgmr.msra.gmra.mrb[0].mxu1 %v520_v28  ;;  %990 = vmatpush1.bf16.msra.mxu0 %v8110_v26  ;;  %v8190_v26 = vld [vmem:[%s11438_s1 + $0x90] ss:$8 sps:$4 sm:$0xff]   ;;  %v8198_v28 = vld [vmem:[%s11438_s1 + $0xa4] ss:$8 sps:$4 sm:$0xff]  }
  0x88   : > { %2061 = vmatpush1.bf16.msra.mxu1 %v8113_v27  ;;  %991 = vmatprep.subr.bf16.mxu0 %v8119_v29  ;;  %v8193_v27 = vld [vmem:[%s11439_s2 + $0x90] ss:$8 sps:$4 sm:$0xff]   ;;  %v8201_v29 = vld [vmem:[%s11439_s2 + $0xa4] ss:$8 sps:$4 sm:$0xff]  }
  0x89   : > { %2062 = vmatprep.subr.bf16.mxu1 %v8122_v32  ;;  %1021 = vmatprep.mubr.bf16.mxu0 %v9040_v39  ;;  %v8204_v32 = vld [vmem:[%s11438_s1 + $0xb4] ss:$8 sps:$4 sm:$0xff]  }
  0x8a   : > { %2092 = vmatprep.mubr.bf16.mxu1 %v9040_v39 }
  0x8b   : > { %992 = vmatpush1.bf16.msra.mxu0 %v8117_v33  ;;  %v8207_v33 = vld [vmem:[%s11439_s2 + $0xb4] ss:$8 sps:$4 sm:$0xff]  }
  0x8c   : > { %2063 = vmatpush1.bf16.msra.mxu1 %v8120_v34  ;;  %993 = vmatprep.subr.bf16.mxu0 %v8125_v36  ;;  %v8202_v34 = vld [vmem:[%s11438_s1 + $0xb0] ss:$8 sps:$4 sm:$0xff]   ;;  %v8210_v36 = vld [vmem:[%s11438_s1 + $0xc4] ss:$8 sps:$4 sm:$0xff]  }
  0x8d   : > { %2064 = vmatprep.subr.bf16.mxu1 %v8128_v37  ;;  %v8213_v37 = vld [vmem:[%s11439_s2 + $0xc4] ss:$8 sps:$4 sm:$0xff]  }
  0x8f   : > { %994 = vmatpush1.bf16.msra.mxu0 %v8123_v40  ;;  %v8208_v40 = vld [vmem:[%s11438_s1 + $0xc0] ss:$8 sps:$4 sm:$0xff]  }
  0x90   : > { %2065 = vmatpush1.bf16.msra.mxu1 %v8126_v41  ;;  %995 = vmatprep.subr.bf16.mxu0 %v8131_v43  ;;  %v8211_v41 = vld [vmem:[%s11439_s2 + $0xc0] ss:$8 sps:$4 sm:$0xff]   ;;  %v8219_v43 = vld [vmem:[%s11439_s2 + $0xd4] ss:$8 sps:$4 sm:$0xff]  }
  0x91   : > { %2066 = vmatprep.subr.bf16.mxu1 %v8134_v44  ;;  %v8214_v44 = vld [vmem:[%s11438_s1 + $0xd0] ss:$8 sps:$4 sm:$0xff]  }
  0x93   : > { %996 = vmatpush1.bf16.msra.mxu0 %v8129_v45  ;;  %v8217_v45 = vld [vmem:[%s11439_s2 + $0xd0] ss:$8 sps:$4 sm:$0xff]  }
  0x94   : > { %2067 = vmatpush1.bf16.msra.mxu1 %v8132_v49  ;;  %1412 = vmatprep.subr.bf16.mxu0 %v8137_v50  ;;  %v8220_v49 = vld [vmem:[%s11438_s1 + $0xe0] ss:$8 sps:$4 sm:$0xff]  }
  0x95   : > { %2463 = vmatprep.subr.bf16.mxu1 %v8140_v51  ;;  %v8223_v50 = vld [vmem:[%s11439_s2 + $0xe0] ss:$8 sps:$4 sm:$0xff]   ;;  %v8228_v51 = vld [vmem:[%s11438_s1 + $0xf4] ss:$8 sps:$4 sm:$0xff]  }
  0x96   : > { %6581 = vmatmul.mubr.msk.bf16.vlgmr.msra.gmra.mrb[0].mxu0 %vm899_vm0, %v534_v53 }
  0x97   : > { %6804 = vmatmul.mubr.msk.bf16.vlgmr.msra.gmra.mrb[0].mxu1 %vm899_vm0, %v534_v53  ;;  %1413 = vmatpush1.bf16.msra.mxu0 %v8135_v52  ;;  %v8231_v52 = vld [vmem:[%s11439_s2 + $0xf4] ss:$8 sps:$4 sm:$0xff]   ;;  %v8226_v53 = vld [vmem:[%s11438_s1 + $0xf0] ss:$8 sps:$4 sm:$0xff]  }
  0x98   : > { %2464 = vmatpush1.bf16.msra.mxu1 %v8138_v55  ;;  %1414 = vmatprep.subr.bf16.mxu0 %v8144_v56  ;;  %v8229_v55 = vld [vmem:[%s11439_s2 + $0xf0] ss:$8 sps:$4 sm:$0xff]   ;;  %v8236_v56 = vld [vmem:[%s11438_s1 + $0x104] ss:$8 sps:$4 sm:$0xff]  }
  0x99   : > { %2465 = vmatprep.subr.bf16.mxu1 %v8147_v57  ;;  %1444 = vmatprep.mubr.bf16.mxu0 %v6583_v58  ;;  %v8239_v57 = vld [vmem:[%s11439_s2 + $0x104] ss:$8 sps:$4 sm:$0xff]  }
  0x9a   : > { %2495 = vmatprep.mubr.bf16.mxu1 %v6583_v58  ;;  %v9025_v58 = vld [vmem:[%s9228_s26] sm:$0xff] }
  0x9b   : > { %1415 = vmatpush1.bf16.msra.mxu0 %v8142_v59  ;;  %v6582_v59 = vcombine.low %v9025_v58, %v9560_v54  ;;  %v8245_v54 = vld [vmem:[%s11439_s2 + $0x114] ss:$8 sps:$4 sm:$0xff]  }
  0x9c   : > { %2466 = vmatpush1.bf16.msra.mxu1 %v8145_v60  ;;  %1416 = vmatprep.subr.bf16.mxu0 %v8150_v46  ;;  %v8234_v60 = vld [vmem:[%s11438_s1 + $0x100] ss:$8 sps:$4 sm:$0xff]   ;;  %v8329_v58 = vld [vmem:[%s11439_s2 + $0x1f4] ss:$8 sps:$4 sm:$0xff]  }
  0x9d   : > { %2467 = vmatprep.subr.bf16.mxu1 %v8153_v61  ;;  %v9761_v46 = vld [vmem:[%s9228_s26 + $0x1c] sm:$0x77] }
  0x9e   : > { %v8237_v61 = vld [vmem:[%s11439_s2 + $0x100] ss:$8 sps:$4 sm:$0xff]  }
  0x9f   : > { %1417 = vmatpush1.bf16.msra.mxu0 %v8148_v62  ;;  %v8242_v62 = vld [vmem:[%s11438_s1 + $0x114] ss:$8 sps:$4 sm:$0xff]  }
  0xa0   : > { %2468 = vmatpush1.bf16.msra.mxu1 %v8151_v63  ;;  %1418 = vmatprep.subr.bf16.mxu0 %v8156_v0  ;;  %v6585_v63 = vcombine.high %v9375_v38, %v9761_v46  ;;  %v8240_v0 = vld [vmem:[%s11438_s1 + $0x110] ss:$8 sps:$4 sm:$0xff]   ;;  %v8251_v38 = vld [vmem:[%s11439_s2 + $0x124] ss:$8 sps:$4 sm:$0xff]  }
  0xa1   : > { %2469 = vmatprep.subr.bf16.mxu1 %v8159_v1  ;;  %v8243_v1 = vld [vmem:[%s11439_s2 + $0x110] ss:$8 sps:$4 sm:$0xff]  }
  0xa3   : > { %1419 = vmatpush1.bf16.msra.mxu0 %v8154_v2  ;;  %v8248_v2 = vld [vmem:[%s11438_s1 + $0x124] ss:$8 sps:$4 sm:$0xff]  }
  0xa4   : > { %2470 = vmatpush1.bf16.msra.mxu1 %v8157_v3  ;;  %1420 = vmatprep.subr.bf16.mxu0 %v8162_v4  ;;  %v8246_v3 = vld [vmem:[%s11438_s1 + $0x120] ss:$8 sps:$4 sm:$0xff]  }
  0xa5   : > { %2471 = vmatprep.subr.bf16.mxu1 %v8165_v5  ;;  %v8249_v4 = vld [vmem:[%s11439_s2 + $0x120] ss:$8 sps:$4 sm:$0xff]   ;;  %v8254_v5 = vld [vmem:[%s11438_s1 + $0x134] ss:$8 sps:$4 sm:$0xff]  }
  0xa7   : > { %1421 = vmatpush1.bf16.msra.mxu0 %v8160_v6  ;;  %v8257_v6 = vld [vmem:[%s11439_s2 + $0x134] ss:$8 sps:$4 sm:$0xff]  }
  0xa8   : > { %2472 = vmatpush1.bf16.msra.mxu1 %v8163_v7  ;;  %1422 = vmatprep.subr.bf16.mxu0 %v8168_v8  ;;  %v8252_v7 = vld [vmem:[%s11438_s1 + $0x130] ss:$8 sps:$4 sm:$0xff]  }
  0xa9   : > { %2473 = vmatprep.subr.bf16.mxu1 %v8171_v9  ;;  %v8255_v8 = vld [vmem:[%s11439_s2 + $0x130] ss:$8 sps:$4 sm:$0xff]   ;;  %v8260_v9 = vld [vmem:[%s11438_s1 + $0x144] ss:$8 sps:$4 sm:$0xff]  }
  0xab   : > { %1423 = vmatpush1.bf16.msra.mxu0 %v8166_v10  ;;  %v8263_v10 = vld [vmem:[%s11439_s2 + $0x144] ss:$8 sps:$4 sm:$0xff]  }
  0xac   : > { %2474 = vmatpush1.bf16.msra.mxu1 %v8169_v11  ;;  %1424 = vmatprep.subr.bf16.mxu0 %v8174_v12  ;;  %v8258_v11 = vld [vmem:[%s11438_s1 + $0x140] ss:$8 sps:$4 sm:$0xff]  }
  0xad   : > { %2475 = vmatprep.subr.bf16.mxu1 %v8177_v13  ;;  %v8261_v12 = vld [vmem:[%s11439_s2 + $0x140] ss:$8 sps:$4 sm:$0xff]   ;;  %v8266_v13 = vld [vmem:[%s11438_s1 + $0x154] ss:$8 sps:$4 sm:$0xff]  }
  0xaf   : > { %1425 = vmatpush1.bf16.msra.mxu0 %v8172_v14  ;;  %v8269_v14 = vld [vmem:[%s11439_s2 + $0x154] ss:$8 sps:$4 sm:$0xff]  }
  0xb0   : > { %2476 = vmatpush1.bf16.msra.mxu1 %v8175_v15  ;;  %1426 = vmatprep.subr.bf16.mxu0 %v8180_v16  ;;  %v8264_v15 = vld [vmem:[%s11438_s1 + $0x150] ss:$8 sps:$4 sm:$0xff]  }
  0xb1   : > { %2477 = vmatprep.subr.bf16.mxu1 %v8183_v17  ;;  %v8267_v16 = vld [vmem:[%s11439_s2 + $0x150] ss:$8 sps:$4 sm:$0xff]   ;;  %v8272_v17 = vld [vmem:[%s11438_s1 + $0x164] ss:$8 sps:$4 sm:$0xff]  }
  0xb3   : > { %1427 = vmatpush1.bf16.msra.mxu0 %v8178_v18  ;;  %v8275_v18 = vld [vmem:[%s11439_s2 + $0x164] ss:$8 sps:$4 sm:$0xff]  }
  0xb4   : > { %2478 = vmatpush1.bf16.msra.mxu1 %v8181_v19  ;;  %1428 = vmatprep.subr.bf16.mxu0 %v8186_v20  ;;  %v8270_v19 = vld [vmem:[%s11438_s1 + $0x160] ss:$8 sps:$4 sm:$0xff]  }
  0xb5   : > { %2479 = vmatprep.subr.bf16.mxu1 %v8189_v21  ;;  %v8273_v20 = vld [vmem:[%s11439_s2 + $0x160] ss:$8 sps:$4 sm:$0xff]   ;;  %v8278_v21 = vld [vmem:[%s11438_s1 + $0x174] ss:$8 sps:$4 sm:$0xff]  }
  0xb7   : > { %1429 = vmatpush1.bf16.msra.mxu0 %v8184_v22  ;;  %v8281_v22 = vld [vmem:[%s11439_s2 + $0x174] ss:$8 sps:$4 sm:$0xff]  }
  0xb8   : > { %2480 = vmatpush1.bf16.msra.mxu1 %v8187_v23  ;;  %1430 = vmatprep.subr.bf16.mxu0 %v8192_v24  ;;  %v8276_v23 = vld [vmem:[%s11438_s1 + $0x170] ss:$8 sps:$4 sm:$0xff]  }
  0xb9   : > { %2481 = vmatprep.subr.bf16.mxu1 %v8195_v25  ;;  %v8279_v24 = vld [vmem:[%s11439_s2 + $0x170] ss:$8 sps:$4 sm:$0xff]   ;;  %v8284_v25 = vld [vmem:[%s11438_s1 + $0x184] ss:$8 sps:$4 sm:$0xff]  }
  0xbb   : > { %1431 = vmatpush1.bf16.msra.mxu0 %v8190_v26  ;;  %v8287_v26 = vld [vmem:[%s11439_s2 + $0x184] ss:$8 sps:$4 sm:$0xff]  }
  0xbc   : > { %2482 = vmatpush1.bf16.msra.mxu1 %v8193_v27  ;;  %1432 = vmatprep.subr.bf16.mxu0 %v8198_v28  ;;  %v8282_v27 = vld [vmem:[%s11438_s1 + $0x180] ss:$8 sps:$4 sm:$0xff]  }
  0xbd   : > { %2483 = vmatprep.subr.bf16.mxu1 %v8201_v29  ;;  %v8285_v28 = vld [vmem:[%s11439_s2 + $0x180] ss:$8 sps:$4 sm:$0xff]   ;;  %v8290_v29 = vld [vmem:[%s11438_s1 + $0x194] ss:$8 sps:$4 sm:$0xff]  }
  0xbf   : > { %1433 = vmatpush1.bf16.msra.mxu0 %v8196_v30  ;;  %v8293_v30 = vld [vmem:[%s11439_s2 + $0x194] ss:$8 sps:$4 sm:$0xff]  }
  0xc0   : > { %2484 = vmatpush1.bf16.msra.mxu1 %v8199_v31  ;;  %1434 = vmatprep.subr.bf16.mxu0 %v8204_v32  ;;  %v8288_v31 = vld [vmem:[%s11438_s1 + $0x190] ss:$8 sps:$4 sm:$0xff]  }
  0xc1   : > { %2485 = vmatprep.subr.bf16.mxu1 %v8207_v33  ;;  %v8291_v32 = vld [vmem:[%s11439_s2 + $0x190] ss:$8 sps:$4 sm:$0xff]   ;;  %v8296_v33 = vld [vmem:[%s11438_s1 + $0x1a4] ss:$8 sps:$4 sm:$0xff]  }
  0xc3   : > { %1435 = vmatpush1.bf16.msra.mxu0 %v8202_v34  ;;  %v8299_v34 = vld [vmem:[%s11439_s2 + $0x1a4] ss:$8 sps:$4 sm:$0xff]  }
  0xc4   : > { %2486 = vmatpush1.bf16.msra.mxu1 %v8205_v35  ;;  %1436 = vmatprep.subr.bf16.mxu0 %v8210_v36  ;;  %v8294_v35 = vld [vmem:[%s11438_s1 + $0x1a0] ss:$8 sps:$4 sm:$0xff]  }
  0xc5   : > { %2487 = vmatprep.subr.bf16.mxu1 %v8213_v37  ;;  %v8297_v36 = vld [vmem:[%s11439_s2 + $0x1a0] ss:$8 sps:$4 sm:$0xff]   ;;  %v8302_v37 = vld [vmem:[%s11438_s1 + $0x1b4] ss:$8 sps:$4 sm:$0xff]  }
  0xc7   : > { %1437 = vmatpush1.bf16.msra.mxu0 %v8208_v40  ;;  %v8305_v40 = vld [vmem:[%s11439_s2 + $0x1b4] ss:$8 sps:$4 sm:$0xff]  }
  0xc8   : > { %2488 = vmatpush1.bf16.msra.mxu1 %v8211_v41  ;;  %1438 = vmatprep.subr.bf16.mxu0 %v8216_v42  ;;  %v8300_v41 = vld [vmem:[%s11438_s1 + $0x1b0] ss:$8 sps:$4 sm:$0xff]  }
  0xc9   : > { %2489 = vmatprep.subr.bf16.mxu1 %v8219_v43  ;;  %v8303_v42 = vld [vmem:[%s11439_s2 + $0x1b0] ss:$8 sps:$4 sm:$0xff]   ;;  %v8308_v43 = vld [vmem:[%s11438_s1 + $0x1c4] ss:$8 sps:$4 sm:$0xff]  }
  0xcb   : > { %1439 = vmatpush1.bf16.msra.mxu0 %v8214_v44  ;;  %v8311_v44 = vld [vmem:[%s11439_s2 + $0x1c4] ss:$8 sps:$4 sm:$0xff]  }
  0xcc   : > { %2490 = vmatpush1.bf16.msra.mxu1 %v8217_v45  ;;  %1440 = vmatprep.subr.bf16.mxu0 %v8222_v47  ;;  %v8306_v45 = vld [vmem:[%s11438_s1 + $0x1c0] ss:$8 sps:$4 sm:$0xff]  }
  0xcd   : > { %2491 = vmatprep.subr.bf16.mxu1 %v8225_v48  ;;  %v8309_v47 = vld [vmem:[%s11439_s2 + $0x1c0] ss:$8 sps:$4 sm:$0xff]   ;;  %v8314_v48 = vld [vmem:[%s11438_s1 + $0x1d4] ss:$8 sps:$4 sm:$0xff]  }
  0xcf   : > { %1441 = vmatpush1.bf16.msra.mxu0 %v8220_v49  ;;  %v8317_v49 = vld [vmem:[%s11439_s2 + $0x1d4] ss:$8 sps:$4 sm:$0xff]  }
  0xd0   : > { %2492 = vmatpush1.bf16.msra.mxu1 %v8223_v50  ;;  %1442 = vmatprep.subr.bf16.mxu0 %v8228_v51  ;;  %v8312_v50 = vld [vmem:[%s11438_s1 + $0x1d0] ss:$8 sps:$4 sm:$0xff]  }
  0xd1   : > { %2493 = vmatprep.subr.bf16.mxu1 %v8231_v52  ;;  %v8315_v51 = vld [vmem:[%s11439_s2 + $0x1d0] ss:$8 sps:$4 sm:$0xff]   ;;  %v8320_v52 = vld [vmem:[%s11438_s1 + $0x1e4] ss:$8 sps:$4 sm:$0xff]  }
  0xd3   : > { %1443 = vmatpush1.bf16.msra.mxu0 %v8226_v53  ;;  %v8323_v53 = vld [vmem:[%s11439_s2 + $0x1e4] ss:$8 sps:$4 sm:$0xff]  }
  0xd4   : > { %2494 = vmatpush1.bf16.msra.mxu1 %v8229_v55  ;;  %1455 = vmatprep.subr.bf16.mxu0 %v8236_v56  ;;  %v8318_v55 = vld [vmem:[%s11438_s1 + $0x1e0] ss:$8 sps:$4 sm:$0xff]  }
  0xd5   : > { %2506 = vmatprep.subr.bf16.mxu1 %v8239_v57  ;;  %v8321_v56 = vld [vmem:[%s11439_s2 + $0x1e0] ss:$8 sps:$4 sm:$0xff]   ;;  %v8326_v57 = vld [vmem:[%s11438_s1 + $0x1f4] ss:$8 sps:$4 sm:$0xff]  }
  0xd6   : > { %1445 = vmatmul.mubr.bf16.vlgmr.msra.gmra.mrb[0].mxu0 %v6582_v59 }
  0xd7   : > { %2496 = vmatmul.mubr.bf16.vlgmr.msra.gmra.mrb[0].mxu1 %v6582_v59  ;;  %1456 = vmatpush1.bf16.msra.mxu0 %v8234_v60  ;;  %v8324_v59 = vld [vmem:[%s11438_s1 + $0x1f0] ss:$8 sps:$4 sm:$0xff]  }
  0xd8   : > { %2507 = vmatpush1.bf16.msra.mxu1 %v8237_v61  ;;  %1457 = vmatprep.subr.bf16.mxu0 %v8242_v62  ;;  %v8327_v60 = vld [vmem:[%s11439_s2 + $0x1f0] ss:$8 sps:$4 sm:$0xff]   ;;  %v8334_v61 = vld [vmem:[%s11438_s1 + $0x204] ss:$8 sps:$4 sm:$0xff]  }
  0xd9   : > { %2508 = vmatprep.subr.bf16.mxu1 %v8245_v54  ;;  %1487 = vmatprep.mubr.bf16.mxu0 %v6585_v63  ;;  %v8337_v62 = vld [vmem:[%s11439_s2 + $0x204] ss:$8 sps:$4 sm:$0xff]  }
  0xda   : > { %2538 = vmatprep.mubr.bf16.mxu1 %v6585_v63  ;;  %v9026_v54 = vld [vmem:[%s9228_s26 + $0x8] sm:$0xff] }
  0xdb   : > { %1458 = vmatpush1.bf16.msra.mxu0 %v8240_v0  ;;  %v6584_v63 = vcombine.low %v9026_v54, %v9761_v46  ;;  %v8332_v0 = vld [vmem:[%s11438_s1 + $0x200] ss:$8 sps:$4 sm:$0xff]   ;;  %v8343_v46 = vld [vmem:[%s11439_s2 + $0x214] ss:$8 sps:$4 sm:$0xff]   ;;  %v8419_v54 = vld [vmem:[%s11438_s1 + $0x524] ss:$8 sps:$4 sm:$0xff]  }
  0xdc   : > { %2509 = vmatpush1.bf16.msra.mxu1 %v8243_v1  ;;  %1459 = vmatprep.subr.bf16.mxu0 %v8248_v2  ;;  %v8335_v1 = vld [vmem:[%s11439_s2 + $0x200] ss:$8 sps:$4 sm:$0xff]   ;;  %v8340_v2 = vld [vmem:[%s11438_s1 + $0x214] ss:$8 sps:$4 sm:$0xff]  }
  0xdd   : > { %2510 = vmatprep.subr.bf16.mxu1 %v8251_v38  ;;  %v8338_v38 = vld [vmem:[%s11438_s1 + $0x210] ss:$8 sps:$4 sm:$0xff]  }
  0xdf   : > { %1460 = vmatpush1.bf16.msra.mxu0 %v8246_v3  ;;  %v8341_v3 = vld [vmem:[%s11439_s2 + $0x210] ss:$8 sps:$4 sm:$0xff]  }
  0xe0   : > { %2511 = vmatpush1.bf16.msra.mxu1 %v8249_v4  ;;  %1461 = vmatprep.subr.bf16.mxu0 %v8254_v5  ;;  %v8346_v4 = vld [vmem:[%s11438_s1 + $0x224] ss:$8 sps:$4 sm:$0xff]  }
  0xe1   : > { %2512 = vmatprep.subr.bf16.mxu1 %v8257_v6  ;;  %v8349_v5 = vld [vmem:[%s11439_s2 + $0x224] ss:$8 sps:$4 sm:$0xff]   ;;  %v8344_v6 = vld [vmem:[%s11438_s1 + $0x220] ss:$8 sps:$4 sm:$0xff]  }
  0xe3   : > { %1462 = vmatpush1.bf16.msra.mxu0 %v8252_v7  ;;  %v8347_v7 = vld [vmem:[%s11439_s2 + $0x220] ss:$8 sps:$4 sm:$0xff]  }
  0xe4   : > { %2513 = vmatpush1.bf16.msra.mxu1 %v8255_v8  ;;  %1463 = vmatprep.subr.bf16.mxu0 %v8260_v9  ;;  %v8352_v8 = vld [vmem:[%s11438_s1 + $0x234] ss:$8 sps:$4 sm:$0xff]  }
  0xe5   : > { %2514 = vmatprep.subr.bf16.mxu1 %v8263_v10  ;;  %v8355_v9 = vld [vmem:[%s11439_s2 + $0x234] ss:$8 sps:$4 sm:$0xff]   ;;  %v9995_v10 = vld [vmem:[%s9228_s26] sm:$0xee] }
  0xe7   : > { %1464 = vmatpush1.bf16.msra.mxu0 %v8258_v11  ;;  %v8350_v11 = vld [vmem:[%s11438_s1 + $0x230] ss:$8 sps:$4 sm:$0xff]  }
  0xe8   : > { %2515 = vmatpush1.bf16.msra.mxu1 %v8261_v12  ;;  %1465 = vmatprep.subr.bf16.mxu0 %v8266_v13  ;;  %v8353_v12 = vld [vmem:[%s11439_s2 + $0x230] ss:$8 sps:$4 sm:$0xff]   ;;  %v258_v13 = vld [vmem:[%s9228_s26 + $0x24] sm:$0x7] }
  0xe9   : > { %2516 = vmatprep.subr.bf16.mxu1 %v8269_v14  ;;  %v8358_v14 = vld [vmem:[%s11438_s1 + $0x484] ss:$8 sps:$4 sm:$0xff]  }
  0xeb   : > { %1466 = vmatpush1.bf16.msra.mxu0 %v8264_v15  ;;  %v8361_v15 = vld [vmem:[%s11439_s2 + $0x484] ss:$8 sps:$4 sm:$0xff]  }
  0xec   : > { %2517 = vmatpush1.bf16.msra.mxu1 %v8267_v16  ;;  %1467 = vmatprep.subr.bf16.mxu0 %v8272_v17  ;;  %v10011_v16 = vld [vmem:[%s9228_s26 + $0x14] sm:$0xff] }
  0xed   : > { %2518 = vmatprep.subr.bf16.mxu1 %v8275_v18  ;;  %v6951_v17 = vcombine.high %v9995_v10, %v10011_v16  ;;  %v9028_v18 = vld [vmem:[%s9228_s26 + $0x10] sm:$0xf] }
  0xef   : > { %1468 = vmatpush1.bf16.msra.mxu0 %v8270_v19  ;;  %v6586_v19 = vcombine.low %v9028_v18, %v258_v13  ;;  %v8443_v13 = vld [vmem:[%s11438_s1 + $0x564] ss:$8 sps:$4 sm:$0xff]   ;;  %v8449_v18 = vld [vmem:[%s11438_s1 + $0x574] ss:$8 sps:$4 sm:$0xff]  }
  0xf0   : > { %2519 = vmatpush1.bf16.msra.mxu1 %v8273_v20  ;;  %1469 = vmatprep.subr.bf16.mxu0 %v8278_v21  ;;  %v8356_v20 = vld [vmem:[%s11438_s1 + $0x480] ss:$8 sps:$4 sm:$0xff]  }
  0xf1   : > { %2520 = vmatprep.subr.bf16.mxu1 %v8281_v22  ;;  %v8359_v21 = vld [vmem:[%s11439_s2 + $0x480] ss:$8 sps:$4 sm:$0xff]   ;;  %v8365_v22 = vld [vmem:[%s11438_s1 + $0x494] ss:$8 sps:$4 sm:$0xff]  }
  0xf3   : > { %1470 = vmatpush1.bf16.msra.mxu0 %v8276_v23  ;;  %v8368_v23 = vld [vmem:[%s11439_s2 + $0x494] ss:$8 sps:$4 sm:$0xff]  }
  0xf4   : > { %2521 = vmatpush1.bf16.msra.mxu1 %v8279_v24  ;;  %1471 = vmatprep.subr.bf16.mxu0 %v8284_v25  ;;  %v2682_v24 = vrot.slane %v6951_v17, 1  ;;  %v8363_v25 = vld [vmem:[%s11438_s1 + $0x490] ss:$8 sps:$4 sm:$0xff]   ;;  %v8444_v17 = vld [vmem:[%s11439_s2 + $0x560] ss:$8 sps:$4 sm:$0xff]  }
  0xf5   : > { %2522 = vmatprep.subr.bf16.mxu1 %v8287_v26  ;;  %v8366_v26 = vld [vmem:[%s11439_s2 + $0x490] ss:$8 sps:$4 sm:$0xff]  }
  0xf7   : > { %1472 = vmatpush1.bf16.msra.mxu0 %v8282_v27  ;;  %v8371_v27 = vld [vmem:[%s11438_s1 + $0x4a4] ss:$8 sps:$4 sm:$0xff]  }
  0xf8   : > { %2523 = vmatpush1.bf16.msra.mxu1 %v8285_v28  ;;  %1473 = vmatprep.subr.bf16.mxu0 %v8290_v29  ;;  %v8374_v28 = vld [vmem:[%s11439_s2 + $0x4a4] ss:$8 sps:$4 sm:$0xff]   ;;  %v8369_v29 = vld [vmem:[%s11438_s1 + $0x4a0] ss:$8 sps:$4 sm:$0xff]  }
  0xf9   : > { %2524 = vmatprep.subr.bf16.mxu1 %v8293_v30  ;;  %v8372_v30 = vld [vmem:[%s11439_s2 + $0x4a0] ss:$8 sps:$4 sm:$0xff]  }
  0xfb   : > { %1474 = vmatpush1.bf16.msra.mxu0 %v8288_v31  ;;  %v8377_v31 = vld [vmem:[%s11438_s1 + $0x4b4] ss:$8 sps:$4 sm:$0xff]  }
  0xfc   : > { %2525 = vmatpush1.bf16.msra.mxu1 %v8291_v32  ;;  %1475 = vmatprep.subr.bf16.mxu0 %v8296_v33  ;;  %v8380_v32 = vld [vmem:[%s11439_s2 + $0x4b4] ss:$8 sps:$4 sm:$0xff]   ;;  %v8375_v33 = vld [vmem:[%s11438_s1 + $0x4b0] ss:$8 sps:$4 sm:$0xff]  }
  0xfd   : > { %2526 = vmatprep.subr.bf16.mxu1 %v8299_v34  ;;  %v8378_v34 = vld [vmem:[%s11439_s2 + $0x4b0] ss:$8 sps:$4 sm:$0xff]  }
  0xff   : > { %1476 = vmatpush1.bf16.msra.mxu0 %v8294_v35  ;;  %v8383_v35 = vld [vmem:[%s11438_s1 + $0x4c4] ss:$8 sps:$4 sm:$0xff]  }
 0x100   : > { %2527 = vmatpush1.bf16.msra.mxu1 %v8297_v36  ;;  %1477 = vmatprep.subr.bf16.mxu0 %v8302_v37  ;;  %v8386_v36 = vld [vmem:[%s11439_s2 + $0x4c4] ss:$8 sps:$4 sm:$0xff]   ;;  %v8381_v37 = vld [vmem:[%s11438_s1 + $0x4c0] ss:$8 sps:$4 sm:$0xff]  }
 0x101   : > { %2528 = vmatprep.subr.bf16.mxu1 %v8305_v40  ;;  %v8384_v40 = vld [vmem:[%s11439_s2 + $0x4c0] ss:$8 sps:$4 sm:$0xff]  }
 0x103   : > { %1478 = vmatpush1.bf16.msra.mxu0 %v8300_v41  ;;  %v8389_v41 = vld [vmem:[%s11438_s1 + $0x4d4] ss:$8 sps:$4 sm:$0xff]  }
 0x104   : > { %2529 = vmatpush1.bf16.msra.mxu1 %v8303_v42  ;;  %1479 = vmatprep.subr.bf16.mxu0 %v8308_v43  ;;  %v8392_v42 = vld [vmem:[%s11439_s2 + $0x4d4] ss:$8 sps:$4 sm:$0xff]   ;;  %v8387_v43 = vld [vmem:[%s11438_s1 + $0x4d0] ss:$8 sps:$4 sm:$0xff]  }
 0x105   : > { %2530 = vmatprep.subr.bf16.mxu1 %v8311_v44  ;;  %v8390_v44 = vld [vmem:[%s11439_s2 + $0x4d0] ss:$8 sps:$4 sm:$0xff]  }
 0x107   : > { %1480 = vmatpush1.bf16.msra.mxu0 %v8306_v45  ;;  %v8395_v45 = vld [vmem:[%s11438_s1 + $0x4e4] ss:$8 sps:$4 sm:$0xff]  }
 0x108   : > { %2531 = vmatpush1.bf16.msra.mxu1 %v8309_v47  ;;  %1481 = vmatprep.subr.bf16.mxu0 %v8314_v48  ;;  %v8398_v47 = vld [vmem:[%s11439_s2 + $0x4e4] ss:$8 sps:$4 sm:$0xff]   ;;  %v8393_v48 = vld [vmem:[%s11438_s1 + $0x4e0] ss:$8 sps:$4 sm:$0xff]  }
 0x109   : > { %2532 = vmatprep.subr.bf16.mxu1 %v8317_v49  ;;  %v8396_v49 = vld [vmem:[%s11439_s2 + $0x4e0] ss:$8 sps:$4 sm:$0xff]  }
 0x10b   : > { %1482 = vmatpush1.bf16.msra.mxu0 %v8312_v50  ;;  %v8401_v50 = vld [vmem:[%s11438_s1 + $0x4f4] ss:$8 sps:$4 sm:$0xff]  }
 0x10c   : > { %2533 = vmatpush1.bf16.msra.mxu1 %v8315_v51  ;;  %1483 = vmatprep.subr.bf16.mxu0 %v8320_v52  ;;  %v8404_v51 = vld [vmem:[%s11439_s2 + $0x4f4] ss:$8 sps:$4 sm:$0xff]   ;;  %v8399_v52 = vld [vmem:[%s11438_s1 + $0x4f0] ss:$8 sps:$4 sm:$0xff]  }
 0x10d   : > { %2534 = vmatprep.subr.bf16.mxu1 %v8323_v53  ;;  %v8402_v53 = vld [vmem:[%s11439_s2 + $0x4f0] ss:$8 sps:$4 sm:$0xff]  }
 0x10f   : > { %1484 = vmatpush1.bf16.msra.mxu0 %v8318_v55  ;;  %v8407_v55 = vld [vmem:[%s11438_s1 + $0x504] ss:$8 sps:$4 sm:$0xff]  }
 0x110   : > { %2535 = vmatpush1.bf16.msra.mxu1 %v8321_v56  ;;  %1485 = vmatprep.subr.bf16.mxu0 %v8326_v57  ;;  %v8410_v56 = vld [vmem:[%s11439_s2 + $0x504] ss:$8 sps:$4 sm:$0xff]   ;;  %v8405_v57 = vld [vmem:[%s11438_s1 + $0x500] ss:$8 sps:$4 sm:$0xff]  }
 0x111   : > { %2536 = vmatprep.subr.bf16.mxu1 %v8329_v58  ;;  %v8408_v58 = vld [vmem:[%s11439_s2 + $0x500] ss:$8 sps:$4 sm:$0xff]  }
 0x113   : > { %1486 = vmatpush1.bf16.msra.mxu0 %v8324_v59  ;;  %v8413_v59 = vld [vmem:[%s11438_s1 + $0x514] ss:$8 sps:$4 sm:$0xff]  }
 0x114   : > { %2537 = vmatpush1.bf16.msra.mxu1 %v8327_v60  ;;  %1498 = vmatprep.subr.bf16.mxu0 %v8334_v61  ;;  %v8416_v60 = vld [vmem:[%s11439_s2 + $0x514] ss:$8 sps:$4 sm:$0xff]   ;;  %v8411_v61 = vld [vmem:[%s11438_s1 + $0x510] ss:$8 sps:$4 sm:$0xff]  }
 0x115   : > { %2549 = vmatprep.subr.bf16.mxu1 %v8337_v62  ;;  %v8414_v62 = vld [vmem:[%s11439_s2 + $0x510] ss:$8 sps:$4 sm:$0xff]  }
 0x116   : > { %1488 = vmatmul.mubr.bf16.vlgmr.msra.gmra.mrb[0].mxu0 %v6584_v63 }
 0x117   : > { %2539 = vmatmul.mubr.bf16.vlgmr.msra.gmra.mrb[0].mxu1 %v6584_v63  ;;  %1499 = vmatpush1.bf16.msra.mxu0 %v8332_v0  ;;  %v8422_v63 = vld [vmem:[%s11439_s2 + $0x524] ss:$8 sps:$4 sm:$0xff]   ;;  %v8417_v0 = vld [vmem:[%s11438_s1 + $0x520] ss:$8 sps:$4 sm:$0xff]  }
 0x118   : > { %2550 = vmatpush1.bf16.msra.mxu1 %v8335_v1  ;;  %1500 = vmatprep.subr.bf16.mxu0 %v8340_v2  ;;  %v8420_v1 = vld [vmem:[%s11439_s2 + $0x520] ss:$8 sps:$4 sm:$0xff]   ;;  %v8425_v2 = vld [vmem:[%s11438_s1 + $0x534] ss:$8 sps:$4 sm:$0xff]  }
 0x119   : > { %2551 = vmatprep.subr.bf16.mxu1 %v8343_v46  ;;  %1530 = vmatprep.mubr.bf16.mxu0 %v9040_v39  ;;  %v8428_v46 = vld [vmem:[%s11439_s2 + $0x534] ss:$8 sps:$4 sm:$0xff]  }
 0x11a   : > { %2581 = vmatprep.mubr.bf16.mxu1 %v9040_v39 }
 0x11b   : > { %1501 = vmatpush1.bf16.msra.mxu0 %v8338_v38  ;;  %v8423_v38 = vld [vmem:[%s11438_s1 + $0x530] ss:$8 sps:$4 sm:$0xff]  }
 0x11c   : > { %2552 = vmatpush1.bf16.msra.mxu1 %v8341_v3  ;;  %1502 = vmatprep.subr.bf16.mxu0 %v8346_v4  ;;  %v8426_v3 = vld [vmem:[%s11439_s2 + $0x530] ss:$8 sps:$4 sm:$0xff]   ;;  %v8431_v4 = vld [vmem:[%s11438_s1 + $0x544] ss:$8 sps:$4 sm:$0xff]  }
 0x11d   : > { %2553 = vmatprep.subr.bf16.mxu1 %v8349_v5  ;;  %v8434_v5 = vld [vmem:[%s11439_s2 + $0x544] ss:$8 sps:$4 sm:$0xff]  }
 0x11f   : > { %1503 = vmatpush1.bf16.msra.mxu0 %v8344_v6  ;;  %v8429_v6 = vld [vmem:[%s11438_s1 + $0x540] ss:$8 sps:$4 sm:$0xff]  }
 0x120   : > { %2554 = vmatpush1.bf16.msra.mxu1 %v8347_v7  ;;  %1504 = vmatprep.subr.bf16.mxu0 %v8352_v8  ;;  %v8432_v7 = vld [vmem:[%s11439_s2 + $0x540] ss:$8 sps:$4 sm:$0xff]   ;;  %v8437_v8 = vld [vmem:[%s11438_s1 + $0x554] ss:$8 sps:$4 sm:$0xff]  }
 0x121   : > { %2555 = vmatprep.subr.bf16.mxu1 %v8355_v9  ;;  %v8440_v9 = vld [vmem:[%s11439_s2 + $0x554] ss:$8 sps:$4 sm:$0xff]  }
 0x123   : > { %1505 = vmatpush1.bf16.msra.mxu0 %v8350_v11  ;;  %v8435_v11 = vld [vmem:[%s11438_s1 + $0x550] ss:$8 sps:$4 sm:$0xff]  }
 0x124   : > { %2556 = vmatpush1.bf16.msra.mxu1 %v8353_v12  ;;  %3053 = vmatprep.subr.bf16.mxu0 %v8358_v14  ;;  %v8438_v12 = vld [vmem:[%s11439_s2 + $0x550] ss:$8 sps:$4 sm:$0xff]   ;;  %v8446_v14 = vld [vmem:[%s11439_s2 + $0x564] ss:$8 sps:$4 sm:$0xff]  }
 0x125   : > { %3619 = vmatprep.subr.bf16.mxu1 %v8361_v15  ;;  %v8441_v15 = vld [vmem:[%s11438_s1 + $0x560] ss:$8 sps:$4 sm:$0xff]  }
 0x126   : > { %6659 = vmatmul.mubr.msk.bf16.vlgmr.msra.gmra.mrb[0].mxu0 %vm899_vm0, %v6586_v19 }
 0x127   : > { %6877 = vmatmul.mubr.msk.bf16.vlgmr.msra.gmra.mrb[0].mxu1 %vm899_vm0, %v6586_v19  ;;  %3054 = vmatpush1.bf16.msra.mxu0 %v8356_v20  ;;  %v8452_v19 = vld [vmem:[%s11439_s2 + $0x574] ss:$8 sps:$4 sm:$0xff]   ;;  %v10199_v20 = vld [vmem:[%s9228_s26 + $0x8] sm:$0xee] }
 0x128   : > { %3620 = vmatpush1.bf16.msra.mxu1 %v8359_v21  ;;  %3055 = vmatprep.subr.bf16.mxu0 %v8365_v22  ;;  %v6950_v21 = vcombine.low %v9995_v10, %v10011_v16  ;;  %v8447_v22 = vld [vmem:[%s11438_s1 + $0x570] ss:$8 sps:$4 sm:$0xff]   ;;  %v8460_v10 = vld [vmem:[%s11439_s2 + $0x584] ss:$8 sps:$4 sm:$0xff]   ;;  %v10216_v16 = vld [vmem:[%s9228_s26 + $0x1c] sm:$0xff] }
 0x129   : > { %3621 = vmatprep.subr.bf16.mxu1 %v8368_v23  ;;  %3085 = vmatprep.mubr.bf16.mxu0 %v2682_v24  ;;  %v8450_v23 = vld [vmem:[%s11439_s2 + $0x570] ss:$8 sps:$4 sm:$0xff]  }
 0x12a   : > { %3651 = vmatprep.mubr.bf16.mxu1 %v2682_v24  ;;  %v8457_v24 = vld [vmem:[%s11438_s1 + $0x584] ss:$8 sps:$4 sm:$0xff]  }
 0x12b   : > { %3056 = vmatpush1.bf16.msra.mxu0 %v8363_v25  ;;  %v6953_v25 = vcombine.high %v10199_v20, %v10216_v16 }
 0x12c   : > { %3622 = vmatpush1.bf16.msra.mxu1 %v8366_v26  ;;  %3057 = vmatprep.subr.bf16.mxu0 %v8371_v27  ;;  %v2681_v26 = vrot.slane %v6950_v21, 1  ;;  %v8455_v27 = vld [vmem:[%s11438_s1 + $0x580] ss:$8 sps:$4 sm:$0xff]   ;;  %v8536_v21 = vld [vmem:[%s11439_s2 + $0x650] ss:$8 sps:$4 sm:$0xff]  }
 0x12d   : > { %3623 = vmatprep.subr.bf16.mxu1 %v8374_v28  ;;  %v8458_v28 = vld [vmem:[%s11439_s2 + $0x580] ss:$8 sps:$4 sm:$0xff]  }
 0x12f   : > { %3058 = vmatpush1.bf16.msra.mxu0 %v8369_v29  ;;  %v8463_v29 = vld [vmem:[%s11438_s1 + $0x594] ss:$8 sps:$4 sm:$0xff]  }
 0x130   : > { %3624 = vmatpush1.bf16.msra.mxu1 %v8372_v30  ;;  %3059 = vmatprep.subr.bf16.mxu0 %v8377_v31  ;;  %v8466_v30 = vld [vmem:[%s11439_s2 + $0x594] ss:$8 sps:$4 sm:$0xff]   ;;  %v2684_v31 = vrot.slane %v6953_v25, 1 }
 0x131   : > { %3625 = vmatprep.subr.bf16.mxu1 %v8380_v32  ;;  %v8461_v32 = vld [vmem:[%s11438_s1 + $0x590] ss:$8 sps:$4 sm:$0xff]   ;;  %v8547_v25 = vld [vmem:[%s11438_s1 + $0x674] ss:$8 sps:$4 sm:$0xff]  }
 0x133   : > { %3060 = vmatpush1.bf16.msra.mxu0 %v8375_v33  ;;  %v8464_v33 = vld [vmem:[%s11439_s2 + $0x590] ss:$8 sps:$4 sm:$0xff]  }
 0x134   : > { %3626 = vmatpush1.bf16.msra.mxu1 %v8378_v34  ;;  %3061 = vmatprep.subr.bf16.mxu0 %v8383_v35  ;;  %v8469_v34 = vld [vmem:[%s11438_s1 + $0x5a4] ss:$8 sps:$4 sm:$0xff]  }
 0x135   : > { %3627 = vmatprep.subr.bf16.mxu1 %v8386_v36  ;;  %v8472_v35 = vld [vmem:[%s11439_s2 + $0x5a4] ss:$8 sps:$4 sm:$0xff]   ;;  %v8467_v36 = vld [vmem:[%s11438_s1 + $0x5a0] ss:$8 sps:$4 sm:$0xff]  }
 0x137   : > { %3062 = vmatpush1.bf16.msra.mxu0 %v8381_v37  ;;  %v8470_v37 = vld [vmem:[%s11439_s2 + $0x5a0] ss:$8 sps:$4 sm:$0xff]  }
 0x138   : > { %3628 = vmatpush1.bf16.msra.mxu1 %v8384_v40  ;;  %3063 = vmatprep.subr.bf16.mxu0 %v8389_v41  ;;  %v8475_v40 = vld [vmem:[%s11438_s1 + $0x5b4] ss:$8 sps:$4 sm:$0xff]  }
 0x139   : > { %3629 = vmatprep.subr.bf16.mxu1 %v8392_v42  ;;  %v8478_v41 = vld [vmem:[%s11439_s2 + $0x5b4] ss:$8 sps:$4 sm:$0xff]   ;;  %v8473_v42 = vld [vmem:[%s11438_s1 + $0x5b0] ss:$8 sps:$4 sm:$0xff]  }
 0x13b   : > { %3064 = vmatpush1.bf16.msra.mxu0 %v8387_v43  ;;  %v8476_v43 = vld [vmem:[%s11439_s2 + $0x5b0] ss:$8 sps:$4 sm:$0xff]  }
 0x13c   : > { %3630 = vmatpush1.bf16.msra.mxu1 %v8390_v44  ;;  %3065 = vmatprep.subr.bf16.mxu0 %v8395_v45  ;;  %v8481_v44 = vld [vmem:[%s11438_s1 + $0x5c4] ss:$8 sps:$4 sm:$0xff]  }
 0x13d   : > { %3631 = vmatprep.subr.bf16.mxu1 %v8398_v47  ;;  %v8484_v45 = vld [vmem:[%s11439_s2 + $0x5c4] ss:$8 sps:$4 sm:$0xff]   ;;  %v8479_v47 = vld [vmem:[%s11438_s1 + $0x5c0] ss:$8 sps:$4 sm:$0xff]  }
 0x13f   : > { %3066 = vmatpush1.bf16.msra.mxu0 %v8393_v48  ;;  %v8482_v48 = vld [vmem:[%s11439_s2 + $0x5c0] ss:$8 sps:$4 sm:$0xff]  }
 0x140   : > { %3632 = vmatpush1.bf16.msra.mxu1 %v8396_v49  ;;  %3067 = vmatprep.subr.bf16.mxu0 %v8401_v50  ;;  %v8487_v49 = vld [vmem:[%s11438_s1 + $0x5d4] ss:$8 sps:$4 sm:$0xff]  }
 0x141   : > { %3633 = vmatprep.subr.bf16.mxu1 %v8404_v51  ;;  %v8490_v50 = vld [vmem:[%s11439_s2 + $0x5d4] ss:$8 sps:$4 sm:$0xff]   ;;  %v8485_v51 = vld [vmem:[%s11438_s1 + $0x5d0] ss:$8 sps:$4 sm:$0xff]  }
 0x143   : > { %3068 = vmatpush1.bf16.msra.mxu0 %v8399_v52  ;;  %v8488_v52 = vld [vmem:[%s11439_s2 + $0x5d0] ss:$8 sps:$4 sm:$0xff]  }
 0x144   : > { %3634 = vmatpush1.bf16.msra.mxu1 %v8402_v53  ;;  %3069 = vmatprep.subr.bf16.mxu0 %v8407_v55  ;;  %v8493_v53 = vld [vmem:[%s11438_s1 + $0x5e4] ss:$8 sps:$4 sm:$0xff]  }
 0x145   : > { %3635 = vmatprep.subr.bf16.mxu1 %v8410_v56  ;;  %v8496_v55 = vld [vmem:[%s11439_s2 + $0x5e4] ss:$8 sps:$4 sm:$0xff]   ;;  %v8491_v56 = vld [vmem:[%s11438_s1 + $0x5e0] ss:$8 sps:$4 sm:$0xff]  }
 0x147   : > { %3070 = vmatpush1.bf16.msra.mxu0 %v8405_v57  ;;  %v8494_v57 = vld [vmem:[%s11439_s2 + $0x5e0] ss:$8 sps:$4 sm:$0xff]  }
 0x148   : > { %3636 = vmatpush1.bf16.msra.mxu1 %v8408_v58  ;;  %3071 = vmatprep.subr.bf16.mxu0 %v8413_v59  ;;  %v8499_v58 = vld [vmem:[%s11438_s1 + $0x5f4] ss:$8 sps:$4 sm:$0xff]  }
 0x149   : > { %3637 = vmatprep.subr.bf16.mxu1 %v8416_v60  ;;  %v8502_v59 = vld [vmem:[%s11439_s2 + $0x5f4] ss:$8 sps:$4 sm:$0xff]   ;;  %v8497_v60 = vld [vmem:[%s11438_s1 + $0x5f0] ss:$8 sps:$4 sm:$0xff]  }
 0x14b   : > { %3072 = vmatpush1.bf16.msra.mxu0 %v8411_v61  ;;  %v8500_v61 = vld [vmem:[%s11439_s2 + $0x5f0] ss:$8 sps:$4 sm:$0xff]  }
 0x14c   : > { %3638 = vmatpush1.bf16.msra.mxu1 %v8414_v62  ;;  %3073 = vmatprep.subr.bf16.mxu0 %v8419_v54  ;;  %v8505_v62 = vld [vmem:[%s11438_s1 + $0x604] ss:$8 sps:$4 sm:$0xff]  }
 0x14d   : > { %3639 = vmatprep.subr.bf16.mxu1 %v8422_v63  ;;  %v8508_v54 = vld [vmem:[%s11439_s2 + $0x604] ss:$8 sps:$4 sm:$0xff]   ;;  %v8503_v63 = vld [vmem:[%s11438_s1 + $0x600] ss:$8 sps:$4 sm:$0xff]  }
 0x14f   : > { %3074 = vmatpush1.bf16.msra.mxu0 %v8417_v0  ;;  %v8506_v0 = vld [vmem:[%s11439_s2 + $0x600] ss:$8 sps:$4 sm:$0xff]  }
 0x150   : > { %3640 = vmatpush1.bf16.msra.mxu1 %v8420_v1  ;;  %3075 = vmatprep.subr.bf16.mxu0 %v8425_v2  ;;  %v8511_v1 = vld [vmem:[%s11438_s1 + $0x614] ss:$8 sps:$4 sm:$0xff]  }
 0x151   : > { %3641 = vmatprep.subr.bf16.mxu1 %v8428_v46  ;;  %v8514_v2 = vld [vmem:[%s11439_s2 + $0x614] ss:$8 sps:$4 sm:$0xff]   ;;  %v8509_v46 = vld [vmem:[%s11438_s1 + $0x610] ss:$8 sps:$4 sm:$0xff]  }
 0x153   : > { %3076 = vmatpush1.bf16.msra.mxu0 %v8423_v38  ;;  %v8512_v38 = vld [vmem:[%s11439_s2 + $0x610] ss:$8 sps:$4 sm:$0xff]  }
 0x154   : > { %3642 = vmatpush1.bf16.msra.mxu1 %v8426_v3  ;;  %3077 = vmatprep.subr.bf16.mxu0 %v8431_v4  ;;  %v8517_v3 = vld [vmem:[%s11438_s1 + $0x624] ss:$8 sps:$4 sm:$0xff]  }
 0x155   : > { %3643 = vmatprep.subr.bf16.mxu1 %v8434_v5  ;;  %v8520_v4 = vld [vmem:[%s11439_s2 + $0x624] ss:$8 sps:$4 sm:$0xff]   ;;  %v8515_v5 = vld [vmem:[%s11438_s1 + $0x620] ss:$8 sps:$4 sm:$0xff]  }
 0x157   : > { %3078 = vmatpush1.bf16.msra.mxu0 %v8429_v6  ;;  %v8518_v6 = vld [vmem:[%s11439_s2 + $0x620] ss:$8 sps:$4 sm:$0xff]  }
 0x158   : > { %3644 = vmatpush1.bf16.msra.mxu1 %v8432_v7  ;;  %3079 = vmatprep.subr.bf16.mxu0 %v8437_v8  ;;  %v8523_v7 = vld [vmem:[%s11438_s1 + $0x634] ss:$8 sps:$4 sm:$0xff]  }
 0x159   : > { %3645 = vmatprep.subr.bf16.mxu1 %v8440_v9  ;;  %v8526_v8 = vld [vmem:[%s11439_s2 + $0x634] ss:$8 sps:$4 sm:$0xff]   ;;  %v8521_v9 = vld [vmem:[%s11438_s1 + $0x630] ss:$8 sps:$4 sm:$0xff]  }
 0x15b   : > { %3080 = vmatpush1.bf16.msra.mxu0 %v8435_v11  ;;  %v8524_v11 = vld [vmem:[%s11439_s2 + $0x630] ss:$8 sps:$4 sm:$0xff]  }
 0x15c   : > { %3646 = vmatpush1.bf16.msra.mxu1 %v8438_v12  ;;  %3081 = vmatprep.subr.bf16.mxu0 %v8443_v13  ;;  %v8529_v12 = vld [vmem:[%s11438_s1 + $0x644] ss:$8 sps:$4 sm:$0xff]  }
 0x15d   : > { %3647 = vmatprep.subr.bf16.mxu1 %v8446_v14  ;;  %v8532_v13 = vld [vmem:[%s11439_s2 + $0x644] ss:$8 sps:$4 sm:$0xff]   ;;  %v8527_v14 = vld [vmem:[%s11438_s1 + $0x640] ss:$8 sps:$4 sm:$0xff]  }
 0x15f   : > { %3082 = vmatpush1.bf16.msra.mxu0 %v8441_v15  ;;  %v8530_v15 = vld [vmem:[%s11439_s2 + $0x640] ss:$8 sps:$4 sm:$0xff]  }
 0x160   : > { %3648 = vmatpush1.bf16.msra.mxu1 %v8444_v17  ;;  %3083 = vmatprep.subr.bf16.mxu0 %v8449_v18  ;;  %v8535_v17 = vld [vmem:[%s11438_s1 + $0x654] ss:$8 sps:$4 sm:$0xff]  }
 0x161   : > { %3649 = vmatprep.subr.bf16.mxu1 %v8452_v19  ;;  %v8538_v18 = vld [vmem:[%s11439_s2 + $0x654] ss:$8 sps:$4 sm:$0xff]   ;;  %v8533_v19 = vld [vmem:[%s11438_s1 + $0x650] ss:$8 sps:$4 sm:$0xff]  }
 0x163   : > { %3084 = vmatpush1.bf16.msra.mxu0 %v8447_v22  ;;  %v8541_v22 = vld [vmem:[%s11438_s1 + $0x664] ss:$8 sps:$4 sm:$0xff]  }
 0x164   : > { %3650 = vmatpush1.bf16.msra.mxu1 %v8450_v23  ;;  %3096 = vmatprep.subr.bf16.mxu0 %v8457_v24  ;;  %v8544_v23 = vld [vmem:[%s11439_s2 + $0x664] ss:$8 sps:$4 sm:$0xff]   ;;  %v8539_v24 = vld [vmem:[%s11438_s1 + $0x660] ss:$8 sps:$4 sm:$0xff]  }
 0x165   : > { %3662 = vmatprep.subr.bf16.mxu1 %v8460_v10  ;;  %v8542_v10 = vld [vmem:[%s11439_s2 + $0x660] ss:$8 sps:$4 sm:$0xff]  }
 0x166   : > { %3086 = vmatmul.mubr.bf16.vlgmr.msra.gmra.mrb[0].mxu0 %v2681_v26 }
 0x167   : > { %3652 = vmatmul.mubr.bf16.vlgmr.msra.gmra.mrb[0].mxu1 %v2681_v26  ;;  %3097 = vmatpush1.bf16.msra.mxu0 %v8455_v27  ;;  %v8550_v26 = vld [vmem:[%s11439_s2 + $0x674] ss:$8 sps:$4 sm:$0xff]   ;;  %v6952_v27 = vcombine.low %v10199_v20, %v10216_v16  ;;  %v8558_v20 = vld [vmem:[%s11439_s2 + $0x684] ss:$8 sps:$4 sm:$0xff]   ;;  %v8553_v16 = vld [vmem:[%s11438_s1 + $0x680] ss:$8 sps:$4 sm:$0xff]  }
 0x168   : > { %3663 = vmatpush1.bf16.msra.mxu1 %v8458_v28  ;;  %3098 = vmatprep.subr.bf16.mxu0 %v8463_v29  ;;  %v8545_v28 = vld [vmem:[%s11438_s1 + $0x670] ss:$8 sps:$4 sm:$0xff]  }
 0x169   : > { %3664 = vmatprep.subr.bf16.mxu1 %v8466_v30  ;;  %3128 = vmatprep.mubr.bf16.mxu0 %v2684_v31  ;;  %v8548_v29 = vld [vmem:[%s11439_s2 + $0x670] ss:$8 sps:$4 sm:$0xff]   ;;  %v8555_v30 = vld [vmem:[%s11438_s1 + $0x684] ss:$8 sps:$4 sm:$0xff]  }
 0x16a   : > { %3694 = vmatprep.mubr.bf16.mxu1 %v2684_v31  ;;  %v8556_v31 = vld [vmem:[%s11439_s2 + $0x680] ss:$8 sps:$4 sm:$0xff]  }
 0x16b   : > { %3099 = vmatpush1.bf16.msra.mxu0 %v8461_v32  ;;  %v2683_v32 = vrot.slane %v6952_v27, 1  ;;  %v8614_v27 = vld [vmem:[%s11438_s1 + $0x720] ss:$8 sps:$4 sm:$0xff]  }
 0x16c   : > { %3665 = vmatpush1.bf16.msra.mxu1 %v8464_v33  ;;  %3100 = vmatprep.subr.bf16.mxu0 %v8469_v34  ;;  %v10421_v33 = vld [vmem:[%s9228_s26] sm:$0xee]  ;;  %v10424_v34 = vld [vmem:[%s9228_s26 + $0x14] sm:$0xff] }
 0x16d   : > { %3666 = vmatprep.subr.bf16.mxu1 %v8472_v35  ;;  %v8561_v35 = vld [vmem:[%s11438_s1 + $0x694] ss:$8 sps:$4 sm:$0xff]  }
 0x16f   : > { %3101 = vmatpush1.bf16.msra.mxu0 %v8467_v36  ;;  %v8564_v36 = vld [vmem:[%s11439_s2 + $0x694] ss:$8 sps:$4 sm:$0xff]  }
 0x170   : > { %3667 = vmatpush1.bf16.msra.mxu1 %v8470_v37  ;;  %3102 = vmatprep.subr.bf16.mxu0 %v8475_v40  ;;  %v8559_v37 = vld [vmem:[%s11438_s1 + $0x690] ss:$8 sps:$4 sm:$0xff]   ;;  %v7246_v40 = vcombine.high %v10421_v33, %v10424_v34 }
 0x171   : > { %3668 = vmatprep.subr.bf16.mxu1 %v8478_v41  ;;  %v8562_v41 = vld [vmem:[%s11439_s2 + $0x690] ss:$8 sps:$4 sm:$0xff]  }
 0x173   : > { %3103 = vmatpush1.bf16.msra.mxu0 %v8473_v42  ;;  %v10441_v42 = vld [vmem:[%s9228_s26 + $0x28] sm:$0x11] }
 0x174   : > { %3669 = vmatpush1.bf16.msra.mxu1 %v8476_v43  ;;  %3104 = vmatprep.subr.bf16.mxu0 %v8481_v44  ;;  %v8567_v43 = vld [vmem:[%s11438_s1 + $0x6a4] ss:$8 sps:$4 sm:$0xff]  }
 0x175   : > { %3670 = vmatprep.subr.bf16.mxu1 %v8484_v45  ;;  %v8570_v44 = vld [vmem:[%s11439_s2 + $0x6a4] ss:$8 sps:$4 sm:$0xff]   ;;  %v8565_v45 = vld [vmem:[%s11438_s1 + $0x6a0] ss:$8 sps:$4 sm:$0xff]  }
 0x177   : > { %3105 = vmatpush1.bf16.msra.mxu0 %v8479_v47  ;;  %v10456_v47 = vcombine.high %v10441_v42, %v10441_v42 }
 0x178   : > { %3671 = vmatpush1.bf16.msra.mxu1 %v8482_v48  ;;  %3106 = vmatprep.subr.bf16.mxu0 %v8487_v49  ;;  %v3883_v48 = vshrl.u32 %v7246_v40, 16  ;;  %v3886_v49 = vshll.u32 %v7246_v40, 16  ;;  %v8637_v40 = vld [vmem:[%s11439_s2 + $0x754] ss:$8 sps:$4 sm:$0xff]  }
 0x179   : > { %3672 = vmatprep.subr.bf16.mxu1 %v8490_v50  ;;  %v8568_v50 = vld [vmem:[%s11439_s2 + $0x6a0] ss:$8 sps:$4 sm:$0xff]  }
 0x17b   : > { %3107 = vmatpush1.bf16.msra.mxu0 %v8485_v51  ;;  %v2594_v51 = vld [vmem:[%s9228_s26 + $0x10] sm:$0xe] }
 0x17c   : > { %3673 = vmatpush1.bf16.msra.mxu1 %v8488_v52  ;;  %3108 = vmatprep.subr.bf16.mxu0 %v8493_v53  ;;  %v8573_v52 = vld [vmem:[%s11438_s1 + $0x6b4] ss:$8 sps:$4 sm:$0xff]  }
 0x17d   : > { %3674 = vmatprep.subr.bf16.mxu1 %v8496_v55  ;;  %v8576_v53 = vld [vmem:[%s11439_s2 + $0x6b4] ss:$8 sps:$4 sm:$0xff]   ;;  %v9030_v55 = vld [vmem:[%s9228_s26 + $0x24] sm:$0xf] }
 0x17f   : > { %3109 = vmatpush1.bf16.msra.mxu0 %v8491_v56  ;;  %v6954_v56 = vcombine.low %v2594_v51, %v9030_v55  ;;  %v8649_v51 = vld [vmem:[%s11439_s2 + $0x774] ss:$8 sps:$4 sm:$0xff]   ;;  %v8652_v55 = vld [vmem:[%s11438_s1 + $0x784] ss:$8 sps:$4 sm:$0xff]  }
 0x180   : > { %3675 = vmatpush1.bf16.msra.mxu1 %v8494_v57  ;;  %3110 = vmatprep.subr.bf16.mxu0 %v8499_v58  ;;  %v3885_v57 = vrot.slane %v3883_v48, 1  ;;  %v3888_v58 = vrot.slane %v3886_v49, 2  ;;  %v8638_v48 = vld [vmem:[%s11438_s1 + $0x760] ss:$8 sps:$4 sm:$0xff]  }
 0x181   : > { %3676 = vmatprep.subr.bf16.mxu1 %v8502_v59  ;;  %v3891_v59 = vshll.u32 %v10456_v47, 16  ;;  %v8641_v49 = vld [vmem:[%s11439_s2 + $0x760] ss:$8 sps:$4 sm:$0xff]  }
 0x183   : > { %3111 = vmatpush1.bf16.msra.mxu0 %v8497_v60  ;;  %v8571_v60 = vld [vmem:[%s11438_s1 + $0x6b0] ss:$8 sps:$4 sm:$0xff]  }
 0x184   : > { %3677 = vmatpush1.bf16.msra.mxu1 %v8500_v61  ;;  %3112 = vmatprep.subr.bf16.mxu0 %v8505_v62  ;;  %v8574_v61 = vld [vmem:[%s11439_s2 + $0x6b0] ss:$8 sps:$4 sm:$0xff]   ;;  %v8579_v62 = vld [vmem:[%s11438_s1 + $0x6c4] ss:$8 sps:$4 sm:$0xff]  }
 0x185   : > { %3678 = vmatprep.subr.bf16.mxu1 %v8508_v54  ;;  %v8582_v54 = vld [vmem:[%s11439_s2 + $0x6c4] ss:$8 sps:$4 sm:$0xff]  }
 0x187   : > { %3113 = vmatpush1.bf16.msra.mxu0 %v8503_v63  ;;  %v2685_v63 = vrot.slane %v6954_v56, 1  ;;  %v8655_v56 = vld [vmem:[%s11439_s2 + $0x784] ss:$8 sps:$4 sm:$0xff]  }
 0x188   : > { %3679 = vmatpush1.bf16.msra.mxu1 %v8506_v0  ;;  %3114 = vmatprep.subr.bf16.mxu0 %v8511_v1  ;;  %v3889_v0 = vor.u32 %v3888_v58, %v3885_v57  ;;  %v3893_v1 = vrot.slane %v3891_v59, 2  ;;  %v8650_v57 = vld [vmem:[%s11438_s1 + $0x780] ss:$8 sps:$4 sm:$0xff]   ;;  %v7245_v59 = vcombine.low %v10421_v33, %v10424_v34 }
 0x189   : > { %3680 = vmatprep.subr.bf16.mxu1 %v8514_v2  ;;  %v8577_v2 = vld [vmem:[%s11438_s1 + $0x6c0] ss:$8 sps:$4 sm:$0xff]  }
 0x18a   : > { %v8653_v58 = vld [vmem:[%s11439_s2 + $0x780] ss:$8 sps:$4 sm:$0xff]  }
 0x18b   : > { %3115 = vmatpush1.bf16.msra.mxu0 %v8509_v46  ;;  %v8580_v46 = vld [vmem:[%s11439_s2 + $0x6c0] ss:$8 sps:$4 sm:$0xff]  }
 0x18c   : > { %3681 = vmatpush1.bf16.msra.mxu1 %v8512_v38  ;;  %3116 = vmatprep.subr.bf16.mxu0 %v8517_v3  ;;  %v8586_v38 = vld [vmem:[%s11438_s1 + $0x6d4] ss:$8 sps:$4 sm:$0xff]  }
 0x18d   : > { %3682 = vmatprep.subr.bf16.mxu1 %v8520_v4  ;;  %v8589_v3 = vld [vmem:[%s11439_s2 + $0x6d4] ss:$8 sps:$4 sm:$0xff]   ;;  %v3894_v4 = vsel %vm3868_vm1, %v3889_v0, %v3893_v1  ;;  %v8659_v0 = vld [vmem:[%s11439_s2 + $0x790] ss:$8 sps:$4 sm:$0xff]   ;;  %v10659_v1 = vcombine.low %v10441_v42, %v10441_v42 }
 0x18f   : > { %3117 = vmatpush1.bf16.msra.mxu0 %v8515_v5  ;;  %v8584_v5 = vld [vmem:[%s11438_s1 + $0x6d0] ss:$8 sps:$4 sm:$0xff]  }
 0x190   : > { %3683 = vmatpush1.bf16.msra.mxu1 %v8518_v6  ;;  %3118 = vmatprep.subr.bf16.mxu0 %v8523_v7  ;;  %v8587_v6 = vld [vmem:[%s11439_s2 + $0x6d0] ss:$8 sps:$4 sm:$0xff]   ;;  %v8592_v7 = vld [vmem:[%s11438_s1 + $0x6e4] ss:$8 sps:$4 sm:$0xff]  }
 0x191   : > { %3684 = vmatprep.subr.bf16.mxu1 %v8526_v8  ;;  %v8595_v8 = vld [vmem:[%s11439_s2 + $0x6e4] ss:$8 sps:$4 sm:$0xff]  }
 0x193   : > { %3119 = vmatpush1.bf16.msra.mxu0 %v8521_v9  ;;  %v8590_v9 = vld [vmem:[%s11438_s1 + $0x6e0] ss:$8 sps:$4 sm:$0xff]  }
 0x194   : > { %3685 = vmatpush1.bf16.msra.mxu1 %v8524_v11  ;;  %3120 = vmatprep.subr.bf16.mxu0 %v8529_v12  ;;  %v8593_v11 = vld [vmem:[%s11439_s2 + $0x6e0] ss:$8 sps:$4 sm:$0xff]   ;;  %v8598_v12 = vld [vmem:[%s11438_s1 + $0x6f4] ss:$8 sps:$4 sm:$0xff]  }
 0x195   : > { %3686 = vmatprep.subr.bf16.mxu1 %v8532_v13  ;;  %v8601_v13 = vld [vmem:[%s11439_s2 + $0x6f4] ss:$8 sps:$4 sm:$0xff]  }
 0x197   : > { %3121 = vmatpush1.bf16.msra.mxu0 %v8527_v14  ;;  %v8596_v14 = vld [vmem:[%s11438_s1 + $0x6f0] ss:$8 sps:$4 sm:$0xff]  }
 0x198   : > { %3687 = vmatpush1.bf16.msra.mxu1 %v8530_v15  ;;  %3122 = vmatprep.subr.bf16.mxu0 %v8535_v17  ;;  %v8599_v15 = vld [vmem:[%s11439_s2 + $0x6f0] ss:$8 sps:$4 sm:$0xff]   ;;  %v8604_v17 = vld [vmem:[%s11438_s1 + $0x704] ss:$8 sps:$4 sm:$0xff]  }
 0x199   : > { %3688 = vmatprep.subr.bf16.mxu1 %v8538_v18  ;;  %v8607_v18 = vld [vmem:[%s11439_s2 + $0x704] ss:$8 sps:$4 sm:$0xff]  }
 0x19b   : > { %3123 = vmatpush1.bf16.msra.mxu0 %v8533_v19  ;;  %v8602_v19 = vld [vmem:[%s11438_s1 + $0x700] ss:$8 sps:$4 sm:$0xff]  }
 0x19c   : > { %3689 = vmatpush1.bf16.msra.mxu1 %v8536_v21  ;;  %3124 = vmatprep.subr.bf16.mxu0 %v8541_v22  ;;  %v8605_v21 = vld [vmem:[%s11439_s2 + $0x700] ss:$8 sps:$4 sm:$0xff]   ;;  %v8610_v22 = vld [vmem:[%s11438_s1 + $0x714] ss:$8 sps:$4 sm:$0xff]  }
 0x19d   : > { %3690 = vmatprep.subr.bf16.mxu1 %v8544_v23  ;;  %v8613_v23 = vld [vmem:[%s11439_s2 + $0x714] ss:$8 sps:$4 sm:$0xff]  }
 0x19f   : > { %3125 = vmatpush1.bf16.msra.mxu0 %v8539_v24  ;;  %v8608_v24 = vld [vmem:[%s11438_s1 + $0x710] ss:$8 sps:$4 sm:$0xff]  }
 0x1a0   : > { %3691 = vmatpush1.bf16.msra.mxu1 %v8542_v10  ;;  %3126 = vmatprep.subr.bf16.mxu0 %v8547_v25  ;;  %v8611_v10 = vld [vmem:[%s11439_s2 + $0x710] ss:$8 sps:$4 sm:$0xff]   ;;  %v8616_v25 = vld [vmem:[%s11438_s1 + $0x724] ss:$8 sps:$4 sm:$0xff]  }
 0x1a1   : > { %3692 = vmatprep.subr.bf16.mxu1 %v8550_v26  ;;  %v8619_v26 = vld [vmem:[%s11439_s2 + $0x724] ss:$8 sps:$4 sm:$0xff]  }
 0x1a3   : > { %3127 = vmatpush1.bf16.msra.mxu0 %v8545_v28  ;;  %v8617_v28 = vld [vmem:[%s11439_s2 + $0x720] ss:$8 sps:$4 sm:$0xff]  }
 0x1a4   : > { %3693 = vmatpush1.bf16.msra.mxu1 %v8548_v29  ;;  %3139 = vmatprep.subr.bf16.mxu0 %v8555_v30  ;;  %v8622_v29 = vld [vmem:[%s11438_s1 + $0x734] ss:$8 sps:$4 sm:$0xff]  }
 0x1a5   : > { %3705 = vmatprep.subr.bf16.mxu1 %v8558_v20  ;;  %v8625_v30 = vld [vmem:[%s11439_s2 + $0x734] ss:$8 sps:$4 sm:$0xff]   ;;  %v8620_v20 = vld [vmem:[%s11438_s1 + $0x730] ss:$8 sps:$4 sm:$0xff]  }
 0x1a6   : > { %3129 = vmatmul.mubr.bf16.vlgmr.msra.gmra.mrb[0].mxu0 %v2683_v32 }
 0x1a7   : > { %3695 = vmatmul.mubr.bf16.vlgmr.msra.gmra.mrb[0].mxu1 %v2683_v32  ;;  %3140 = vmatpush1.bf16.msra.mxu0 %v8553_v16  ;;  %v8623_v16 = vld [vmem:[%s11439_s2 + $0x730] ss:$8 sps:$4 sm:$0xff]   ;;  %v8631_v32 = vld [vmem:[%s11439_s2 + $0x744] ss:$8 sps:$4 sm:$0xff]  }
 0x1a8   : > { %3706 = vmatpush1.bf16.msra.mxu1 %v8556_v31  ;;  %3141 = vmatprep.subr.bf16.mxu0 %v8561_v35  ;;  %v8628_v31 = vld [vmem:[%s11438_s1 + $0x744] ss:$8 sps:$4 sm:$0xff]   ;;  %v8626_v35 = vld [vmem:[%s11438_s1 + $0x740] ss:$8 sps:$4 sm:$0xff]  }
 0x1a9   : > { %3707 = vmatprep.subr.bf16.mxu1 %v8564_v36  ;;  %3171 = vmatprep.mubr.bf16.mxu0 %v9040_v39  ;;  %v8629_v36 = vld [vmem:[%s11439_s2 + $0x740] ss:$8 sps:$4 sm:$0xff]  }
 0x1aa   : > { %3737 = vmatprep.mubr.bf16.mxu1 %v9040_v39 }
 0x1ab   : > { %3142 = vmatpush1.bf16.msra.mxu0 %v8559_v37  ;;  %v8634_v37 = vld [vmem:[%s11438_s1 + $0x754] ss:$8 sps:$4 sm:$0xff]  }
 0x1ac   : > { %3708 = vmatpush1.bf16.msra.mxu1 %v8562_v41  ;;  %3143 = vmatprep.subr.bf16.mxu0 %v8567_v43  ;;  %v8632_v41 = vld [vmem:[%s11438_s1 + $0x750] ss:$8 sps:$4 sm:$0xff]  }
 0x1ad   : > { %3709 = vmatprep.subr.bf16.mxu1 %v8570_v44  ;;  %v8635_v43 = vld [vmem:[%s11439_s2 + $0x750] ss:$8 sps:$4 sm:$0xff]   ;;  %v8640_v44 = vld [vmem:[%s11438_s1 + $0x764] ss:$8 sps:$4 sm:$0xff]  }
 0x1af   : > { %3144 = vmatpush1.bf16.msra.mxu0 %v8565_v45  ;;  %v8643_v45 = vld [vmem:[%s11439_s2 + $0x764] ss:$8 sps:$4 sm:$0xff]  }
 0x1b0   : > { %3710 = vmatpush1.bf16.msra.mxu1 %v8568_v50  ;;  %3145 = vmatprep.subr.bf16.mxu0 %v8573_v52  ;;  %v8646_v50 = vld [vmem:[%s11438_s1 + $0x774] ss:$8 sps:$4 sm:$0xff]   ;;  %v8644_v52 = vld [vmem:[%s11438_s1 + $0x770] ss:$8 sps:$4 sm:$0xff]  }
 0x1b1   : > { %3711 = vmatprep.subr.bf16.mxu1 %v8576_v53  ;;  %v8647_v53 = vld [vmem:[%s11439_s2 + $0x770] ss:$8 sps:$4 sm:$0xff]  }
 0x1b3   : > { %3146 = vmatpush1.bf16.msra.mxu0 %v8571_v60  ;;  %v10638_v60 = vld [vmem:[%s9228_s26 + $0x8] sm:$0xee] }
 0x1b4   : > { %3712 = vmatpush1.bf16.msra.mxu1 %v8574_v61  ;;  %4301 = vmatprep.subr.bf16.mxu0 %v8579_v62  ;;  %v10641_v61 = vld [vmem:[%s9228_s26 + $0x1c] sm:$0xff] }
 0x1b5   : > { %4867 = vmatprep.subr.bf16.mxu1 %v8582_v54  ;;  %v8658_v62 = vld [vmem:[%s11438_s1 + $0x794] ss:$8 sps:$4 sm:$0xff]   ;;  %v7248_v33 = vcombine.high %v10638_v60, %v10641_v61 }
 0x1b6   : > { %7027 = vmatmul.mubr.msk.bf16.vlgmr.msra.gmra.mrb[0].mxu0 %vm899_vm0, %v2685_v63  ;;  %v8661_v54 = vld [vmem:[%s11439_s2 + $0x794] ss:$8 sps:$4 sm:$0xff]  }
 0x1b7   : > { %7172 = vmatmul.mubr.msk.bf16.vlgmr.msra.gmra.mrb[0].mxu1 %vm899_vm0, %v2685_v63  ;;  %4302 = vmatpush1.bf16.msra.mxu0 %v8577_v2  ;;  %v8656_v63 = vld [vmem:[%s11438_s1 + $0x790] ss:$8 sps:$4 sm:$0xff]   ;;  %v3870_v2 = vshrl.u32 %v7245_v59, 16 }
 0x1b8   : > { %4868 = vmatpush1.bf16.msra.mxu1 %v8580_v46  ;;  %4303 = vmatprep.subr.bf16.mxu0 %v8586_v38  ;;  %v3873_v46 = vshll.u32 %v7245_v59, 16  ;;  %v10662_v38 = vld [vmem:[%s9228_s26 + $0x30] sm:$0x11]  ;;  %v8714_v59 = vld [vmem:[%s11438_s1 + $0x820] ss:$8 sps:$4 sm:$0xff]  }
 0x1b9   : > { %4869 = vmatprep.subr.bf16.mxu1 %v8589_v3  ;;  %4333 = vmatprep.mubr.bf16.mxu0 %v3894_v4  ;;  %v8664_v3 = vld [vmem:[%s11438_s1 + $0x7a4] ss:$8 sps:$4 sm:$0xff]   ;;  %v10675_v42 = vcombine.high %v10662_v38, %v10662_v38 }
 0x1ba   : > { %4899 = vmatprep.mubr.bf16.mxu1 %v3894_v4  ;;  %v8667_v4 = vld [vmem:[%s11439_s2 + $0x7a4] ss:$8 sps:$4 sm:$0xff]  }
 0x1bb   : > { %4304 = vmatpush1.bf16.msra.mxu0 %v8584_v5  ;;  %v8662_v5 = vld [vmem:[%s11438_s1 + $0x7a0] ss:$8 sps:$4 sm:$0xff]  }
 0x1bc   : > { %4870 = vmatpush1.bf16.msra.mxu1 %v8587_v6  ;;  %4305 = vmatprep.subr.bf16.mxu0 %v8592_v7  ;;  %v3909_v6 = vshrl.u32 %v7248_v33, 16  ;;  %v3912_v7 = vshll.u32 %v7248_v33, 16  ;;  %v8720_v33 = vld [vmem:[%s11438_s1 + $0x830] ss:$8 sps:$4 sm:$0xff]  }
 0x1bd   : > { %4871 = vmatprep.subr.bf16.mxu1 %v8595_v8  ;;  %v8665_v8 = vld [vmem:[%s11439_s2 + $0x7a0] ss:$8 sps:$4 sm:$0xff]  }
 0x1bf   : > { %4306 = vmatpush1.bf16.msra.mxu0 %v8590_v9  ;;  %v3872_v9 = vrot.slane %v3870_v2, 1  ;;  %v8728_v2 = vld [vmem:[%s11438_s1 + $0x844] ss:$8 sps:$4 sm:$0xff]  }
 0x1c0   : > { %4872 = vmatpush1.bf16.msra.mxu1 %v8593_v11  ;;  %4307 = vmatprep.subr.bf16.mxu0 %v8598_v12  ;;  %v3875_v11 = vrot.slane %v3873_v46, 2  ;;  %v3878_v12 = vshll.u32 %v10659_v1, 16  ;;  %v8731_v46 = vld [vmem:[%s11439_s2 + $0x844] ss:$8 sps:$4 sm:$0xff]  }
 0x1c1   : > { %4873 = vmatprep.subr.bf16.mxu1 %v8601_v13  ;;  %v8670_v13 = vld [vmem:[%s11438_s1 + $0x7b4] ss:$8 sps:$4 sm:$0xff]  }
 0x1c3   : > { %4308 = vmatpush1.bf16.msra.mxu0 %v8596_v14  ;;  %v8673_v14 = vld [vmem:[%s11439_s2 + $0x7b4] ss:$8 sps:$4 sm:$0xff]  }
 0x1c4   : > { %4874 = vmatpush1.bf16.msra.mxu1 %v8599_v15  ;;  %4309 = vmatprep.subr.bf16.mxu0 %v8604_v17  ;;  %v3911_v15 = vrot.slane %v3909_v6, 1  ;;  %v3914_v17 = vrot.slane %v3912_v7, 2  ;;  %v8737_v6 = vld [vmem:[%s11439_s2 + $0x854] ss:$8 sps:$4 sm:$0xff]   ;;  %v8732_v7 = vld [vmem:[%s11438_s1 + $0x850] ss:$8 sps:$4 sm:$0xff]  }
 0x1c5   : > { %4875 = vmatprep.subr.bf16.mxu1 %v8607_v18  ;;  %v3917_v18 = vshll.u32 %v10675_v42, 16 }
 0x1c7   : > { %4310 = vmatpush1.bf16.msra.mxu0 %v8602_v19  ;;  %v8668_v19 = vld [vmem:[%s11438_s1 + $0x7b0] ss:$8 sps:$4 sm:$0xff]  }
 0x1c8   : > { %4876 = vmatpush1.bf16.msra.mxu1 %v8605_v21  ;;  %4311 = vmatprep.subr.bf16.mxu0 %v8610_v22  ;;  %v8671_v21 = vld [vmem:[%s11439_s2 + $0x7b0] ss:$8 sps:$4 sm:$0xff]   ;;  %v3876_v22 = vor.u32 %v3875_v11, %v3872_v9  ;;  %v8740_v9 = vld [vmem:[%s11438_s1 + $0x864] ss:$8 sps:$4 sm:$0xff]  }
 0x1c9   : > { %4877 = vmatprep.subr.bf16.mxu1 %v8613_v23  ;;  %v3880_v23 = vrot.slane %v3878_v12, 2  ;;  %v8743_v11 = vld [vmem:[%s11439_s2 + $0x864] ss:$8 sps:$4 sm:$0xff]   ;;  %v8738_v12 = vld [vmem:[%s11438_s1 + $0x860] ss:$8 sps:$4 sm:$0xff]  }
 0x1cb   : > { %4312 = vmatpush1.bf16.msra.mxu0 %v8608_v24  ;;  %v8678_v24 = vld [vmem:[%s11438_s1 + $0x7c4] ss:$8 sps:$4 sm:$0xff]  }
 0x1cc   : > { %4878 = vmatpush1.bf16.msra.mxu1 %v8611_v10  ;;  %4313 = vmatprep.subr.bf16.mxu0 %v8616_v25  ;;  %v8681_v10 = vld [vmem:[%s11439_s2 + $0x7c4] ss:$8 sps:$4 sm:$0xff]   ;;  %v3915_v25 = vor.u32 %v3914_v17, %v3911_v15  ;;  %v8749_v15 = vld [vmem:[%s11439_s2 + $0x874] ss:$8 sps:$4 sm:$0xff]   ;;  %v8744_v17 = vld [vmem:[%s11438_s1 + $0x870] ss:$8 sps:$4 sm:$0xff]  }
 0x1cd   : > { %4879 = vmatprep.subr.bf16.mxu1 %v8619_v26  ;;  %v3919_v26 = vrot.slane %v3917_v18, 2  ;;  %v8747_v18 = vld [vmem:[%s11439_s2 + $0x870] ss:$8 sps:$4 sm:$0xff]  }
 0x1cf   : > { %4314 = vmatpush1.bf16.msra.mxu0 %v8614_v27  ;;  %v8676_v27 = vld [vmem:[%s11438_s1 + $0x7c0] ss:$8 sps:$4 sm:$0xff]  }
 0x1d0   : > { %4880 = vmatpush1.bf16.msra.mxu1 %v8617_v28  ;;  %4315 = vmatprep.subr.bf16.mxu0 %v8622_v29  ;;  %v8679_v28 = vld [vmem:[%s11439_s2 + $0x7c0] ss:$8 sps:$4 sm:$0xff]   ;;  %v3881_v29 = vsel %vm3868_vm1, %v3876_v22, %v3880_v23 }
 0x1d1   : > { %4881 = vmatprep.subr.bf16.mxu1 %v8625_v30  ;;  %v8686_v30 = vld [vmem:[%s11438_s1 + $0x7d4] ss:$8 sps:$4 sm:$0xff]   ;;  %v8750_v22 = vld [vmem:[%s11438_s1 + $0x880] ss:$8 sps:$4 sm:$0xff]  }
 0x1d2   : > { %v8753_v23 = vld [vmem:[%s11439_s2 + $0x880] ss:$8 sps:$4 sm:$0xff]  }
 0x1d3   : > { %4316 = vmatpush1.bf16.msra.mxu0 %v8620_v20  ;;  %v8689_v20 = vld [vmem:[%s11439_s2 + $0x7d4] ss:$8 sps:$4 sm:$0xff]  }
 0x1d4   : > { %4882 = vmatpush1.bf16.msra.mxu1 %v8623_v16  ;;  %4317 = vmatprep.subr.bf16.mxu0 %v8628_v31  ;;  %v3920_v16 = vsel %vm3868_vm1, %v3915_v25, %v3919_v26  ;;  %v8684_v31 = vld [vmem:[%s11438_s1 + $0x7d0] ss:$8 sps:$4 sm:$0xff]   ;;  %v8761_v25 = vld [vmem:[%s11439_s2 + $0x894] ss:$8 sps:$4 sm:$0xff]  }
 0x1d5   : > { %4883 = vmatprep.subr.bf16.mxu1 %v8631_v32  ;;  %v8687_v32 = vld [vmem:[%s11439_s2 + $0x7d0] ss:$8 sps:$4 sm:$0xff]  }
 0x1d6   : > { %v8756_v26 = vld [vmem:[%s11438_s1 + $0x890] ss:$8 sps:$4 sm:$0xff]  }
 0x1d7   : > { %4318 = vmatpush1.bf16.msra.mxu0 %v8626_v35  ;;  %v8692_v35 = vld [vmem:[%s11438_s1 + $0x7e4] ss:$8 sps:$4 sm:$0xff]  }
 0x1d8   : > { %4884 = vmatpush1.bf16.msra.mxu1 %v8629_v36  ;;  %4319 = vmatprep.subr.bf16.mxu0 %v8634_v37  ;;  %v8695_v36 = vld [vmem:[%s11439_s2 + $0x7e4] ss:$8 sps:$4 sm:$0xff]   ;;  %v8690_v37 = vld [vmem:[%s11438_s1 + $0x7e0] ss:$8 sps:$4 sm:$0xff]  }
 0x1d9   : > { %4885 = vmatprep.subr.bf16.mxu1 %v8637_v40  ;;  %v8693_v40 = vld [vmem:[%s11439_s2 + $0x7e0] ss:$8 sps:$4 sm:$0xff]  }
 0x1db   : > { %4320 = vmatpush1.bf16.msra.mxu0 %v8632_v41  ;;  %v8698_v41 = vld [vmem:[%s11438_s1 + $0x7f4] ss:$8 sps:$4 sm:$0xff]  }
 0x1dc   : > { %4886 = vmatpush1.bf16.msra.mxu1 %v8635_v43  ;;  %4321 = vmatprep.subr.bf16.mxu0 %v8640_v44  ;;  %v8701_v43 = vld [vmem:[%s11439_s2 + $0x7f4] ss:$8 sps:$4 sm:$0xff]   ;;  %v8696_v44 = vld [vmem:[%s11438_s1 + $0x7f0] ss:$8 sps:$4 sm:$0xff]  }
 0x1dd   : > { %4887 = vmatprep.subr.bf16.mxu1 %v8643_v45  ;;  %v8699_v45 = vld [vmem:[%s11439_s2 + $0x7f0] ss:$8 sps:$4 sm:$0xff]  }
 0x1df   : > { %4322 = vmatpush1.bf16.msra.mxu0 %v8638_v48  ;;  %v8704_v48 = vld [vmem:[%s11438_s1 + $0x804] ss:$8 sps:$4 sm:$0xff]  }
 0x1e0   : > { %4888 = vmatpush1.bf16.msra.mxu1 %v8641_v49  ;;  %4323 = vmatprep.subr.bf16.mxu0 %v8646_v50  ;;  %v8707_v49 = vld [vmem:[%s11439_s2 + $0x804] ss:$8 sps:$4 sm:$0xff]   ;;  %v8702_v50 = vld [vmem:[%s11438_s1 + $0x800] ss:$8 sps:$4 sm:$0xff]  }
 0x1e1   : > { %4889 = vmatprep.subr.bf16.mxu1 %v8649_v51  ;;  %v8705_v51 = vld [vmem:[%s11439_s2 + $0x800] ss:$8 sps:$4 sm:$0xff]  }
 0x1e3   : > { %4324 = vmatpush1.bf16.msra.mxu0 %v8644_v52  ;;  %v8710_v52 = vld [vmem:[%s11438_s1 + $0x814] ss:$8 sps:$4 sm:$0xff]  }
 0x1e4   : > { %4890 = vmatpush1.bf16.msra.mxu1 %v8647_v53  ;;  %4325 = vmatprep.subr.bf16.mxu0 %v8652_v55  ;;  %v8713_v53 = vld [vmem:[%s11439_s2 + $0x814] ss:$8 sps:$4 sm:$0xff]   ;;  %v8708_v55 = vld [vmem:[%s11438_s1 + $0x810] ss:$8 sps:$4 sm:$0xff]  }
 0x1e5   : > { %4891 = vmatprep.subr.bf16.mxu1 %v8655_v56  ;;  %v8711_v56 = vld [vmem:[%s11439_s2 + $0x810] ss:$8 sps:$4 sm:$0xff]  }
 0x1e7   : > { %4326 = vmatpush1.bf16.msra.mxu0 %v8650_v57  ;;  %v8716_v57 = vld [vmem:[%s11438_s1 + $0x824] ss:$8 sps:$4 sm:$0xff]  }
 0x1e8   : > { %4892 = vmatpush1.bf16.msra.mxu1 %v8653_v58  ;;  %4327 = vmatprep.subr.bf16.mxu0 %v8658_v62  ;;  %v8719_v58 = vld [vmem:[%s11439_s2 + $0x824] ss:$8 sps:$4 sm:$0xff]   ;;  %v8717_v62 = vld [vmem:[%s11439_s2 + $0x820] ss:$8 sps:$4 sm:$0xff]  }
 0x1e9   : > { %4893 = vmatprep.subr.bf16.mxu1 %v8661_v54  ;;  %v8722_v54 = vld [vmem:[%s11438_s1 + $0x834] ss:$8 sps:$4 sm:$0xff]  }
 0x1eb   : > { %4328 = vmatpush1.bf16.msra.mxu0 %v8656_v63  ;;  %v8725_v63 = vld [vmem:[%s11439_s2 + $0x834] ss:$8 sps:$4 sm:$0xff]  }
 0x1ec   : > { %4894 = vmatpush1.bf16.msra.mxu1 %v8659_v0  ;;  %4329 = vmatprep.subr.bf16.mxu0 %v8664_v3  ;;  %v8723_v0 = vld [vmem:[%s11439_s2 + $0x830] ss:$8 sps:$4 sm:$0xff]   ;;  %v8726_v3 = vld [vmem:[%s11438_s1 + $0x840] ss:$8 sps:$4 sm:$0xff]  }
 0x1ed   : > { %4895 = vmatprep.subr.bf16.mxu1 %v8667_v4  ;;  %v8729_v4 = vld [vmem:[%s11439_s2 + $0x840] ss:$8 sps:$4 sm:$0xff]  }
 0x1ef   : > { %4330 = vmatpush1.bf16.msra.mxu0 %v8662_v5  ;;  %v8734_v5 = vld [vmem:[%s11438_s1 + $0x854] ss:$8 sps:$4 sm:$0xff]  }
 0x1f0   : > { %4896 = vmatpush1.bf16.msra.mxu1 %v8665_v8  ;;  %4331 = vmatprep.subr.bf16.mxu0 %v8670_v13  ;;  %v8735_v8 = vld [vmem:[%s11439_s2 + $0x850] ss:$8 sps:$4 sm:$0xff]   ;;  %v8741_v13 = vld [vmem:[%s11439_s2 + $0x860] ss:$8 sps:$4 sm:$0xff]  }
 0x1f1   : > { %4897 = vmatprep.subr.bf16.mxu1 %v8673_v14  ;;  %v8746_v14 = vld [vmem:[%s11438_s1 + $0x874] ss:$8 sps:$4 sm:$0xff]  }
 0x1f3   : > { %4332 = vmatpush1.bf16.msra.mxu0 %v8668_v19  ;;  %v8752_v19 = vld [vmem:[%s11438_s1 + $0x884] ss:$8 sps:$4 sm:$0xff]  }
 0x1f4   : > { %4898 = vmatpush1.bf16.msra.mxu1 %v8671_v21  ;;  %4344 = vmatprep.subr.bf16.mxu0 %v8678_v24  ;;  %v8755_v21 = vld [vmem:[%s11439_s2 + $0x884] ss:$8 sps:$4 sm:$0xff]   ;;  %v7247_v24 = vcombine.low %v10638_v60, %v10641_v61  ;;  %v8759_v60 = vld [vmem:[%s11439_s2 + $0x890] ss:$8 sps:$4 sm:$0xff]  }
 0x1f5   : > { %4910 = vmatprep.subr.bf16.mxu1 %v8681_v10  ;;  %v8758_v10 = vld [vmem:[%s11438_s1 + $0x894] ss:$8 sps:$4 sm:$0xff]  }
 0x1f6   : > { %4334 = vmatmul.mubr.bf16.vlgmr.msra.gmra.mrb[0].mxu0 %v3881_v29 }
 0x1f7   : > { %4900 = vmatmul.mubr.bf16.vlgmr.msra.gmra.mrb[0].mxu1 %v3881_v29  ;;  %4345 = vmatpush1.bf16.msra.mxu0 %v8676_v27  ;;  %v10868_v27 = vcombine.low %v10662_v38, %v10662_v38  ;;  %v3899_v29 = vshll.u32 %v7247_v24, 16  ;;  %v8765_v38 = vld [vmem:[%s11439_s2 + $0x8a0] ss:$8 sps:$4 sm:$0xff]  }
 0x1f8   : > { %4911 = vmatpush1.bf16.msra.mxu1 %v8679_v28  ;;  %4346 = vmatprep.subr.bf16.mxu0 %v8686_v30  ;;  %v3896_v28 = vshrl.u32 %v7247_v24, 16  ;;  %v8764_v30 = vld [vmem:[%s11438_s1 + $0x8a4] ss:$8 sps:$4 sm:$0xff]  }
 0x1f9   : > { %4912 = vmatprep.subr.bf16.mxu1 %v8689_v20  ;;  %4376 = vmatprep.mubr.bf16.mxu0 %v3920_v16  ;;  %v8767_v20 = vld [vmem:[%s11439_s2 + $0x8a4] ss:$8 sps:$4 sm:$0xff]  }
 0x1fa   : > { %4942 = vmatprep.mubr.bf16.mxu1 %v3920_v16  ;;  %v8762_v16 = vld [vmem:[%s11438_s1 + $0x8a0] ss:$8 sps:$4 sm:$0xff]  }
 0x1fb   : > { %4347 = vmatpush1.bf16.msra.mxu0 %v8684_v31  ;;  %v3898_v31 = vrot.slane %v3896_v28, 1  ;;  %v8816_v28 = vld [vmem:[%s11438_s1 + $0x920] ss:$8 sps:$4 sm:$0xff]  }
 0x1fc   : > { %4913 = vmatpush1.bf16.msra.mxu1 %v8687_v32  ;;  %4348 = vmatprep.subr.bf16.mxu0 %v8692_v35  ;;  %v3901_v32 = vrot.slane %v3899_v29, 2  ;;  %v3904_v35 = vshll.u32 %v10868_v27, 16  ;;  %v8819_v29 = vld [vmem:[%s11439_s2 + $0x920] ss:$8 sps:$4 sm:$0xff]  }
 0x1fd   : > { %4914 = vmatprep.subr.bf16.mxu1 %v8695_v36  ;;  %v8770_v36 = vld [vmem:[%s11438_s1 + $0x8b4] ss:$8 sps:$4 sm:$0xff]  }
 0x1ff   : > { %4349 = vmatpush1.bf16.msra.mxu0 %v8690_v37  ;;  %v8773_v37 = vld [vmem:[%s11439_s2 + $0x8b4] ss:$8 sps:$4 sm:$0xff]  }
 0x200   : > { %4915 = vmatpush1.bf16.msra.mxu1 %v8693_v40  ;;  %4350 = vmatprep.subr.bf16.mxu0 %v8698_v41  ;;  %v8768_v40 = vld [vmem:[%s11438_s1 + $0x8b0] ss:$8 sps:$4 sm:$0xff]  }
 0x201   : > { %4916 = vmatprep.subr.bf16.mxu1 %v8701_v43  ;;  %v8771_v41 = vld [vmem:[%s11439_s2 + $0x8b0] ss:$8 sps:$4 sm:$0xff]   ;;  %v8778_v43 = vld [vmem:[%s11438_s1 + $0x8c4] ss:$8 sps:$4 sm:$0xff]  }
 0x203   : > { %4351 = vmatpush1.bf16.msra.mxu0 %v8696_v44  ;;  %v3902_v44 = vor.u32 %v3901_v32, %v3898_v31  ;;  %v8830_v31 = vld [vmem:[%s11438_s1 + $0x944] ss:$8 sps:$4 sm:$0xff]  }
 0x204   : > { %4917 = vmatpush1.bf16.msra.mxu1 %v8699_v45  ;;  %4352 = vmatprep.subr.bf16.mxu0 %v8704_v48  ;;  %v3906_v45 = vrot.slane %v3904_v35, 2  ;;  %v8781_v48 = vld [vmem:[%s11439_s2 + $0x8c4] ss:$8 sps:$4 sm:$0xff]   ;;  %v8828_v35 = vld [vmem:[%s11438_s1 + $0x940] ss:$8 sps:$4 sm:$0xff]  }
 0x205   : > { %4918 = vmatprep.subr.bf16.mxu1 %v8707_v49  ;;  %v3754_v49 = vld [vmem:[%s9228_s26 + $0x10] sm:$0xe]  ;;  %v8833_v32 = vld [vmem:[%s11439_s2 + $0x944] ss:$8 sps:$4 sm:$0xff]  }
 0x207   : > { %4353 = vmatpush1.bf16.msra.mxu0 %v8702_v50  ;;  %v10903_v50 = vld [vmem:[%s9228_s26 + $0x24] sm:$0xf] }
 0x208   : > { %4919 = vmatpush1.bf16.msra.mxu1 %v8705_v51  ;;  %4354 = vmatprep.subr.bf16.mxu0 %v8710_v52  ;;  %v8776_v51 = vld [vmem:[%s11438_s1 + $0x8c0] ss:$8 sps:$4 sm:$0xff]  }
 0x209   : > { %4920 = vmatprep.subr.bf16.mxu1 %v8713_v53  ;;  %v8779_v52 = vld [vmem:[%s11439_s2 + $0x8c0] ss:$8 sps:$4 sm:$0xff]   ;;  %v3907_v53 = vsel %vm3868_vm1, %v3902_v44, %v3906_v45  ;;  %v8842_v44 = vld [vmem:[%s11438_s1 + $0x964] ss:$8 sps:$4 sm:$0xff]  }
 0x20a   : > { %v8845_v45 = vld [vmem:[%s11439_s2 + $0x964] ss:$8 sps:$4 sm:$0xff]  }
 0x20b   : > { %4355 = vmatpush1.bf16.msra.mxu0 %v8708_v55  ;;  %v7249_v55 = vcombine.low %v3754_v49, %v10903_v50  ;;  %v8843_v49 = vld [vmem:[%s11439_s2 + $0x960] ss:$8 sps:$4 sm:$0xff]  }
 0x20c   : > { %4921 = vmatpush1.bf16.msra.mxu1 %v8711_v56  ;;  %4356 = vmatprep.subr.bf16.mxu0 %v8716_v57  ;;  %v8786_v56 = vld [vmem:[%s11438_s1 + $0x8d4] ss:$8 sps:$4 sm:$0xff]  }
 0x20d   : > { %4922 = vmatprep.subr.bf16.mxu1 %v8719_v58  ;;  %v8789_v57 = vld [vmem:[%s11439_s2 + $0x8d4] ss:$8 sps:$4 sm:$0xff]   ;;  %v8784_v58 = vld [vmem:[%s11438_s1 + $0x8d0] ss:$8 sps:$4 sm:$0xff]  }
 0x20f   : > { %4357 = vmatpush1.bf16.msra.mxu0 %v8714_v59  ;;  %v8787_v59 = vld [vmem:[%s11439_s2 + $0x8d0] ss:$8 sps:$4 sm:$0xff]  }
 0x210   : > { %4923 = vmatpush1.bf16.msra.mxu1 %v8717_v62  ;;  %4358 = vmatprep.subr.bf16.mxu0 %v8722_v54  ;;  %v10926_v62 = vld [vmem:[%s9228_s26 + $0x38] ss:$0 sps:$4 sm:$0x11]   ;;  %v3922_v54 = vshrl.u32 %v7249_v55, 16 }
 0x211   : > { %4924 = vmatprep.subr.bf16.mxu1 %v8725_v63  ;;  %v3925_v63 = vshll.u32 %v7249_v55, 16  ;;  %v8849_v55 = vld [vmem:[%s11439_s2 + $0x970] ss:$8 sps:$4 sm:$0xff]  }
 0x213   : > { %4359 = vmatpush1.bf16.msra.mxu0 %v8720_v33  ;;  %v8792_v33 = vld [vmem:[%s11438_s1 + $0x8e4] ss:$8 sps:$4 sm:$0xff]  }
 0x214   : > { %4925 = vmatpush1.bf16.msra.mxu1 %v8723_v0  ;;  %4360 = vmatprep.subr.bf16.mxu0 %v8728_v2  ;;  %v8795_v0 = vld [vmem:[%s11439_s2 + $0x8e4] ss:$8 sps:$4 sm:$0xff]   ;;  %v8790_v2 = vld [vmem:[%s11438_s1 + $0x8e0] ss:$8 sps:$4 sm:$0xff]  }
 0x215   : > { %4926 = vmatprep.subr.bf16.mxu1 %v8731_v46  ;;  %v8793_v46 = vld [vmem:[%s11439_s2 + $0x8e0] ss:$8 sps:$4 sm:$0xff]  }
 0x217   : > { %4361 = vmatpush1.bf16.msra.mxu0 %v8726_v3  ;;  %v3924_v3 = vrot.slane %v3922_v54, 1  ;;  %v8860_v54 = vld [vmem:[%s11438_s1 + $0x994] ss:$8 sps:$4 sm:$0xff]  }
 0x218   : > { %4927 = vmatpush1.bf16.msra.mxu1 %v8729_v4  ;;  %4362 = vmatprep.subr.bf16.mxu0 %v8734_v5  ;;  %v3927_v4 = vrot.slane %v3925_v63, 2  ;;  %v3930_v5 = vshll.u32 %v10926_v62, 16  ;;  %v8863_v63 = vld [vmem:[%s11439_s2 + $0x994] ss:$8 sps:$4 sm:$0xff]  }
 0x219   : > { %4928 = vmatprep.subr.bf16.mxu1 %v8737_v6  ;;  %v10944_v6 = vld [vmem:[%s9228_s26] sm:$0xcc] }
 0x21b   : > { %4363 = vmatpush1.bf16.msra.mxu0 %v8732_v7  ;;  %v8798_v7 = vld [vmem:[%s11438_s1 + $0x8f4] ss:$8 sps:$4 sm:$0xff]  }
 0x21c   : > { %4929 = vmatpush1.bf16.msra.mxu1 %v8735_v8  ;;  %4364 = vmatprep.subr.bf16.mxu0 %v8740_v9  ;;  %v8801_v8 = vld [vmem:[%s11439_s2 + $0x8f4] ss:$8 sps:$4 sm:$0xff]   ;;  %v7546_v9 = vcombine.high %v10944_v6, %v10424_v34  ;;  %v8807_v34 = vld [vmem:[%s11439_s2 + $0x904] ss:$8 sps:$4 sm:$0xff]  }
 0x21d   : > { %4930 = vmatprep.subr.bf16.mxu1 %v8743_v11  ;;  %v8796_v11 = vld [vmem:[%s11438_s1 + $0x8f0] ss:$8 sps:$4 sm:$0xff]  }
 0x21f   : > { %4365 = vmatpush1.bf16.msra.mxu0 %v8738_v12  ;;  %v8799_v12 = vld [vmem:[%s11439_s2 + $0x8f0] ss:$8 sps:$4 sm:$0xff]  }
 0x220   : > { %4931 = vmatpush1.bf16.msra.mxu1 %v8741_v13  ;;  %4366 = vmatprep.subr.bf16.mxu0 %v8746_v14  ;;  %v3928_v13 = vor.u32 %v3927_v4, %v3924_v3  ;;  %v3932_v14 = vrot.slane %v3930_v5, 2  ;;  %v8864_v3 = vld [vmem:[%s11438_s1 + $0x9a0] ss:$8 sps:$4 sm:$0xff]   ;;  %v8872_v5 = vld [vmem:[%s11438_s1 + $0x9b4] ss:$8 sps:$4 sm:$0xff]  }
 0x221   : > { %4932 = vmatprep.subr.bf16.mxu1 %v8749_v15  ;;  %v8804_v15 = vld [vmem:[%s11438_s1 + $0x904] ss:$8 sps:$4 sm:$0xff]   ;;  %v8867_v4 = vld [vmem:[%s11439_s2 + $0x9a0] ss:$8 sps:$4 sm:$0xff]  }
 0x223   : > { %4367 = vmatpush1.bf16.msra.mxu0 %v8744_v17  ;;  %v5093_v17 = vrot.slane %v7546_v9, 2  ;;  %v8873_v9 = vld [vmem:[%s11439_s2 + $0x9b0] ss:$8 sps:$4 sm:$0xff]  }
 0x224   : > { %4933 = vmatpush1.bf16.msra.mxu1 %v8747_v18  ;;  %4368 = vmatprep.subr.bf16.mxu0 %v8752_v19  ;;  %v5094_v18 = vrot.slane %v10456_v47, 2  ;;  %v8802_v19 = vld [vmem:[%s11438_s1 + $0x900] ss:$8 sps:$4 sm:$0xff]   ;;  %v8815_v47 = vld [vmem:[%s11439_s2 + $0x914] ss:$8 sps:$4 sm:$0xff]  }
 0x225   : > { %4934 = vmatprep.subr.bf16.mxu1 %v8755_v21  ;;  %v8805_v21 = vld [vmem:[%s11439_s2 + $0x900] ss:$8 sps:$4 sm:$0xff]  }
 0x226   : > { %v5095_v24 = vsel %vm5089_vm2, %v5093_v17, %v5094_v18  ;;  %v8882_v17 = vld [vmem:[%s11438_s1 + $0x9d0] ss:$8 sps:$4 sm:$0xff]  }
 0x227   : > { %4369 = vmatpush1.bf16.msra.mxu0 %v8750_v22  ;;  %v3933_v22 = vsel %vm3868_vm1, %v3928_v13, %v3932_v14  ;;  %v8876_v13 = vld [vmem:[%s11438_s1 + $0x9c0] ss:$8 sps:$4 sm:$0xff]   ;;  %v8885_v18 = vld [vmem:[%s11439_s2 + $0x9d0] ss:$8 sps:$4 sm:$0xff]  }
 0x228   : > { %4935 = vmatpush1.bf16.msra.mxu1 %v8753_v23  ;;  %4370 = vmatprep.subr.bf16.mxu0 %v8758_v10  ;;  %v8812_v23 = vld [vmem:[%s11438_s1 + $0x914] ss:$8 sps:$4 sm:$0xff]   ;;  %v8810_v10 = vld [vmem:[%s11438_s1 + $0x910] ss:$8 sps:$4 sm:$0xff]   ;;  %v8879_v14 = vld [vmem:[%s11439_s2 + $0x9c0] ss:$8 sps:$4 sm:$0xff]  }
 0x229   : > { %4936 = vmatprep.subr.bf16.mxu1 %v8761_v25  ;;  %v8813_v25 = vld [vmem:[%s11439_s2 + $0x910] ss:$8 sps:$4 sm:$0xff]  }
 0x22b   : > { %4371 = vmatpush1.bf16.msra.mxu0 %v8756_v26  ;;  %v8818_v26 = vld [vmem:[%s11438_s1 + $0x924] ss:$8 sps:$4 sm:$0xff]  }
 0x22c   : > { %4937 = vmatpush1.bf16.msra.mxu1 %v8759_v60  ;;  %4372 = vmatprep.subr.bf16.mxu0 %v8764_v30  ;;  %v8821_v60 = vld [vmem:[%s11439_s2 + $0x924] ss:$8 sps:$4 sm:$0xff]   ;;  %v8824_v30 = vld [vmem:[%s11438_s1 + $0x934] ss:$8 sps:$4 sm:$0xff]  }
 0x22d   : > { %4938 = vmatprep.subr.bf16.mxu1 %v8767_v20  ;;  %v8827_v20 = vld [vmem:[%s11439_s2 + $0x934] ss:$8 sps:$4 sm:$0xff]  }
 0x22f   : > { %4373 = vmatpush1.bf16.msra.mxu0 %v8762_v16  ;;  %v8822_v16 = vld [vmem:[%s11438_s1 + $0x930] ss:$8 sps:$4 sm:$0xff]  }
 0x230   : > { %4939 = vmatpush1.bf16.msra.mxu1 %v8765_v38  ;;  %4374 = vmatprep.subr.bf16.mxu0 %v8770_v36  ;;  %v8825_v38 = vld [vmem:[%s11439_s2 + $0x930] ss:$8 sps:$4 sm:$0xff]   ;;  %v8831_v36 = vld [vmem:[%s11439_s2 + $0x940] ss:$8 sps:$4 sm:$0xff]  }
 0x231   : > { %4940 = vmatprep.subr.bf16.mxu1 %v8773_v37  ;;  %v8836_v37 = vld [vmem:[%s11438_s1 + $0x954] ss:$8 sps:$4 sm:$0xff]  }
 0x233   : > { %4375 = vmatpush1.bf16.msra.mxu0 %v8768_v40  ;;  %v8839_v40 = vld [vmem:[%s11439_s2 + $0x954] ss:$8 sps:$4 sm:$0xff]  }
 0x234   : > { %4941 = vmatpush1.bf16.msra.mxu1 %v8771_v41  ;;  %4387 = vmatprep.subr.bf16.mxu0 %v8778_v43  ;;  %v8834_v41 = vld [vmem:[%s11438_s1 + $0x950] ss:$8 sps:$4 sm:$0xff]  }
 0x235   : > { %4953 = vmatprep.subr.bf16.mxu1 %v8781_v48  ;;  %v8837_v43 = vld [vmem:[%s11439_s2 + $0x950] ss:$8 sps:$4 sm:$0xff]   ;;  %v8840_v48 = vld [vmem:[%s11438_s1 + $0x960] ss:$8 sps:$4 sm:$0xff]  }
 0x236   : > { %4377 = vmatmul.mubr.bf16.vlgmr.msra.gmra.mrb[0].mxu0 %v3907_v53 }
 0x237   : > { %4943 = vmatmul.mubr.bf16.vlgmr.msra.gmra.mrb[0].mxu1 %v3907_v53  ;;  %4388 = vmatpush1.bf16.msra.mxu0 %v8776_v51  ;;  %v8848_v51 = vld [vmem:[%s11438_s1 + $0x974] ss:$8 sps:$4 sm:$0xff]   ;;  %v8846_v53 = vld [vmem:[%s11438_s1 + $0x970] ss:$8 sps:$4 sm:$0xff]  }
 0x238   : > { %4954 = vmatpush1.bf16.msra.mxu1 %v8779_v52  ;;  %4389 = vmatprep.subr.bf16.mxu0 %v8786_v56  ;;  %v8851_v52 = vld [vmem:[%s11439_s2 + $0x974] ss:$8 sps:$4 sm:$0xff]   ;;  %v8854_v56 = vld [vmem:[%s11438_s1 + $0x984] ss:$8 sps:$4 sm:$0xff]  }
 0x239   : > { %4955 = vmatprep.subr.bf16.mxu1 %v8789_v57  ;;  %4419 = vmatprep.mubr.bf16.mxu0 %v9040_v39  ;;  %v8857_v57 = vld [vmem:[%s11439_s2 + $0x984] ss:$8 sps:$4 sm:$0xff]  }
 0x23a   : > { %4985 = vmatprep.mubr.bf16.mxu1 %v9040_v39 }
 0x23b   : > { %4390 = vmatpush1.bf16.msra.mxu0 %v8784_v58  ;;  %v8852_v58 = vld [vmem:[%s11438_s1 + $0x980] ss:$8 sps:$4 sm:$0xff]  }
 0x23c   : > { %4956 = vmatpush1.bf16.msra.mxu1 %v8787_v59  ;;  %4391 = vmatprep.subr.bf16.mxu0 %v8792_v33  ;;  %v8855_v59 = vld [vmem:[%s11439_s2 + $0x980] ss:$8 sps:$4 sm:$0xff]   ;;  %v8858_v33 = vld [vmem:[%s11438_s1 + $0x990] ss:$8 sps:$4 sm:$0xff]  }
 0x23d   : > { %4957 = vmatprep.subr.bf16.mxu1 %v8795_v0  ;;  %v8861_v0 = vld [vmem:[%s11439_s2 + $0x990] ss:$8 sps:$4 sm:$0xff]  }
 0x23f   : > { %4392 = vmatpush1.bf16.msra.mxu0 %v8790_v2  ;;  %v8866_v2 = vld [vmem:[%s11438_s1 + $0x9a4] ss:$8 sps:$4 sm:$0xff]  }
 0x240   : > { %4958 = vmatpush1.bf16.msra.mxu1 %v8793_v46  ;;  %4393 = vmatprep.subr.bf16.mxu0 %v8798_v7  ;;  %v8869_v46 = vld [vmem:[%s11439_s2 + $0x9a4] ss:$8 sps:$4 sm:$0xff]   ;;  %v8875_v7 = vld [vmem:[%s11439_s2 + $0x9b4] ss:$8 sps:$4 sm:$0xff]  }
 0x241   : > { %4959 = vmatprep.subr.bf16.mxu1 %v8801_v8  ;;  %v8870_v8 = vld [vmem:[%s11438_s1 + $0x9b0] ss:$8 sps:$4 sm:$0xff]  }
 0x243   : > { %4394 = vmatpush1.bf16.msra.mxu0 %v8796_v11  ;;  %v8878_v11 = vld [vmem:[%s11438_s1 + $0x9c4] ss:$8 sps:$4 sm:$0xff]  }
 0x244   : > { %4960 = vmatpush1.bf16.msra.mxu1 %v8799_v12  ;;  %5472 = vmatprep.subr.bf16.mxu0 %v8804_v15  ;;  %v8881_v12 = vld [vmem:[%s11439_s2 + $0x9c4] ss:$8 sps:$4 sm:$0xff]   ;;  %v8884_v15 = vld [vmem:[%s11438_s1 + $0x9d4] ss:$8 sps:$4 sm:$0xff]  }
 0x245   : > { %6038 = vmatprep.subr.bf16.mxu1 %v8807_v34  ;;  %v8887_v34 = vld [vmem:[%s11439_s2 + $0x9d4] ss:$8 sps:$4 sm:$0xff]  }
 0x246   : > { %7327 = vmatmul.mubr.msk.bf16.vlgmr.msra.gmra.mrb[0].mxu0 %vm899_vm0, %v3933_v22 }
 0x247   : > { %7472 = vmatmul.mubr.msk.bf16.vlgmr.msra.gmra.mrb[0].mxu1 %vm899_vm0, %v3933_v22  ;;  %5473 = vmatpush1.bf16.msra.mxu0 %v8802_v19  ;;  %v8890_v19 = vld [vmem:[%s11438_s1 + $0x9e4] ss:$8 sps:$4 sm:$0xff]   ;;  %v8888_v22 = vld [vmem:[%s11438_s1 + $0x9e0] ss:$8 sps:$4 sm:$0xff]  }
 0x248   : > { %6039 = vmatpush1.bf16.msra.mxu1 %v8805_v21  ;;  %5474 = vmatprep.subr.bf16.mxu0 %v8812_v23  ;;  %v8893_v21 = vld [vmem:[%s11439_s2 + $0x9e4] ss:$8 sps:$4 sm:$0xff]   ;;  %v8891_v23 = vld [vmem:[%s11439_s2 + $0x9e0] ss:$8 sps:$4 sm:$0xff]  }
 0x249   : > { %6040 = vmatprep.subr.bf16.mxu1 %v8815_v47  ;;  %5504 = vmatprep.mubr.bf16.mxu0 %v5095_v24  ;;  %v9031_v47 = vld [vmem:[%s9228_s26 + $0x14] sm:$0xff] }
 0x24a   : > { %6070 = vmatprep.mubr.bf16.mxu1 %v5095_v24  ;;  %v7545_v24 = vcombine.low %v10944_v6, %v9031_v47  ;;  %v8894_v6 = vld [vmem:[%s11438_s1 + $0x9f0] ss:$8 sps:$4 sm:$0xff]   ;;  %v8973_v47 = vld [vmem:[%s11439_s2 + $0xab4] ss:$8 sps:$4 sm:$0xff]  }
 0x24b   : > { %5475 = vmatpush1.bf16.msra.mxu0 %v8810_v10  ;;  %v11148_v10 = vld [vmem:[%s9228_s26 + $0x8] sm:$0xcc] }
 0x24c   : > { %6041 = vmatpush1.bf16.msra.mxu1 %v8813_v25  ;;  %5476 = vmatprep.subr.bf16.mxu0 %v8818_v26  ;;  %v8896_v25 = vld [vmem:[%s11438_s1 + $0x9f4] ss:$8 sps:$4 sm:$0xff]  }
 0x24d   : > { %6042 = vmatprep.subr.bf16.mxu1 %v8821_v60  ;;  %v8899_v26 = vld [vmem:[%s11439_s2 + $0x9f4] ss:$8 sps:$4 sm:$0xff]   ;;  %v7548_v60 = vcombine.high %v11148_v10, %v10641_v61 }
 0x24f   : > { %5477 = vmatpush1.bf16.msra.mxu0 %v8816_v28  ;;  %v8897_v28 = vld [vmem:[%s11439_s2 + $0x9f0] ss:$8 sps:$4 sm:$0xff]  }
 0x250   : > { %6043 = vmatpush1.bf16.msra.mxu1 %v8819_v29  ;;  %5478 = vmatprep.subr.bf16.mxu0 %v8824_v30  ;;  %v5090_v29 = vrot.slane %v7545_v24, 2  ;;  %v5091_v30 = vrot.slane %v10659_v1, 2  ;;  %v8904_v1 = vld [vmem:[%s11439_s2 + $0xa00] ss:$8 sps:$4 sm:$0xff]   ;;  %v8968_v24 = vld [vmem:[%s11438_s1 + $0xab0] ss:$8 sps:$4 sm:$0xff]  }
 0x251   : > { %6044 = vmatprep.subr.bf16.mxu1 %v8827_v20  ;;  %v8903_v20 = vld [vmem:[%s11438_s1 + $0xa04] ss:$8 sps:$4 sm:$0xff]  }
 0x253   : > { %5479 = vmatpush1.bf16.msra.mxu0 %v8822_v16  ;;  %v8906_v16 = vld [vmem:[%s11439_s2 + $0xa04] ss:$8 sps:$4 sm:$0xff]  }
 0x254   : > { %6045 = vmatpush1.bf16.msra.mxu1 %v8825_v38  ;;  %5480 = vmatprep.subr.bf16.mxu0 %v8830_v31  ;;  %v5099_v38 = vrot.slane %v7548_v60, 2  ;;  %v5100_v31 = vrot.slane %v10675_v42, 2  ;;  %v8913_v42 = vld [vmem:[%s11439_s2 + $0xa14] ss:$8 sps:$4 sm:$0xff]   ;;  %v8979_v60 = vld [vmem:[%s11439_s2 + $0xac4] ss:$8 sps:$4 sm:$0xff]  }
 0x255   : > { %6046 = vmatprep.subr.bf16.mxu1 %v8833_v32  ;;  %v8901_v32 = vld [vmem:[%s11438_s1 + $0xa00] ss:$8 sps:$4 sm:$0xff]  }
 0x257   : > { %5481 = vmatpush1.bf16.msra.mxu0 %v8828_v35  ;;  %v5092_v35 = vsel %vm5089_vm2, %v5090_v29, %v5091_v30  ;;  %v8982_v29 = vld [vmem:[%s11438_s1 + $0xad4] ss:$8 sps:$4 sm:$0xff]  }
 0x258   : > { %6047 = vmatpush1.bf16.msra.mxu1 %v8831_v36  ;;  %5482 = vmatprep.subr.bf16.mxu0 %v8836_v37  ;;  %v8910_v36 = vld [vmem:[%s11438_s1 + $0xa14] ss:$8 sps:$4 sm:$0xff]   ;;  %v5101_v37 = vsel %vm5089_vm2, %v5099_v38, %v5100_v31  ;;  %v8988_v38 = vld [vmem:[%s11438_s1 + $0xae4] ss:$8 sps:$4 sm:$0xff]  }
 0x259   : > { %6048 = vmatprep.subr.bf16.mxu1 %v8839_v40  ;;  %v8908_v40 = vld [vmem:[%s11438_s1 + $0xa10] ss:$8 sps:$4 sm:$0xff]   ;;  %v8985_v30 = vld [vmem:[%s11439_s2 + $0xad4] ss:$8 sps:$4 sm:$0xff]   ;;  %v8991_v31 = vld [vmem:[%s11439_s2 + $0xae4] ss:$8 sps:$4 sm:$0xff]  }
 0x25b   : > { %5483 = vmatpush1.bf16.msra.mxu0 %v8834_v41  ;;  %v8911_v41 = vld [vmem:[%s11439_s2 + $0xa10] ss:$8 sps:$4 sm:$0xff]  }
 0x25c   : > { %6049 = vmatpush1.bf16.msra.mxu1 %v8837_v43  ;;  %5484 = vmatprep.subr.bf16.mxu0 %v8842_v44  ;;  %v8916_v43 = vld [vmem:[%s11438_s1 + $0xa24] ss:$8 sps:$4 sm:$0xff]  }
 0x25d   : > { %6050 = vmatprep.subr.bf16.mxu1 %v8845_v45  ;;  %v8919_v44 = vld [vmem:[%s11439_s2 + $0xa24] ss:$8 sps:$4 sm:$0xff]   ;;  %v8914_v45 = vld [vmem:[%s11438_s1 + $0xa20] ss:$8 sps:$4 sm:$0xff]  }
 0x25f   : > { %5485 = vmatpush1.bf16.msra.mxu0 %v8840_v48  ;;  %v8917_v48 = vld [vmem:[%s11439_s2 + $0xa20] ss:$8 sps:$4 sm:$0xff]  }
 0x260   : > { %6051 = vmatpush1.bf16.msra.mxu1 %v8843_v49  ;;  %5486 = vmatprep.subr.bf16.mxu0 %v8848_v51  ;;  %v8922_v49 = vld [vmem:[%s11438_s1 + $0xa34] ss:$8 sps:$4 sm:$0xff]  }
 0x261   : > { %6052 = vmatprep.subr.bf16.mxu1 %v8851_v52  ;;  %v8925_v51 = vld [vmem:[%s11439_s2 + $0xa34] ss:$8 sps:$4 sm:$0xff]   ;;  %v8920_v52 = vld [vmem:[%s11438_s1 + $0xa30] ss:$8 sps:$4 sm:$0xff]  }
 0x263   : > { %5487 = vmatpush1.bf16.msra.mxu0 %v8846_v53  ;;  %v8923_v53 = vld [vmem:[%s11439_s2 + $0xa30] ss:$8 sps:$4 sm:$0xff]  }
 0x264   : > { %6053 = vmatpush1.bf16.msra.mxu1 %v8849_v55  ;;  %5488 = vmatprep.subr.bf16.mxu0 %v8854_v56  ;;  %v8928_v55 = vld [vmem:[%s11438_s1 + $0xa44] ss:$8 sps:$4 sm:$0xff]  }
 0x265   : > { %6054 = vmatprep.subr.bf16.mxu1 %v8857_v57  ;;  %v8931_v56 = vld [vmem:[%s11439_s2 + $0xa44] ss:$8 sps:$4 sm:$0xff]   ;;  %v8926_v57 = vld [vmem:[%s11438_s1 + $0xa40] ss:$8 sps:$4 sm:$0xff]  }
 0x267   : > { %5489 = vmatpush1.bf16.msra.mxu0 %v8852_v58  ;;  %v8929_v58 = vld [vmem:[%s11439_s2 + $0xa40] ss:$8 sps:$4 sm:$0xff]  }
 0x268   : > { %6055 = vmatpush1.bf16.msra.mxu1 %v8855_v59  ;;  %5490 = vmatprep.subr.bf16.mxu0 %v8860_v54  ;;  %v8934_v59 = vld [vmem:[%s11438_s1 + $0xa54] ss:$8 sps:$4 sm:$0xff]  }
 0x269   : > { %6056 = vmatprep.subr.bf16.mxu1 %v8863_v63  ;;  %v8937_v54 = vld [vmem:[%s11439_s2 + $0xa54] ss:$8 sps:$4 sm:$0xff]   ;;  %v8932_v63 = vld [vmem:[%s11438_s1 + $0xa50] ss:$8 sps:$4 sm:$0xff]  }
 0x26b   : > { %5491 = vmatpush1.bf16.msra.mxu0 %v8858_v33  ;;  %v8935_v33 = vld [vmem:[%s11439_s2 + $0xa50] ss:$8 sps:$4 sm:$0xff]  }
 0x26c   : > { %6057 = vmatpush1.bf16.msra.mxu1 %v8861_v0  ;;  %5492 = vmatprep.subr.bf16.mxu0 %v8866_v2  ;;  %v8940_v0 = vld [vmem:[%s11438_s1 + $0xa64] ss:$8 sps:$4 sm:$0xff]  }
 0x26d   : > { %6058 = vmatprep.subr.bf16.mxu1 %v8869_v46  ;;  %v8943_v2 = vld [vmem:[%s11439_s2 + $0xa64] ss:$8 sps:$4 sm:$0xff]   ;;  %v8938_v46 = vld [vmem:[%s11438_s1 + $0xa60] ss:$8 sps:$4 sm:$0xff]  }
 0x26f   : > { %5493 = vmatpush1.bf16.msra.mxu0 %v8864_v3  ;;  %v8941_v3 = vld [vmem:[%s11439_s2 + $0xa60] ss:$8 sps:$4 sm:$0xff]  }
 0x270   : > { %6059 = vmatpush1.bf16.msra.mxu1 %v8867_v4  ;;  %5494 = vmatprep.subr.bf16.mxu0 %v8872_v5  ;;  %v8946_v4 = vld [vmem:[%s11438_s1 + $0xa74] ss:$8 sps:$4 sm:$0xff]  }
 0x271   : > { %6060 = vmatprep.subr.bf16.mxu1 %v8875_v7  ;;  %v8949_v5 = vld [vmem:[%s11439_s2 + $0xa74] ss:$8 sps:$4 sm:$0xff]   ;;  %v8944_v7 = vld [vmem:[%s11438_s1 + $0xa70] ss:$8 sps:$4 sm:$0xff]  }
 0x273   : > { %5495 = vmatpush1.bf16.msra.mxu0 %v8870_v8  ;;  %v8947_v8 = vld [vmem:[%s11439_s2 + $0xa70] ss:$8 sps:$4 sm:$0xff]  }
 0x274   : > { %6061 = vmatpush1.bf16.msra.mxu1 %v8873_v9  ;;  %5496 = vmatprep.subr.bf16.mxu0 %v8878_v11  ;;  %v8952_v9 = vld [vmem:[%s11438_s1 + $0xa84] ss:$8 sps:$4 sm:$0xff]  }
 0x275   : > { %6062 = vmatprep.subr.bf16.mxu1 %v8881_v12  ;;  %v8955_v11 = vld [vmem:[%s11439_s2 + $0xa84] ss:$8 sps:$4 sm:$0xff]   ;;  %v8950_v12 = vld [vmem:[%s11438_s1 + $0xa80] ss:$8 sps:$4 sm:$0xff]  }
 0x277   : > { %5497 = vmatpush1.bf16.msra.mxu0 %v8876_v13  ;;  %v8953_v13 = vld [vmem:[%s11439_s2 + $0xa80] ss:$8 sps:$4 sm:$0xff]  }
 0x278   : > { %6063 = vmatpush1.bf16.msra.mxu1 %v8879_v14  ;;  %5498 = vmatprep.subr.bf16.mxu0 %v8884_v15  ;;  %v8958_v14 = vld [vmem:[%s11438_s1 + $0xa94] ss:$8 sps:$4 sm:$0xff]  }
 0x279   : > { %6064 = vmatprep.subr.bf16.mxu1 %v8887_v34  ;;  %v8961_v15 = vld [vmem:[%s11439_s2 + $0xa94] ss:$8 sps:$4 sm:$0xff]   ;;  %v8956_v34 = vld [vmem:[%s11438_s1 + $0xa90] ss:$8 sps:$4 sm:$0xff]  }
 0x27b   : > { %5499 = vmatpush1.bf16.msra.mxu0 %v8882_v17  ;;  %v8959_v17 = vld [vmem:[%s11439_s2 + $0xa90] ss:$8 sps:$4 sm:$0xff]  }
 0x27c   : > { %6065 = vmatpush1.bf16.msra.mxu1 %v8885_v18  ;;  %5500 = vmatprep.subr.bf16.mxu0 %v8890_v19  ;;  %v8964_v18 = vld [vmem:[%s11438_s1 + $0xaa4] ss:$8 sps:$4 sm:$0xff]  }
 0x27d   : > { %6066 = vmatprep.subr.bf16.mxu1 %v8893_v21  ;;  %v8967_v19 = vld [vmem:[%s11439_s2 + $0xaa4] ss:$8 sps:$4 sm:$0xff]   ;;  %v8962_v21 = vld [vmem:[%s11438_s1 + $0xaa0] ss:$8 sps:$4 sm:$0xff]  }
 0x27f   : > { %5501 = vmatpush1.bf16.msra.mxu0 %v8888_v22  ;;  %v8965_v22 = vld [vmem:[%s11439_s2 + $0xaa0] ss:$8 sps:$4 sm:$0xff]  }
 0x280   : > { %6067 = vmatpush1.bf16.msra.mxu1 %v8891_v23  ;;  %5502 = vmatprep.subr.bf16.mxu0 %v8896_v25  ;;  %v8970_v23 = vld [vmem:[%s11438_s1 + $0xab4] ss:$8 sps:$4 sm:$0xff]   ;;  %v8971_v25 = vld [vmem:[%s11439_s2 + $0xab0] ss:$8 sps:$4 sm:$0xff]  }
 0x281   : > { %6068 = vmatprep.subr.bf16.mxu1 %v8899_v26  ;;  %v8976_v26 = vld [vmem:[%s11438_s1 + $0xac4] ss:$8 sps:$4 sm:$0xff]  }
 0x283   : > { %5503 = vmatpush1.bf16.msra.mxu0 %v8894_v6  ;;  %v8974_v6 = vld [vmem:[%s11438_s1 + $0xac0] ss:$8 sps:$4 sm:$0xff]  }
 0x284   : > { %6069 = vmatpush1.bf16.msra.mxu1 %v8897_v28  ;;  %5515 = vmatprep.subr.bf16.mxu0 %v8903_v20  ;;  %v8977_v28 = vld [vmem:[%s11439_s2 + $0xac0] ss:$8 sps:$4 sm:$0xff]   ;;  %v8980_v20 = vld [vmem:[%s11438_s1 + $0xad0] ss:$8 sps:$4 sm:$0xff]  }
 0x285   : > { %6081 = vmatprep.subr.bf16.mxu1 %v8906_v16  ;;  %v8983_v16 = vld [vmem:[%s11439_s2 + $0xad0] ss:$8 sps:$4 sm:$0xff]  }
 0x286   : > { %5505 = vmatmul.mubr.bf16.vlgmr.msra.gmra.mrb[0].mxu0 %v5092_v35 }
 0x287   : > { %6071 = vmatmul.mubr.bf16.vlgmr.msra.gmra.mrb[0].mxu1 %v5092_v35  ;;  %5516 = vmatpush1.bf16.msra.mxu0 %v8901_v32  ;;  %v8986_v32 = vld [vmem:[%s11438_s1 + $0xae0] ss:$8 sps:$4 sm:$0xff]   ;;  %v7547_v35 = vcombine.low %v11148_v10, %v10641_v61  ;;  %v8995_v61 = vld [vmem:[%s11439_s2 + $0xaf0] ss:$8 sps:$4 sm:$0xff]  }
 0x288   : > { %6082 = vmatpush1.bf16.msra.mxu1 %v8904_v1  ;;  %5517 = vmatprep.subr.bf16.mxu0 %v8910_v36  ;;  %v8989_v1 = vld [vmem:[%s11439_s2 + $0xae0] ss:$8 sps:$4 sm:$0xff]   ;;  %v8994_v36 = vld [vmem:[%s11438_s1 + $0xaf4] ss:$8 sps:$4 sm:$0xff]  }
 0x289   : > { %6083 = vmatprep.subr.bf16.mxu1 %v8913_v42  ;;  %5547 = vmatprep.mubr.bf16.mxu0 %v5101_v37  ;;  %v8997_v42 = vld [vmem:[%s11439_s2 + $0xaf4] ss:$8 sps:$4 sm:$0xff]   ;;  %v5096_v10 = vrot.slane %v7547_v35, 2 }
 0x28a   : > { %6113 = vmatprep.mubr.bf16.mxu1 %v5101_v37  ;;  %v8992_v37 = vld [vmem:[%s11438_s1 + $0xaf0] ss:$8 sps:$4 sm:$0xff]  }
 0x28b   : > { %5518 = vmatpush1.bf16.msra.mxu0 %v8908_v40  ;;  %v5097_v40 = vrot.slane %v10868_v27, 2  ;;  %v9002_v27 = vld [vmem:[%s11439_s2 + $0xb00] ss:$8 sps:$4 sm:$0xff]  }
 0x28c   : > { %6084 = vmatpush1.bf16.msra.mxu1 %v8911_v41  ;;  %5519 = vmatprep.subr.bf16.mxu0 %v8916_v43  ;;  %v9001_v41 = vld [vmem:[%s11438_s1 + $0xb04] ss:$8 sps:$4 sm:$0xff]  }
 0x28d   : > { %6085 = vmatprep.subr.bf16.mxu1 %v8919_v44  ;;  %v9004_v43 = vld [vmem:[%s11439_s2 + $0xb04] ss:$8 sps:$4 sm:$0xff]   ;;  %v8999_v44 = vld [vmem:[%s11438_s1 + $0xb00] ss:$8 sps:$4 sm:$0xff]  }
 0x28f   : > { %5520 = vmatpush1.bf16.msra.mxu0 %v8914_v45  ;;  %v5098_v45 = vsel %vm5089_vm2, %v5096_v10, %v5097_v40 }
 0x290   : > { %6086 = vmatpush1.bf16.msra.mxu1 %v8917_v48  ;;  %5521 = vmatprep.subr.bf16.mxu0 %v8922_v49  ;;  %v9008_v48 = vld [vmem:[%s11438_s1 + $0xb14] ss:$8 sps:$4 sm:$0xff]  }
 0x291   : > { %6087 = vmatprep.subr.bf16.mxu1 %v8925_v51  ;;  %v9011_v49 = vld [vmem:[%s11439_s2 + $0xb14] ss:$8 sps:$4 sm:$0xff]   ;;  %v9006_v51 = vld [vmem:[%s11438_s1 + $0xb10] ss:$8 sps:$4 sm:$0xff]  }
 0x293   : > { %5522 = vmatpush1.bf16.msra.mxu0 %v8920_v52  ;;  %v9009_v52 = vld [vmem:[%s11439_s2 + $0xb10] ss:$8 sps:$4 sm:$0xff]  }
 0x294   : > { %6088 = vmatpush1.bf16.msra.mxu1 %v8923_v53  ;;  %5523 = vmatprep.subr.bf16.mxu0 %v8928_v55  ;;  %v9014_v53 = vld [vmem:[%s11438_s1 + $0xb24] ss:$8 sps:$4 sm:$0xff]  }
 0x295   : > { %6089 = vmatprep.subr.bf16.mxu1 %v8931_v56  ;;  %v9017_v55 = vld [vmem:[%s11439_s2 + $0xb24] ss:$8 sps:$4 sm:$0xff]   ;;  %v5002_v56 = vld [vmem:[%s9228_s26 + $0x10] sm:$0xc] }
 0x297   : > { %5524 = vmatpush1.bf16.msra.mxu0 %v8926_v57  ;;  %v9012_v57 = vld [vmem:[%s11438_s1 + $0xb20] ss:$8 sps:$4 sm:$0xff]  }
 0x298   : > { %6090 = vmatpush1.bf16.msra.mxu1 %v8929_v58  ;;  %5525 = vmatprep.subr.bf16.mxu0 %v8934_v59  ;;  %v9015_v58 = vld [vmem:[%s11439_s2 + $0xb20] ss:$8 sps:$4 sm:$0xff]   ;;  %v7549_v59 = vcombine.low %v5002_v56, %v10903_v50  ;;  %v9021_v50 = vld [vmem:[%s11439_s2 + $0xb30] ss:$8 sps:$4 sm:$0xff]  }
 0x299   : > { %6091 = vmatprep.subr.bf16.mxu1 %v8937_v54  ;;  %v9020_v54 = vld [vmem:[%s11438_s1 + $0xb34] ss:$8 sps:$4 sm:$0xff]  }
 0x29b   : > { %5526 = vmatpush1.bf16.msra.mxu0 %v8932_v63  ;;  %v9018_v63 = vld [vmem:[%s11438_s1 + $0xb30] ss:$8 sps:$4 sm:$0xff]  }
 0x29c   : > { %6092 = vmatpush1.bf16.msra.mxu1 %v8935_v33  ;;  %5527 = vmatprep.subr.bf16.mxu0 %v8940_v0  ;;  %v5102_v33 = vrot.slane %v7549_v59, 2  ;;  %v5103_v0 = vrot.slane %v10926_v62, 2 }
 0x29d   : > { %6093 = vmatprep.subr.bf16.mxu1 %v8943_v2 }
 0x29e   : > { %v5104_v2 = vsel %vm5089_vm2, %v5102_v33, %v5103_v0 }
 0x29f   : > { %5528 = vmatpush1.bf16.msra.mxu0 %v8938_v46  ;;  %v9041_v46 = vmov 0.0  }
 0x2a0   : > { %6094 = vmatpush1.bf16.msra.mxu1 %v8941_v3  ;;  %5529 = vmatprep.subr.bf16.mxu0 %v8946_v4 }
 0x2a1   : > { %6095 = vmatprep.subr.bf16.mxu1 %v8949_v5 }
 0x2a3   : > { %5530 = vmatpush1.bf16.msra.mxu0 %v8944_v7 }
 0x2a4   : > { %6096 = vmatpush1.bf16.msra.mxu1 %v8947_v8  ;;  %5531 = vmatprep.subr.bf16.mxu0 %v8952_v9 }
 0x2a5   : > { %6097 = vmatprep.subr.bf16.mxu1 %v8955_v11 }
 0x2a7   : > { %5532 = vmatpush1.bf16.msra.mxu0 %v8950_v12 }
 0x2a8   : > { %6098 = vmatpush1.bf16.msra.mxu1 %v8953_v13  ;;  %5533 = vmatprep.subr.bf16.mxu0 %v8958_v14 }
 0x2a9   : > { %6099 = vmatprep.subr.bf16.mxu1 %v8961_v15 }
 0x2ab   : > { %5534 = vmatpush1.bf16.msra.mxu0 %v8956_v34 }
 0x2ac   : > { %6100 = vmatpush1.bf16.msra.mxu1 %v8959_v17  ;;  %5535 = vmatprep.subr.bf16.mxu0 %v8964_v18  ;;  %v6175_v18 = vld [vmem:[%s11440_s3] sm:$0x7f] }
 0x2ad   : > { %6101 = vmatprep.subr.bf16.mxu1 %v8967_v19  ;;  %v6258_v19 = vld [vmem:[%s11441_s4] sm:$0x7f] }
 0x2af   : > { %5536 = vmatpush1.bf16.msra.mxu0 %v8962_v21  ;;  %v6337_v21 = vlaneseq }
 0x2b0   : > { %6102 = vmatpush1.bf16.msra.mxu1 %v8965_v22  ;;  %5537 = vmatprep.subr.bf16.mxu0 %v8970_v23 }
 0x2b1   : > { %6103 = vmatprep.subr.bf16.mxu1 %v8973_v47  ;;  %v6338_v22 = vshrl.u32 %v6337_v21, 7  ;;  %v6335_v47 = vld [vmem:[%s11442_s5] sm:$0x3] }
 0x2b3   : > { %5538 = vmatpush1.bf16.msra.mxu0 %v8968_v24  ;;  %v6339_v23 = vsub.s32 0, %v6338_v22  ;;  %v6343_v24 = vsub.s32 1, %v6338_v22 }
 0x2b4   : > { %6104 = vmatpush1.bf16.msra.mxu1 %v8971_v25  ;;  %5539 = vmatprep.subr.bf16.mxu0 %v8976_v26 }
 0x2b5   : > { %6105 = vmatprep.subr.bf16.mxu1 %v8979_v60  ;;  %v6340_v25 = vrot.slane %v6335_v47, %v6339_v23 }
 0x2b7   : > { %5540 = vmatpush1.bf16.msra.mxu0 %v8974_v6  ;;  %v6344_v6 = vrot.slane %v6335_v47, %v6343_v24 }
 0x2b8   : > { %6106 = vmatpush1.bf16.msra.mxu1 %v8977_v28  ;;  %5541 = vmatprep.subr.bf16.mxu0 %v8982_v29 }
 0x2b9   : > { %6107 = vmatprep.subr.bf16.mxu1 %v8985_v30 }
 0x2bb   : > { %5542 = vmatpush1.bf16.msra.mxu0 %v8980_v20 }
 0x2bc   : > { %6108 = vmatpush1.bf16.msra.mxu1 %v8983_v16  ;;  %5543 = vmatprep.subr.bf16.mxu0 %v8988_v38 }
 0x2bd   : > { %6109 = vmatprep.subr.bf16.mxu1 %v8991_v31 }
 0x2bf   : > { %5544 = vmatpush1.bf16.msra.mxu0 %v8986_v32 }
 0x2c0   : > { %6110 = vmatpush1.bf16.msra.mxu1 %v8989_v1  ;;  %5545 = vmatprep.subr.bf16.mxu0 %v8994_v36  ;;  %v6366_v1 = vld [vmem:[%s251_s19] sm:$0xff] }
 0x2c1   : > { %6111 = vmatprep.subr.bf16.mxu1 %v8997_v42 }
 0x2c3   : > { %5546 = vmatpush1.bf16.msra.mxu0 %v8992_v37 }
 0x2c4   : > { %6112 = vmatpush1.bf16.msra.mxu1 %v8995_v61  ;;  %5558 = vmatprep.subr.bf16.mxu0 %v9001_v41 }
 0x2c5   : > { %6124 = vmatprep.subr.bf16.mxu1 %v9004_v43 }
 0x2c6   : > { %5548 = vmatmul.mubr.bf16.vlgmr.msra.gmra.mrb[0].mxu0 %v5098_v45 }
 0x2c7   : > { %6114 = vmatmul.mubr.bf16.vlgmr.msra.gmra.mrb[0].mxu1 %v5098_v45  ;;  %5559 = vmatpush1.bf16.msra.mxu0 %v8999_v44 }
 0x2c8   : > { %6125 = vmatpush1.bf16.msra.mxu1 %v9002_v27  ;;  %5560 = vmatprep.subr.bf16.mxu0 %v9008_v48 }
 0x2c9   : > { %6126 = vmatprep.subr.bf16.mxu1 %v9011_v49  ;;  %5590 = vmatprep.mubr.bf16.mxu0 %v9040_v39 }
 0x2ca   : > { %6156 = vmatprep.mubr.bf16.mxu1 %v9040_v39  ;;  %v9023_v39 = vld [vmem:[%s11439_s2 + $0xb34] ss:$8 sps:$4 sm:$0xff]  }
 0x2cb   : > { %5561 = vmatpush1.bf16.msra.mxu0 %v9006_v51 }
 0x2cc   : > { %6127 = vmatpush1.bf16.msra.mxu1 %v9009_v52  ;;  %5562 = vmatprep.subr.bf16.mxu0 %v9014_v53 }
 0x2cd   : > { %6128 = vmatprep.subr.bf16.mxu1 %v9017_v55 }
 0x2cf   : > { %5563 = vmatpush1.bf16.msra.mxu0 %v9012_v57 }
 0x2d0   : > { %6129 = vmatpush1.bf16.msra.mxu1 %v9015_v58  ;;  %5564 = vmatprep.subr.bf16.mxu0 %v9020_v54 }
 0x2d1   : > { %6130 = vmatprep.subr.bf16.mxu1 %v9023_v39 }
 0x2d3   : > { %5565 = vmatpush1.bf16.msra.mxu0 %v9018_v63 }
 0x2d4   : > { %6131 = vmatpush1.bf16.msra.mxu1 %v9021_v50 }
 0x2d6   : > { %7622 = vmatmul.mubr.msk.bf16.vlgmr.msra.gmra.mrb[0].mxu0 %vm899_vm0, %v5104_v2 }
 0x2d7   : > { %7767 = vmatmul.mubr.msk.bf16.vlgmr.msra.gmra.mrb[0].mxu1 %vm899_vm0, %v5104_v2  ;;  %6251 = vmatprep.mubr.f32.mxu0 %v9041_v46 }
 0x2d8   : > { %6326 = vmatprep.mubr.f32.mxu1 %v9041_v46 }
 0x3a9   : > { %v5592_v3 = vpop.f32.mrb[0].mxu0 }
 0x3aa   : > { %v6158_v4 = vpop.f32.mrb[0].mxu1  ;;  %v5594_v7 = vpop.f32.mrb[1].mxu0 }
 0x3ab   : > { %v6171_v5 = vmax.f32 %v5592_v3, %v6158_v4  ;;  %v6160_v8 = vpop.f32.mrb[1].mxu1  ;;  %v5596_v62 = vpop.f32.mrb[2].mxu0 }
 0x3ac   : > { %v6172_v9 = vmax.f32 %v5594_v7, %v6160_v8  ;;  %v6162_v11 = vpop.f32.mrb[2].mxu1  ;;  %v5598_v13 = vpop.f32.mrb[3].mxu0 }
 0x3ad   : > { %v6173_v12 = vmax.f32 %v5596_v62, %v6162_v11  ;;  %v6164_v14 = vpop.f32.mrb[3].mxu1 }
 0x3ae   : > { %v6174_v15 = vmax.f32 %v5598_v13, %v6164_v14 }
 0x3af   : > { %v7782_v34 = vpack.c.bf16 %v6173_v12, %v6171_v5 }
 0x3b0   : > { %v7779_v17 = vpack.c.bf16 %v6174_v15, %v6172_v9 }
 0x3b2   : > { %7781 = vmatprep.subr.msk.bf16.mxu0 %vm7780_vm4, %v7779_v17  ;;  %7787 = vmatprep.subr.msk.bf16.mxu1 %vm7780_vm4, %v7779_v17 }
 0x3b3   : > { %7784 = vmatpush1.bf16.msk.msra.mxu0 %vm7780_vm4, %v7782_v34  ;;  %7790 = vmatpush1.bf16.msk.msra.mxu1 %vm7780_vm4, %v7782_v34 }
 0x3b6   : > { %7770 = vmatmul.mubr.msk.f32.vlgmr.msra.gmra.mrb[4].mxu0 %vm6176_vm5, %v6175_v18  ;;  %7773 = vmatmul.mubr.msk.f32.vlgmr.msra.gmra.mrb[4].mxu1 %vm6176_vm5, %v6258_v19 }
 0x489   : > { %v6253_v26 = vpop.f32.mrb[4].mxu0  ;;  %v6328_v60 = vpop.f32.mrb[4].mxu1 }
 0x48a   : > { %v6333_v28 = vmax.f32 %v6253_v26, %v6328_v60  ;;  %v6255_v29 = vpop.f32.mrb[5].mxu0  ;;  %v6330_v30 = vpop.f32.mrb[5].mxu1 }
 0x48b   : > { %v6334_v20 = vmax.f32 %v6255_v29, %v6330_v30 }
 0x48c   : > { %v6347_v16 = vadd.f32 %v6340_v25, %v6333_v28 }
 0x48d   : > { %v6348_v38 = vadd.f32 %v6344_v6, %v6334_v20 }
 0x48e   : > { %v6349_v31 = vmax.f32 %v6347_v16, 0.0 }
 0x48f   : > { %v6350_v32 = vmax.f32 %v6348_v38, 0.0 }
 0x491   : > { %v7778_v35 = vpack.c.bf16 %v6350_v32, %v6349_v31 }
 0x493   : > { %v6367_v36 = vsel %vm6365_vm12, %v7778_v35, %v6366_v1 }
 0x494   : > { %6368 = vst [vmem:[%s251_s19] sm:$0xff] %v6367_v36 }
 0x495 PF: > { %s16_s21 = sadd.s32 1, %s9038_s21  }
 0x496   : > { %p13_p4 = scmp.ge.s32.totalorder %s16_s21, 4  }
 0x498   :  { %15 = sbr.rel (!%p13_p4) target bundleno = 1 (0x1), region = 82 }

</bundles_post_ra>
